<compile_context>
chip_gen: v5e
topology: v5e:2x2
jax: 0.10.0
libtpu: 0.0.40
codegen_flags: <defaults>
</compile_context>

<pallas_src>
import numpy as np
import jax
import jax.numpy as jnp
from jax.experimental import pallas as pl
from jax.experimental.pallas import tpu as pltpu

LANE = 128


def _conv3x3_im2col_w(xpad_ref, w_ref, b_ref):
    """3x3 'same' conv on one padded image held in VMEM scratch.

    xpad_ref: (H+2, W+2, Cp) f32 scratch, border already zero, interior = input
    w_ref:    (3, 3*Cp, Cp) bf16  -- rows ordered (dw, cin) for each dh
    b_ref:    (1, Cp) f32
    returns   (H, W, Cp) f32
    """
    Hp2, Wp2, Cp = xpad_ref.shape
    H, W = Hp2 - 2, Wp2 - 2

    xp = xpad_ref[...]                                        # (H+2, W+2, Cp)
    # width-direction im2col: 3 shifted windows concatenated on the lane axis
    xcat = jnp.concatenate(
        [xp[:, 0:W, :], xp[:, 1:W + 1, :], xp[:, 2:W + 2, :]],
        axis=-1).astype(jnp.bfloat16)                         # (H+2, W, 3*Cp)

    acc = b_ref[...].astype(jnp.float32)                      # bias-init (1, Cp)
    for dh in range(3):
        # leading-axis slice is cheap; (H, W, 3Cp)->(H*W, 3Cp) is layout-free
        # because W is a multiple of 8.
        win = xcat[dh:dh + H].reshape(H * W, 3 * Cp)
        acc = acc + jnp.dot(win, w_ref[dh],
                            preferred_element_type=jnp.float32)
    return acc.reshape(H, W, Cp)


def shortcut_kernel(x_ref, w1_ref, b1_ref, w2_ref, b2_ref, o_ref, xpad_ref):
    _, H, W, Cp = x_ref.shape

    # Zero only the 1-pixel halo border (done every step -> safe under
    # "parallel" grid semantics; interior is fully overwritten below).
    zrow = jnp.zeros((1, W + 2, Cp), jnp.float32)
    xpad_ref[pl.ds(0, 1), :, :] = zrow
    xpad_ref[pl.ds(H + 1, 1), :, :] = zrow
    zcol = jnp.zeros((H, 1, Cp), jnp.float32)
    xpad_ref[pl.ds(1, H), pl.ds(0, 1), :] = zcol
    xpad_ref[pl.ds(1, H), pl.ds(W + 1, 1), :] = zcol

    x = x_ref[0].astype(jnp.float32)                          # (H, W, Cp)

    # conv1 -> ReLU
    xpad_ref[pl.ds(1, H), pl.ds(1, W), :] = x
    h = _conv3x3_im2col_w(xpad_ref, w1_ref, b1_ref)
    h = jnp.maximum(h, 0.0)

    # conv2 (reuse the same padded scratch; border is still zero)
    xpad_ref[pl.ds(1, H), pl.ds(1, W), :] = h
    y = _conv3x3_im2col_w(xpad_ref, w2_ref, b2_ref)

    # identity shortcut
    o_ref[0] = (x + y).astype(o_ref.dtype)


def _prep_conv_params(w_oihw, b, c_pad):
    """PyTorch Conv2d OIHW weights -> (kh, kw*Cp, Cp) bf16 and (1, Cp) f32 bias."""
    cout, cin, kh, kw = w_oihw.shape
    w = jnp.transpose(w_oihw, (2, 3, 1, 0))                   # HWIO
    w = jnp.pad(w, ((0, 0), (0, 0), (0, c_pad - cin), (0, c_pad - cout)))
    w = w.reshape(kh, kw * c_pad, c_pad).astype(jnp.bfloat16)
    b = jnp.pad(b, (0, c_pad - b.shape[0])).reshape(1, c_pad).astype(jnp.float32)
    return w, b


def shortcut_block_nhwc(x_nhwc, w1_oihw, b1, w2_oihw, b2):
    """ShortcutBlock forward on NHWC input (no layout transposes needed)."""
    N, H, W, C = x_nhwc.shape
    Cp = ((C + LANE - 1) // LANE) * LANE
    x = x_nhwc if Cp == C else jnp.pad(
        x_nhwc, ((0, 0), (0, 0), (0, 0), (0, Cp - C)))
    w1p, b1p = _prep_conv_params(w1_oihw, b1, Cp)
    w2p, b2p = _prep_conv_params(w2_oihw, b2, Cp)

    out = pl.pallas_call(
        shortcut_kernel,
        out_shape=jax.ShapeDtypeStruct((N, H, W, Cp), x_nhwc.dtype),
        grid=(N,),
        in_specs=[
            pl.BlockSpec((1, H, W, Cp), lambda n: (n, 0, 0, 0)),
            pl.BlockSpec((3, 3 * Cp, Cp), lambda n: (0, 0, 0)),
            pl.BlockSpec((1, Cp), lambda n: (0, 0)),
            pl.BlockSpec((3, 3 * Cp, Cp), lambda n: (0, 0, 0)),
            pl.BlockSpec((1, Cp), lambda n: (0, 0)),
        ],
        out_specs=pl.BlockSpec((1, H, W, Cp), lambda n: (n, 0, 0, 0)),
        scratch_shapes=[pltpu.VMEM((H + 2, W + 2, Cp), jnp.float32)],
        compiler_params=pltpu.CompilerParams(
            dimension_semantics=("parallel",),
            vmem_limit_bytes=32 * 1024 * 1024),
    )(x, w1p, b1p, w2p, b2p)
    return out[..., :C]


def shortcut_block(x_nchw, w1_oihw, b1, w2_oihw, b2):
    """PyTorch-parity wrapper: NCHW in / NCHW out, OIHW weights."""
    x = jnp.transpose(x_nchw, (0, 2, 3, 1))                   # NCHW -> NHWC
    y = shortcut_block_nhwc(x, w1_oihw, b1, w2_oihw, b2)
    return jnp.transpose(y, (0, 3, 1, 2))                     # NHWC -> NCHW


def reference(x_nchw, w1_oihw, b1, w2_oihw, b2):
    """Pure-JAX reference matching PyTorch semantics (NCHW, OIHW weights)."""
    def conv(x, w, b):
        y = jax.lax.conv_general_dilated(
            x, w, window_strides=(1, 1), padding='SAME',
            dimension_numbers=('NCHW', 'OIHW', 'NCHW'))
        return y + b.reshape(1, -1, 1, 1)
    h = jax.nn.relu(conv(x_nchw, w1_oihw, b1))
    return x_nchw + conv(h, w2_oihw, b2)


if __name__ == "__main__":
    key = jax.random.PRNGKey(0)
    k1, k2, k3, k4, k5 = jax.random.split(key, 5)

    N, C, H, W = 2, 4, 16, 16
    x = jax.random.normal(k1, (N, C, H, W), jnp.float32)
    # deterministic synthetic parameters, PyTorch Conv2d layout (Cout,Cin,kH,kW)
    w1 = jax.random.normal(k2, (C, C, 3, 3), jnp.float32) * 0.1
    b1 = jax.random.normal(k3, (C,), jnp.float32) * 0.1
    w2 = jax.random.normal(k4, (C, C, 3, 3), jnp.float32) * 0.1
    b2 = jax.random.normal(k5, (C,), jnp.float32) * 0.1

    y = shortcut_block(x, w1, b1, w2, b2)
    y = jax.block_until_ready(y)

    y_ref = reference(x, w1, b1, w2, b2)
    np.testing.assert_allclose(np.asarray(y), np.asarray(y_ref),
                               rtol=2e-2, atol=2e-2)
    print("KERNEL_OK")
</pallas_src>

<mosaic_0001>
module attributes {stable_mosaic.version = 11 : i64} {
  func.func @shortcut_kernel(%arg0: i32, %arg1: memref<1x16x16x128xf32, #tpu.memory_space<vmem>>, %arg2: memref<3x384x128xbf16, #tpu.memory_space<vmem>>, %arg3: memref<1x128xf32, #tpu.memory_space<vmem>>, %arg4: memref<3x384x128xbf16, #tpu.memory_space<vmem>>, %arg5: memref<1x128xf32, #tpu.memory_space<vmem>>, %arg6: memref<1x16x16x128xf32, #tpu.memory_space<vmem>>, %arg7: memref<18x18x128xf32, #tpu.memory_space<vmem>>) attributes {dimension_semantics = [#tpu.dimension_semantics<parallel>], iteration_bounds = array<i64: 2>, scalar_prefetch = 0 : i64, scratch_operands = 1 : i64, tpu.core_type = #tpu.core_type<tc>, window_params = [{transform_indices = @transform_0, window_bounds = array<i64: 1, 16, 16, 128>}, {pipeline_mode = #tpu.pipeline_mode<synchronous>, transform_indices = @transform_1, window_bounds = array<i64: 3, 384, 128>}, {pipeline_mode = #tpu.pipeline_mode<synchronous>, transform_indices = @transform_2, window_bounds = array<i64: 1, 128>}, {pipeline_mode = #tpu.pipeline_mode<synchronous>, transform_indices = @transform_3, window_bounds = array<i64: 3, 384, 128>}, {pipeline_mode = #tpu.pipeline_mode<synchronous>, transform_indices = @transform_4, window_bounds = array<i64: 1, 128>}, {transform_indices = @transform_5, window_bounds = array<i64: 1, 16, 16, 128>}]} {
    %cst = arith.constant 0.000000e+00 : f32
    %0 = vector.broadcast %cst : f32 to vector<1x18x128xf32>
    %c0 = arith.constant 0 : index
    %c0_0 = arith.constant 0 : index
    %c0_1 = arith.constant 0 : index
    %1 = vector.load %arg7[%c0, %c0_0, %c0_1] : memref<18x18x128xf32, #tpu.memory_space<vmem>>, vector<1x18x128xf32>
    tpu.vector_store %arg7[%c0, %c0_0, %c0_1], %0 {strides = array<i32>} : memref<18x18x128xf32, #tpu.memory_space<vmem>>, vector<1x18x128xf32>,
    %c17 = arith.constant 17 : index
    %c0_2 = arith.constant 0 : index
    %c0_3 = arith.constant 0 : index
    %2 = vector.load %arg7[%c17, %c0_2, %c0_3] : memref<18x18x128xf32, #tpu.memory_space<vmem>>, vector<1x18x128xf32>
    tpu.vector_store %arg7[%c17, %c0_2, %c0_3], %0 {strides = array<i32>} : memref<18x18x128xf32, #tpu.memory_space<vmem>>, vector<1x18x128xf32>,
    %cst_4 = arith.constant 0.000000e+00 : f32
    %3 = vector.broadcast %cst_4 : f32 to vector<16x1x128xf32>
    %c1 = arith.constant 1 : index
    %c0_5 = arith.constant 0 : index
    %c0_6 = arith.constant 0 : index
    %4 = vector.load %arg7[%c1, %c0_5, %c0_6] : memref<18x18x128xf32, #tpu.memory_space<vmem>>, vector<16x1x128xf32>
    tpu.vector_store %arg7[%c1, %c0_5, %c0_6], %3 {strides = array<i32>} : memref<18x18x128xf32, #tpu.memory_space<vmem>>, vector<16x1x128xf32>,
    %c1_7 = arith.constant 1 : index
    %c17_8 = arith.constant 17 : index
    %c0_9 = arith.constant 0 : index
    %5 = vector.load %arg7[%c1_7, %c17_8, %c0_9] : memref<18x18x128xf32, #tpu.memory_space<vmem>>, vector<16x1x128xf32>
    tpu.vector_store %arg7[%c1_7, %c17_8, %c0_9], %3 {strides = array<i32>} : memref<18x18x128xf32, #tpu.memory_space<vmem>>, vector<16x1x128xf32>,
    %c0_10 = arith.constant 0 : index
    %c0_11 = arith.constant 0 : index
    %c0_12 = arith.constant 0 : index
    %c0_13 = arith.constant 0 : index
    %6 = vector.load %arg1[%c0_10, %c0_11, %c0_12, %c0_13] : memref<1x16x16x128xf32, #tpu.memory_space<vmem>>, vector<1x16x16x128xf32>
    %7 = vector.shape_cast %6 : vector<1x16x16x128xf32> to vector<16x16x128xf32>
    %c1_14 = arith.constant 1 : index
    %c1_15 = arith.constant 1 : index
    %c0_16 = arith.constant 0 : index
    %8 = vector.load %arg7[%c1_14, %c1_15, %c0_16] : memref<18x18x128xf32, #tpu.memory_space<vmem>>, vector<16x16x128xf32>
    tpu.vector_store %arg7[%c1_14, %c1_15, %c0_16], %7 {strides = array<i32>} : memref<18x18x128xf32, #tpu.memory_space<vmem>>, vector<16x16x128xf32>,
    %c0_17 = arith.constant 0 : index
    %c0_18 = arith.constant 0 : index
    %c0_19 = arith.constant 0 : index
    %9 = vector.load %arg7[%c0_17, %c0_18, %c0_19] : memref<18x18x128xf32, #tpu.memory_space<vmem>>, vector<18x18x128xf32>
    %10 = vector.extract_strided_slice %9 {offsets = [0, 0, 0], sizes = [18, 16, 128], strides = [1, 1, 1]} : vector<18x18x128xf32> to vector<18x16x128xf32>
    %11 = vector.extract_strided_slice %9 {offsets = [0, 1, 0], sizes = [18, 16, 128], strides = [1, 1, 1]} : vector<18x18x128xf32> to vector<18x16x128xf32>
    %12 = vector.extract_strided_slice %9 {offsets = [0, 2, 0], sizes = [18, 16, 128], strides = [1, 1, 1]} : vector<18x18x128xf32> to vector<18x16x128xf32>
    %13 = tpu.concatenate %10, %11, %12 in 2 : vector<18x16x128xf32>, vector<18x16x128xf32>, vector<18x16x128xf32> -> vector<18x16x384xf32>
    %14 = arith.truncf %13 : vector<18x16x384xf32> to vector<18x16x384xbf16>
    %c0_20 = arith.constant 0 : index
    %c0_21 = arith.constant 0 : index
    %15 = vector.load %arg3[%c0_20, %c0_21] : memref<1x128xf32, #tpu.memory_space<vmem>>, vector<1x128xf32>
    %16 = vector.extract_strided_slice %14 {offsets = [0, 0, 0], sizes = [16, 16, 384], strides = [1, 1, 1]} : vector<18x16x384xbf16> to vector<16x16x384xbf16>
    %17 = vector.shape_cast %16 : vector<16x16x384xbf16> to vector<256x384xbf16>
    %c0_22 = arith.constant 0 : index
    %c0_23 = arith.constant 0 : index
    %c0_24 = arith.constant 0 : index
    %18 = vector.load %arg2[%c0_22, %c0_23, %c0_24] : memref<3x384x128xbf16, #tpu.memory_space<vmem>>, vector<1x384x128xbf16>
    %19 = vector.shape_cast %18 : vector<1x384x128xbf16> to vector<384x128xbf16>
    %cst_25 = arith.constant dense<0.000000e+00> : vector<256x128xf32>
    %20 = tpu.matmul %17, %19, %cst_25 {dimension_numbers = #tpu.dot_dimension_numbers<[1], [0], [0], [1], [0, 0, 1, 1], [], []>} : vector<256x384xbf16>, vector<384x128xbf16>, vector<256x128xf32> -> vector<256x128xf32>
    %21 = vector.broadcast %15 : vector<1x128xf32> to vector<256x128xf32>
    %22 = arith.addf %21, %20 : vector<256x128xf32>
    %23 = vector.extract_strided_slice %14 {offsets = [1, 0, 0], sizes = [16, 16, 384], strides = [1, 1, 1]} : vector<18x16x384xbf16> to vector<16x16x384xbf16>
    %24 = vector.shape_cast %23 : vector<16x16x384xbf16> to vector<256x384xbf16>
    %c1_26 = arith.constant 1 : index
    %c0_27 = arith.constant 0 : index
    %c0_28 = arith.constant 0 : index
    %25 = vector.load %arg2[%c1_26, %c0_27, %c0_28] : memref<3x384x128xbf16, #tpu.memory_space<vmem>>, vector<1x384x128xbf16>
    %26 = vector.shape_cast %25 : vector<1x384x128xbf16> to vector<384x128xbf16>
    %cst_29 = arith.constant dense<0.000000e+00> : vector<256x128xf32>
    %27 = tpu.matmul %24, %26, %cst_29 {dimension_numbers = #tpu.dot_dimension_numbers<[1], [0], [0], [1], [0, 0, 1, 1], [], []>} : vector<256x384xbf16>, vector<384x128xbf16>, vector<256x128xf32> -> vector<256x128xf32>
    %28 = arith.addf %22, %27 : vector<256x128xf32>
    %29 = vector.extract_strided_slice %14 {offsets = [2, 0, 0], sizes = [16, 16, 384], strides = [1, 1, 1]} : vector<18x16x384xbf16> to vector<16x16x384xbf16>
    %30 = vector.shape_cast %29 : vector<16x16x384xbf16> to vector<256x384xbf16>
    %c2 = arith.constant 2 : index
    %c0_30 = arith.constant 0 : index
    %c0_31 = arith.constant 0 : index
    %31 = vector.load %arg2[%c2, %c0_30, %c0_31] : memref<3x384x128xbf16, #tpu.memory_space<vmem>>, vector<1x384x128xbf16>
    %32 = vector.shape_cast %31 : vector<1x384x128xbf16> to vector<384x128xbf16>
    %cst_32 = arith.constant dense<0.000000e+00> : vector<256x128xf32>
    %33 = tpu.matmul %30, %32, %cst_32 {dimension_numbers = #tpu.dot_dimension_numbers<[1], [0], [0], [1], [0, 0, 1, 1], [], []>} : vector<256x384xbf16>, vector<384x128xbf16>, vector<256x128xf32> -> vector<256x128xf32>
    %34 = arith.addf %28, %33 : vector<256x128xf32>
    %35 = vector.shape_cast %34 : vector<256x128xf32> to vector<16x16x128xf32>
    %cst_33 = arith.constant 0.000000e+00 : f32
    %36 = vector.broadcast %cst_33 : f32 to vector<16x16x128xf32>
    %37 = arith.maximumf %35, %36 : vector<16x16x128xf32>
    %c1_34 = arith.constant 1 : index
    %c1_35 = arith.constant 1 : index
    %c0_36 = arith.constant 0 : index
    %38 = vector.load %arg7[%c1_34, %c1_35, %c0_36] : memref<18x18x128xf32, #tpu.memory_space<vmem>>, vector<16x16x128xf32>
    tpu.vector_store %arg7[%c1_34, %c1_35, %c0_36], %37 {strides = array<i32>} : memref<18x18x128xf32, #tpu.memory_space<vmem>>, vector<16x16x128xf32>,
    %c0_37 = arith.constant 0 : index
    %c0_38 = arith.constant 0 : index
    %c0_39 = arith.constant 0 : index
    %39 = vector.load %arg7[%c0_37, %c0_38, %c0_39] : memref<18x18x128xf32, #tpu.memory_space<vmem>>, vector<18x18x128xf32>
    %40 = vector.extract_strided_slice %39 {offsets = [0, 0, 0], sizes = [18, 16, 128], strides = [1, 1, 1]} : vector<18x18x128xf32> to vector<18x16x128xf32>
    %41 = vector.extract_strided_slice %39 {offsets = [0, 1, 0], sizes = [18, 16, 128], strides = [1, 1, 1]} : vector<18x18x128xf32> to vector<18x16x128xf32>
    %42 = vector.extract_strided_slice %39 {offsets = [0, 2, 0], sizes = [18, 16, 128], strides = [1, 1, 1]} : vector<18x18x128xf32> to vector<18x16x128xf32>
    %43 = tpu.concatenate %40, %41, %42 in 2 : vector<18x16x128xf32>, vector<18x16x128xf32>, vector<18x16x128xf32> -> vector<18x16x384xf32>
    %44 = arith.truncf %43 : vector<18x16x384xf32> to vector<18x16x384xbf16>
    %c0_40 = arith.constant 0 : index
    %c0_41 = arith.constant 0 : index
    %45 = vector.load %arg5[%c0_40, %c0_41] : memref<1x128xf32, #tpu.memory_space<vmem>>, vector<1x128xf32>
    %46 = vector.extract_strided_slice %44 {offsets = [0, 0, 0], sizes = [16, 16, 384], strides = [1, 1, 1]} : vector<18x16x384xbf16> to vector<16x16x384xbf16>
    %47 = vector.shape_cast %46 : vector<16x16x384xbf16> to vector<256x384xbf16>
    %c0_42 = arith.constant 0 : index
    %c0_43 = arith.constant 0 : index
    %c0_44 = arith.constant 0 : index
    %48 = vector.load %arg4[%c0_42, %c0_43, %c0_44] : memref<3x384x128xbf16, #tpu.memory_space<vmem>>, vector<1x384x128xbf16>
    %49 = vector.shape_cast %48 : vector<1x384x128xbf16> to vector<384x128xbf16>
    %cst_45 = arith.constant dense<0.000000e+00> : vector<256x128xf32>
    %50 = tpu.matmul %47, %49, %cst_45 {dimension_numbers = #tpu.dot_dimension_numbers<[1], [0], [0], [1], [0, 0, 1, 1], [], []>} : vector<256x384xbf16>, vector<384x128xbf16>, vector<256x128xf32> -> vector<256x128xf32>
    %51 = vector.broadcast %45 : vector<1x128xf32> to vector<256x128xf32>
    %52 = arith.addf %51, %50 : vector<256x128xf32>
    %53 = vector.extract_strided_slice %44 {offsets = [1, 0, 0], sizes = [16, 16, 384], strides = [1, 1, 1]} : vector<18x16x384xbf16> to vector<16x16x384xbf16>
    %54 = vector.shape_cast %53 : vector<16x16x384xbf16> to vector<256x384xbf16>
    %c1_46 = arith.constant 1 : index
    %c0_47 = arith.constant 0 : index
    %c0_48 = arith.constant 0 : index
    %55 = vector.load %arg4[%c1_46, %c0_47, %c0_48] : memref<3x384x128xbf16, #tpu.memory_space<vmem>>, vector<1x384x128xbf16>
    %56 = vector.shape_cast %55 : vector<1x384x128xbf16> to vector<384x128xbf16>
    %cst_49 = arith.constant dense<0.000000e+00> : vector<256x128xf32>
    %57 = tpu.matmul %54, %56, %cst_49 {dimension_numbers = #tpu.dot_dimension_numbers<[1], [0], [0], [1], [0, 0, 1, 1], [], []>} : vector<256x384xbf16>, vector<384x128xbf16>, vector<256x128xf32> -> vector<256x128xf32>
    %58 = arith.addf %52, %57 : vector<256x128xf32>
    %59 = vector.extract_strided_slice %44 {offsets = [2, 0, 0], sizes = [16, 16, 384], strides = [1, 1, 1]} : vector<18x16x384xbf16> to vector<16x16x384xbf16>
    %60 = vector.shape_cast %59 : vector<16x16x384xbf16> to vector<256x384xbf16>
    %c2_50 = arith.constant 2 : index
    %c0_51 = arith.constant 0 : index
    %c0_52 = arith.constant 0 : index
    %61 = vector.load %arg4[%c2_50, %c0_51, %c0_52] : memref<3x384x128xbf16, #tpu.memory_space<vmem>>, vector<1x384x128xbf16>
    %62 = vector.shape_cast %61 : vector<1x384x128xbf16> to vector<384x128xbf16>
    %cst_53 = arith.constant dense<0.000000e+00> : vector<256x128xf32>
    %63 = tpu.matmul %60, %62, %cst_53 {dimension_numbers = #tpu.dot_dimension_numbers<[1], [0], [0], [1], [0, 0, 1, 1], [], []>} : vector<256x384xbf16>, vector<384x128xbf16>, vector<256x128xf32> -> vector<256x128xf32>
    %64 = arith.addf %58, %63 : vector<256x128xf32>
    %65 = vector.shape_cast %64 : vector<256x128xf32> to vector<16x16x128xf32>
    %66 = arith.addf %7, %65 : vector<16x16x128xf32>
    %c0_54 = arith.constant 0 : index
    %c0_55 = arith.constant 0 : index
    %c0_56 = arith.constant 0 : index
    %c0_57 = arith.constant 0 : index
    %67 = vector.load %arg6[%c0_54, %c0_55, %c0_56, %c0_57] : memref<1x16x16x128xf32, #tpu.memory_space<vmem>>, vector<1x16x16x128xf32>
    %68 = vector.shape_cast %67 : vector<1x16x16x128xf32> to vector<16x16x128xf32>
    %69 = vector.shape_cast %66 : vector<16x16x128xf32> to vector<1x16x16x128xf32>
    tpu.vector_store %arg6[%c0_54, %c0_55, %c0_56, %c0_57], %69 {strides = array<i32>} : memref<1x16x16x128xf32, #tpu.memory_space<vmem>>, vector<1x16x16x128xf32>,
    return
  }
  func.func @transform_0(%arg0: i32) -> (i32, i32, i32, i32) {
    %c0_i32 = arith.constant 0 : i32
    %c0_i32_0 = arith.constant 0 : i32
    %c0_i32_1 = arith.constant 0 : i32
    %c0_i32_2 = arith.constant 0 : i32
    return %arg0, %c0_i32, %c0_i32_0, %c0_i32_1 : i32, i32, i32, i32
  }
  func.func @transform_1(%arg0: i32) -> (i32, i32, i32) {
    %c0_i32 = arith.constant 0 : i32
    %c0_i32_0 = arith.constant 0 : i32
    %c0_i32_1 = arith.constant 0 : i32
    %c0_i32_2 = arith.constant 0 : i32
    return %c0_i32, %c0_i32_0, %c0_i32_1 : i32, i32, i32
  }
  func.func @transform_2(%arg0: i32) -> (i32, i32) {
    %c0_i32 = arith.constant 0 : i32
    %c0_i32_0 = arith.constant 0 : i32
    %c0_i32_1 = arith.constant 0 : i32
    return %c0_i32, %c0_i32_0 : i32, i32
  }
  func.func @transform_3(%arg0: i32) -> (i32, i32, i32) {
    %c0_i32 = arith.constant 0 : i32
    %c0_i32_0 = arith.constant 0 : i32
    %c0_i32_1 = arith.constant 0 : i32
    %c0_i32_2 = arith.constant 0 : i32
    return %c0_i32, %c0_i32_0, %c0_i32_1 : i32, i32, i32
  }
  func.func @transform_4(%arg0: i32) -> (i32, i32) {
    %c0_i32 = arith.constant 0 : i32
    %c0_i32_0 = arith.constant 0 : i32
    %c0_i32_1 = arith.constant 0 : i32
    return %c0_i32, %c0_i32_0 : i32, i32
  }
  func.func @transform_5(%arg0: i32) -> (i32, i32, i32, i32) {
    %c0_i32 = arith.constant 0 : i32
    %c0_i32_0 = arith.constant 0 : i32
    %c0_i32_1 = arith.constant 0 : i32
    %c0_i32_2 = arith.constant 0 : i32
    return %arg0, %c0_i32, %c0_i32_0, %c0_i32_1 : i32, i32, i32, i32
  }
}

</mosaic_0001>

<bundles_post_ra>
// kernel: tpu_custom_call.1
= control target key start
LH: loop header
LB: loop body
LE: loop exit
PB: predicated region body
PF: predicated region fallthrough
CT: control target
= control target key end

     0   :  { %10 = vsyncpa [#allocation4], 0  ;;  %s8163_s0 = inlined_call_operand.hbm [shape: f32[2,16,16,128], index: 0, kind: input, shape index: {}]   ;;  %s8164_s1 = inlined_call_operand.hbm [shape: bf16[3,384,128], index: 1, kind: input, shape index: {}]   ;;  %s8165_s2 = inlined_call_operand.vmem [shape: f32[1,128], index: 2, kind: input, shape index: {}]   ;;  %s8166_s3 = inlined_call_operand.hbm [shape: bf16[3,384,128], index: 3, kind: input, shape index: {}]   ;;  %s8167_s4 = inlined_call_operand.vmem [shape: f32[1,128], index: 4, kind: input, shape index: {}]   ;;  %s8168_s5 = inlined_call_operand.hbm [shape: f32[2,16,16,128], index: 5, kind: output, shape index: {}]  }
   0x1   :  { %12 = vsyncpa [#allocation4 + $0x1], 0 }
   0x2   :  { %13 = vsyncpa [#allocation7], 0 }
   0x3   :  { %14 = vsyncpa [#allocation5], 0 }
   0x4   :  { %16 = vsyncpa [#allocation5 + $0x1], 0  ;;  %s6066_s18 = smov 0   ;;  %s6068_s19 = smov 0  }
   0x5   :  { %s6070_s20 = smov 0   ;;  %s6072_s21 = smov 0  }
   0x6 LB: > { %s6087_s22 = sadd.s32 4294967295, %s6025_s21   ;;  %s5018_s23 = sadd.s32 4294967294, %s6025_s21   ;;  %s6025_s21 = sphi %s6072_s21, %s8614_s21   ;;  %s6021_s20 = sphi %s6070_s20, %s8613_s20   ;;  %s6017_s19 = sphi %s6068_s19, %s8612_s19   ;;  %s6013_s18 = sphi %s6066_s18, %s8611_s18  }
   0x7   : > { %p42_p0 = scmp.ne.s32.totalorder %s6017_s19, %s6013_s18  ;;  %p43_p1 = scmp.eq.s32.totalorder %s6087_s22, 0 }
   0x8   : > { %p150_p2 = scmp.eq.s32.totalorder %s6087_s22, 1  ;;  %p156_p3 = scmp.eq.s32.totalorder %s5018_s23, 1 }
   0x9   : > { %p6096_p4 = por %p43_p1, %p42_p0  ;;  %p5019_p5 = scmp.ge.s32.totalorder %s6025_s21, 1 }
   0xa   : > { %p6101_p6 = por %p156_p3, %p42_p0  ;;  %p163_p7 = scmp.lt.s32.totalorder %s6025_s21, 3 }
   0xb   : > { %s174_s28 = sshll.u32 %s8164_s1, 4  ;;  %s6027_s30 = smov [#allocation6]   ;;  %s175_s28 = int_to_ptr.hbm [resolvable:$true] %s174_s28 }
   0xc   : > { %p6109_p8 = pnand %p5019_p5, %p163_p7  ;;  %s176_s6 = sshll.u32 %s6027_s30, 4  ;;  %s177_s6 = int_to_ptr.vmem [resolvable:$true] %s176_s6 }
   0xd   : > { %s191_s9 = sshll.u32 %s8166_s3, 4  ;;  %s6028_s10 = smov 64   ;;  %s192_s9 = int_to_ptr.hbm [resolvable:$true] %s191_s9 }
   0xe   : > { %p5786_p9 = pneg %p6109_p8  ;;  %s6029_s11 = smov 4  }
   0xf   : > { %s6030_s12 = smov [#allocation8]   ;;  %s6122_s14 = sadd.s32 1, %s6025_s21  }
  0x10   : > { %p5787_p10 = pnand %p5786_p9, %p43_p1  ;;  %s193_s13 = sshll.u32 %s6030_s12, 4  ;;  %s194_s13 = int_to_ptr.vmem [resolvable:$true] %s193_s13 }
  0x11   : > { %s29_s15 = sadd.s32 1, %s6021_s20  ;;  %s26_s16 = ssub.s32 %s6025_s21, %s6122_s14 }
  0x12   : > { %5789 = dma.hbm_to_vmem [thread:$0]  (!%p5787_p10), %s175_s28, 9216, %s177_s6, [#allocation7], %s6028_s10, %s6028_s10, %s6029_s11  }
  0x13   : > { %5792 = dma.hbm_to_vmem [thread:$0]  (!%p5787_p10), %s192_s9, 9216, %s194_s13, [#allocation7], %s6028_s10, %s6028_s10, %s6029_s11  }
  0x14   : > { %p36_p12 = scmp.ne.s32.totalorder %s6021_s20, %s6017_s19  ;;  %p27_p13 = scmp.eq.s32.totalorder %s26_s16, 0 }
  0x15   : > { %p37_p0 = scmp.eq.s32.totalorder %s6025_s21, 0  ;;  %p5803_p5 = scmp.lt.s32.totalorder %s6025_s21, 2 }
  0x16   : > { %p6132_p3 = por %p150_p2, %p36_p12  ;;  %s210_s26 = sand.u32 1, %s6021_s20  }
  0x17   : > { %s6138_s23 = scalar_select %p27_p13, %s6021_s20, %s29_s15  }
  0x18   : > { %p38_p7 = por %p37_p0, %p36_p12  ;;  %s5023_s27 = sshll.u32 %s210_s26, 8 }
  0x19   : > { %s5612_s28 = sshll.u32 %s6025_s21, 8  ;;  %s214_s8 = scalar_lea.vmem [#allocation3], %s5023_s27 }
  0x1a   : > { %s219_s7 = scalar_lea.hbm %s8163_s0, %s5612_s28  ;;  %s222_s9 = sshll.u32 %s214_s8, 4  ;;  %s223_s9 = int_to_ptr.vmem [resolvable:$true] %s222_s9 }
  0x1b   : > { %s220_s10 = sshll.u32 %s219_s7, 4  ;;  %p6145_p2 = pnand %p5803_p5, %p38_p7  ;;  %s221_s10 = int_to_ptr.hbm [resolvable:$true] %s220_s10 }
  0x1c   : > { %s211_s12 = scalar_lea.sflag [#allocation4], %s210_s26  ;;  %s5925_s13 = sshra.s32 %s221_s10, 4  ;;  %s5926_s13 = int_to_ptr.hbm [resolvable:$true] %s5925_s13 }
  0x1d   : > { %s5927_s15 = scalar_lea.hbm %s5926_s13, 256  ;;  %p5929_p10 = pneg %p6145_p2 }
  0x1e   : > { %p5928_p9 = scmp.ne.s32.totalorder %s5926_s13, %s5927_s15  ;;  %s5932_s28 = scalar_lea.hbm %s8163_s0, 512 }
  0x1f   : > { %p5933_p0 = scmp.lt.s32.totalorder %s5926_s13, %s8163_s0  ;;  %p5934_p5 = scmp.lt.s32.totalorder %s5932_s28, %s5927_s15 }
  0x20   : > { %p5930_p12 = pnand %p5929_p10, %p5928_p9 }
  0x21   : > { %p5935_p7 = por %p5934_p5, %p5933_p0 }
  0x22   : > { %p5931_p13 = pneg %p5930_p12 }
  0x24   : > { %p5936_p11 = pnand %p5935_p7, %p5931_p13 }
  0x26   : > { %5939 = shalt.err (!%p5936_p11)
}
  0x27   : > { %s6031_s26 = smov 128   ;;  %s6032_s7 = smov 8  }
  0x28   : > { %5796 = dma.hbm_to_vmem [thread:$0]  (!%p6145_p2), %s221_s10, 4096, %s223_s9, %s211_s12, %s6031_s26, %s6031_s26, %s6032_s7  }
  0x29   : > { %234 = sbr.rel (%p6109_p8) target bundleno = 1539 (0x603), region = 40 }
  0x2e   : > { %s6162_s8 = sand.u32 1, %s6017_s19  }
  0x2f   : > { %s5027_s13 = sshll.u32 %s6162_s8, 8  ;;  %s237_s15 = scalar_lea.sflag [#allocation4], %s6162_s8 }
  0x30   : > { %s6168_s16 = scalar_lea.vmem [#allocation3], %s5027_s13 }
  0x31   : > { %6000 = dma.done.wait (%p6096_p4), %s237_s15, 4096  }
  0x32   : > { %6002 = vsyncadd (%p6096_p4), %s237_s15, 4294963200 }
  0x33   : > { %6004 = dma.done.wait (%p43_p1), [#allocation7], 18432  }
  0x34   : > { %6006 = vsyncadd (%p43_p1), [#allocation7], 4294948864  ;;  %v6033_v0 = vmov 0.0   ;;  %v5620_v1 = vld [vmem:[#allocation6 + $0x38] sm:$0xff]  ;;  %v5619_v3 = vld [vmem:[#allocation6 + $0x30] sm:$0xff]  ;;  %vm490_vm0 = vcmask 1046528  }
  0x35   : > { %278 = vst [vmem:[#allocation2] sm:$0xff] %v6033_v0  ;;  %v5628_v2 = vld [vmem:[#allocation6 + $0x78] sm:$0xff]  ;;  %1265 = vmatpush.bf16.msra.mxu0 %v5620_v1  ;;  %5758 = vmatpush.bf16.msra.mxu2 %v5620_v1  ;;  %v5627_v4 = vld [vmem:[#allocation6 + $0x70] sm:$0xff]  ;;  %v5618_v5 = vld [vmem:[#allocation6 + $0x28] sm:$0xff]  ;;  %v491_v11 = vrot.slane %v6033_v0, 1  ;;  %vm617_vm1 = vcmask 1045504  }
  0x36   : > { %280 = vst [vmem:[#allocation2 + $0x10] sm:$0x3] %v6033_v0  ;;  %1354 = vmatpush.bf16.msra.mxu1 %v5628_v2  ;;  %5766 = vmatpush.bf16.msra.mxu3 %v5628_v2  ;;  %v5626_v6 = vld [vmem:[#allocation6 + $0x68] sm:$0xff]  ;;  %v5617_v7 = vld [vmem:[#allocation6 + $0x20] sm:$0xff]  ;;  %v5616_v10 = vld [vmem:[#allocation6 + $0x18] sm:$0xff]  ;;  %s7886_s11 = scalar_lea.vmem [#allocation9], %s5027_s13 }
  0x37   : > { %284 = vst [vmem:[#allocation2 + $0x1a8] sm:$0x3] %v6033_v0  ;;  %v5625_v8 = vld [vmem:[#allocation6 + $0x60] sm:$0xff]  ;;  %v5624_v13 = vld [vmem:[#allocation6 + $0x58] sm:$0xff]  ;;  %v5615_v14 = vld [vmem:[#allocation6 + $0x10] sm:$0xff]  ;;  %v744_v17 = vpack.c.bf16 %v491_v11, %v6033_v0  ;;  %s5757_s12 = sshll.u32 %s6087_s22, 8 }
  0x38   : > { %286 = vst [vmem:[#allocation2 + $0x18] sm:$0x1] %v6033_v0  ;;  %v5623_v16 = vld [vmem:[#allocation6 + $0x50] sm:$0xff]  ;;  %v5614_v19 = vld [vmem:[#allocation6 + $0x8] sm:$0xff]  ;;  %v5613_v23 = vld [vmem:[#allocation6] sm:$0xff]  ;;  %s4922_s30 = scalar_lea.hbm %s8168_s5, %s5757_s12  ;;  %s4923_s6 = sshll.u32 %s7886_s11, 4  ;;  %s4924_s6 = int_to_ptr.vmem [resolvable:$true] %s4923_s6 }
  0x39   : > { %287 = vst [vmem:[#allocation2 + $0x30] sm:$0x1] %v6033_v0  ;;  %1266 = vmatpush.bf16.msra.mxu0 %v5619_v3  ;;  %5759 = vmatpush.bf16.msra.mxu2 %v5619_v3  ;;  %v5622_v20 = vld [vmem:[#allocation6 + $0x48] sm:$0xff]  ;;  %v929_v21 = vunpack.c.l.b16 %v744_v17  ;;  %v930_v24 = vunpack.c.h.b16 %v744_v17  ;;  %v5621_v26 = vld [vmem:[#allocation6 + $0x40] sm:$0xff]  ;;  %v5636_v27 = vld [vmem:[#allocation6 + $0xb8] sm:$0xff]  ;;  %s4925_s26 = sshll.u32 %s4922_s30, 4  ;;  %s4926_s26 = int_to_ptr.hbm [resolvable:$true] %s4925_s26 }
  0x3a   : > { %288 = vst [vmem:[#allocation2 + $0x48] sm:$0x1] %v6033_v0  ;;  %1355 = vmatpush.bf16.msra.mxu1 %v5627_v4  ;;  %5767 = vmatpush.bf16.msra.mxu3 %v5627_v4  ;;  %v5644_v28 = vld [vmem:[#allocation6 + $0xf8] sm:$0xff]  ;;  %v6219_v30 = vld [vmem:[%s6168_s16 + $0x70] sm:$0xff]  ;;  %v6227_v34 = vld [vmem:[%s6168_s16] sm:$0xff]  ;;  %s4911_s22 = scalar_lea.sflag [#allocation5], %s6162_s8 }
  0x3b   : > { %289 = vst [vmem:[#allocation2 + $0x60] sm:$0x1] %v6033_v0  ;;  %v6223_v31 = vld [vmem:[%s6168_s16 + $0x78] sm:$0xff]  ;;  %v6231_v35 = vld [vmem:[%s6168_s16 + $0x8] sm:$0xff]  ;;  %v6235_v36 = vld [vmem:[%s6168_s16 + $0x80] sm:$0xff]  ;;  %s5969_s7 = sshra.s32 %s4926_s26, 4  ;;  %s5970_s7 = int_to_ptr.hbm [resolvable:$true] %s5969_s7 }
  0x3c   : > { %290 = vst [vmem:[#allocation2 + $0x78] sm:$0x1] %v6033_v0  ;;  %v5652_v33 = vld [vmem:[#allocation6 + $0x138] sm:$0xff]  ;;  %v6238_v37 = vld [vmem:[%s6168_s16 + $0x88] sm:$0xff]  ;;  %v5635_v38 = vld [vmem:[#allocation6 + $0xb0] sm:$0xff]  ;;  %s5971_s13 = scalar_lea.hbm %s5970_s7, 256  ;;  %p5976_p11 = scmp.lt.s32.totalorder %s5970_s7, %s8168_s5 }
  0x3d   : > { %291 = vst [vmem:[#allocation2 + $0x90] sm:$0x1] %v6033_v0  ;;  %1267 = vmatpush.bf16.msra.mxu0 %v5618_v5  ;;  %5760 = vmatpush.bf16.msra.mxu2 %v5618_v5  ;;  %v6192_v9 = vld [vmem:[#allocation2 + $0x10] sm:$0x3]  ;;  %v5643_v39 = vld [vmem:[#allocation6 + $0xf0] sm:$0xff]  ;;  %v6247_v42 = vld [vmem:[%s6168_s16 + $0x18] sm:$0xff]  ;;  %p5972_p1 = scmp.ne.s32.totalorder %s5970_s7, %s5971_s13 }
  0x3e   : > { %292 = vst [vmem:[#allocation2 + $0xa8] sm:$0x1] %v6033_v0  ;;  %1356 = vmatpush.bf16.msra.mxu1 %v5626_v6  ;;  %5768 = vmatpush.bf16.msra.mxu3 %v5626_v6  ;;  %v494_v12 = vrot.slane %v6192_v9, 1  ;;  %v5651_v40 = vld [vmem:[#allocation6 + $0x130] sm:$0xff]  ;;  %v6255_v44 = vld [vmem:[%s6168_s16 + $0x98] sm:$0xff]  ;;  %v6286_v17 = vld [vmem:[%s6168_s16 + $0x20] sm:$0xff] }
  0x3f   : > { %293 = vst [vmem:[#allocation2 + $0xc0] sm:$0x1] %v6033_v0  ;;  %v6243_v41 = vld [vmem:[%s6168_s16 + $0x10] sm:$0xff]  ;;  %p5973_p4 = pnand %p5972_p1, %p6132_p3  ;;  %s5975_s24 = scalar_lea.hbm %s8168_s5, 512 }
  0x40   : > { %294 = vst [vmem:[#allocation2 + $0xd8] sm:$0x1] %v6033_v0  ;;  %v495_v15 = vsel %vm490_vm0, %v491_v11, %v494_v12  ;;  %v6251_v43 = vld [vmem:[%s6168_s16 + $0x90] sm:$0xff]  ;;  %p5977_p2 = scmp.lt.s32.totalorder %s5975_s24, %s5971_s13 }
  0x41   : > { %295 = vst [vmem:[#allocation2 + $0xf0] sm:$0x1] %v6033_v0  ;;  %1268 = vmatpush.bf16.msra.mxu0 %v5617_v7  ;;  %5761 = vmatpush.bf16.msra.mxu2 %v5617_v7  ;;  %v746_v18 = vpack.c.bf16 %v495_v15, %v6033_v0  ;;  %p5974_p8 = pneg %p5973_p4 }
  0x42   : > { %296 = vst [vmem:[#allocation2 + $0x108] sm:$0x1] %v6033_v0  ;;  %1357 = vmatpush.bf16.msra.mxu1 %v5625_v8  ;;  %5769 = vmatpush.bf16.msra.mxu3 %v5625_v8  ;;  %p5978_p9 = por %p5977_p2, %p5976_p11 }
  0x43   : > { %297 = vst [vmem:[#allocation2 + $0x120] sm:$0x1] %v6033_v0  ;;  %v932_v22 = vunpack.c.l.b16 %v746_v18  ;;  %v933_v25 = vunpack.c.h.b16 %v746_v18 }
  0x44   : > { %298 = vst [vmem:[#allocation2 + $0x138] sm:$0x1] %v6033_v0  ;;  %p5979_p10 = pnand %p5978_p9, %p5974_p8 }
  0x45   : > { %299 = vst [vmem:[#allocation2 + $0x150] sm:$0x1] %v6033_v0  ;;  %1269 = vmatpush.bf16.msra.mxu0 %v5616_v10  ;;  %5762 = vmatpush.bf16.msra.mxu2 %v5616_v10  ;;  %v1025_v29 = vpack.c.b16 %v932_v22, %v929_v21  ;;  %v1026_v32 = vpack.c.b16 %v933_v25, %v930_v24  ;;  %v6289_v22 = vld [vmem:[%s6168_s16 + $0x28] sm:$0xff] }
  0x46   : > { %300 = vst [vmem:[#allocation2 + $0x168] sm:$0x1] %v6033_v0  ;;  %1358 = vmatpush.bf16.msra.mxu1 %v5624_v13  ;;  %5770 = vmatpush.bf16.msra.mxu3 %v5624_v13  ;;  %v6296_v24 = vld [vmem:[%s6168_s16 + $0xa8] sm:$0xff] }
  0x47   : > { %301 = vst [vmem:[#allocation2 + $0x180] sm:$0x1] %v6033_v0 }
  0x48   : > { %302 = vst [vmem:[#allocation2 + $0x29] sm:$0x1] %v6033_v0 }
  0x49   : > { %303 = vst [vmem:[#allocation2 + $0x41] sm:$0x1] %v6033_v0  ;;  %1270 = vmatpush.bf16.msra.mxu0 %v5615_v14  ;;  %5763 = vmatpush.bf16.msra.mxu2 %v5615_v14 }
  0x4a   : > { %304 = vst [vmem:[#allocation2 + $0x59] sm:$0x1] %v6033_v0  ;;  %1359 = vmatpush.bf16.msra.mxu1 %v5623_v16  ;;  %5771 = vmatpush.bf16.msra.mxu3 %v5623_v16 }
  0x4b   : > { %305 = vst [vmem:[#allocation2 + $0x71] sm:$0x1] %v6033_v0 }
  0x4c   : > { %306 = vst [vmem:[#allocation2 + $0x89] sm:$0x1] %v6033_v0 }
  0x4d   : > { %307 = vst [vmem:[#allocation2 + $0xa1] sm:$0x1] %v6033_v0  ;;  %1271 = vmatpush.bf16.msra.mxu0 %v5614_v19  ;;  %5764 = vmatpush.bf16.msra.mxu2 %v5614_v19 }
  0x4e   : > { %308 = vst [vmem:[#allocation2 + $0xb9] sm:$0x1] %v6033_v0  ;;  %1360 = vmatpush.bf16.msra.mxu1 %v5622_v20  ;;  %5772 = vmatpush.bf16.msra.mxu3 %v5622_v20 }
  0x4f   : > { %309 = vst [vmem:[#allocation2 + $0xd1] sm:$0x1] %v6033_v0 }
  0x50   : > { %310 = vst [vmem:[#allocation2 + $0xe9] sm:$0x1] %v6033_v0 }
  0x51   : > { %311 = vst [vmem:[#allocation2 + $0x101] sm:$0x1] %v6033_v0  ;;  %1272 = vmatpush.bf16.msra.mxu0 %v5613_v23  ;;  %5765 = vmatpush.bf16.msra.mxu2 %v5613_v23  ;;  %v6293_v23 = vld [vmem:[%s6168_s16 + $0xa0] sm:$0xff] }
  0x52   : > { %312 = vst [vmem:[#allocation2 + $0x119] sm:$0x1] %v6033_v0  ;;  %1361 = vmatpush.bf16.msra.mxu1 %v5621_v26  ;;  %5773 = vmatpush.bf16.msra.mxu3 %v5621_v26 }
  0x53   : > { %313 = vst [vmem:[#allocation2 + $0x131] sm:$0x1] %v6033_v0 }
  0x54   : > { %314 = vst [vmem:[#allocation2 + $0x149] sm:$0x1] %v6033_v0  ;;  %1273 = vmatmul.bf16.vlgmr.msra.gmra.mxu0 %v1025_v29  ;;  %v5650_v29 = vld [vmem:[#allocation6 + $0x128] sm:$0xff] }
  0x55   : > { %315 = vst [vmem:[#allocation2 + $0x161] sm:$0x1] %v6033_v0  ;;  %1443 = vmatpush.bf16.msrb.mxu2 %v5636_v27  ;;  %1362 = vmatmul.bf16.vlgmr.msra.gmra.mxu1 %v1026_v32  ;;  %v5634_v27 = vld [vmem:[#allocation6 + $0xa8] sm:$0xff] }
  0x56   : > { %8276 = vst [vmem:[#allocation13_spill] sm:$0xff] %v6219_v30  ;;  %1776 = vmatpush.bf16.msrb.mxu3 %v5644_v28  ;;  %1865 = vmatpush.bf16.msrb.mxu0 %v5652_v33  ;;  %v5642_v28 = vld [vmem:[#allocation6 + $0xe8] sm:$0xff] }
  0x57   : > { %316 = vst [vmem:[#allocation2 + $0x179] sm:$0x1] %v6033_v0 }
  0x58   : > { %8277 = vst [vmem:[#allocation14_spill] sm:$0xff] %v6223_v31 }
  0x59   : > { %317 = vst [vmem:[#allocation2 + $0x191] sm:$0x1] %v6033_v0  ;;  %1444 = vmatpush.bf16.msrb.mxu2 %v5635_v38 }
  0x5a   : > { %8278 = vst [vmem:[#allocation15_spill] sm:$0xff] %v6227_v34  ;;  %1777 = vmatpush.bf16.msrb.mxu3 %v5643_v39  ;;  %1866 = vmatpush.bf16.msrb.mxu0 %v5651_v40 }
  0x5b   : > { %364 = vst [vmem:[#allocation2 + $0xc1] sm:$0xff] %v6219_v30 }
  0x5c   : > { %8279 = vst [vmem:[#allocation16_spill] sm:$0xff] %v6231_v35 }
  0x5d   : > { %365 = vst [vmem:[#allocation2 + $0xc9] sm:$0xff] %v6223_v31  ;;  %1445 = vmatpush.bf16.msrb.mxu2 %v5634_v27 }
  0x5e   : > { %8280 = vst [vmem:[#allocation17_spill] sm:$0xff] %v6235_v36  ;;  %1778 = vmatpush.bf16.msrb.mxu3 %v5642_v28  ;;  %1867 = vmatpush.bf16.msrb.mxu0 %v5650_v29  ;;  %v5633_v28 = vld [vmem:[#allocation6 + $0xa0] sm:$0xff] }
  0x5f   : > { %8281 = vst [vmem:[#allocation18_spill] sm:$0xff] %v6238_v37  ;;  %v5641_v29 = vld [vmem:[#allocation6 + $0xe0] sm:$0xff] }
  0x60   : > { %350 = vst [vmem:[#allocation2 + $0x19] sm:$0xff] %v6227_v34 }
  0x61   : > { %351 = vst [vmem:[#allocation2 + $0x21] sm:$0xff] %v6231_v35  ;;  %1446 = vmatpush.bf16.msrb.mxu2 %v5633_v28 }
  0x62   : > { %8282 = vst [vmem:[#allocation19_spill] sm:$0xff] %v6243_v41  ;;  %v406_v45 = vld [vmem:[#allocation2 + $0xc0] sm:$0xff]  ;;  %1779 = vmatpush.bf16.msrb.mxu3 %v5641_v29 }
  0x63   : > { %366 = vst [vmem:[#allocation2 + $0xd9] sm:$0xff] %v6235_v36  ;;  %v531_v48 = vrot.slane %v406_v45, 1 }
  0x64   : > { %8283 = vst [vmem:[#allocation20_spill] sm:$0xff] %v6247_v42  ;;  %v407_v46 = vld [vmem:[#allocation2 + $0xc8] sm:$0xff]  ;;  %v408_v47 = vld [vmem:[#allocation2 + $0xd0] sm:$0x3] }
  0x65   : > { %367 = vst [vmem:[#allocation2 + $0xe1] sm:$0xff] %v6238_v37  ;;  %v532_v49 = vrot.slane %v407_v46, 1  ;;  %v534_v50 = vrot.slane %v408_v47, 1  ;;  %v5639_v37 = vld [vmem:[#allocation6 + $0xd0] sm:$0xff] }
  0x66   : > { %8284 = vst [vmem:[#allocation21_spill] sm:$0xff] %v6251_v43 }
  0x67   : > { %352 = vst [vmem:[#allocation2 + $0x31] sm:$0xff] %v6243_v41  ;;  %v6259_v51 = vld [vmem:[#allocation2 + $0x18] sm:$0xff]  ;;  %v533_v55 = vsel %vm490_vm0, %v531_v48, %v532_v49  ;;  %v535_v56 = vsel %vm490_vm0, %v532_v49, %v534_v50 }
  0x68   : > { %8285 = vst [vmem:[#allocation22_spill] sm:$0xff] %v6255_v44  ;;  %v6262_v52 = vld [vmem:[#allocation2 + $0x20] sm:$0xff]  ;;  %v6264_v53 = vld [vmem:[#allocation2 + $0x28] sm:$0x3]  ;;  %v496_v54 = vrot.slane %v6259_v51, 1  ;;  %v776_v60 = vpack.c.bf16 %v533_v55, %v406_v45  ;;  %v778_v61 = vpack.c.bf16 %v535_v56, %v407_v46 }
  0x69   : > { %353 = vst [vmem:[#allocation2 + $0x39] sm:$0xff] %v6247_v42  ;;  %v497_v57 = vrot.slane %v6262_v52, 1  ;;  %v499_v58 = vrot.slane %v6264_v53, 1 }
  0x6a   : > { %368 = vst [vmem:[#allocation2 + $0xf1] sm:$0xff] %v6251_v43  ;;  %v409_v59 = vld [vmem:[#allocation2 + $0xd8] sm:$0xff]  ;;  %v977_v5 = vunpack.c.l.b16 %v776_v60  ;;  %v980_v6 = vunpack.c.l.b16 %v778_v61  ;;  %v978_v7 = vunpack.c.h.b16 %v776_v60  ;;  %v981_v8 = vunpack.c.h.b16 %v778_v61  ;;  %v5631_v43 = vld [vmem:[#allocation6 + $0x90] sm:$0xff] }
  0x6b   : > { %369 = vst [vmem:[#allocation2 + $0xf9] sm:$0xff] %v6255_v44  ;;  %v536_v0 = vrot.slane %v409_v59, 1  ;;  %v498_v1 = vsel %vm490_vm0, %v496_v54, %v497_v57  ;;  %v500_v2 = vsel %vm490_vm0, %v497_v57, %v499_v58 }
  0x6c   : > { %v410_v62 = vld [vmem:[#allocation2 + $0xe0] sm:$0xff]  ;;  %v411_v63 = vld [vmem:[#allocation2 + $0xe8] sm:$0x3]  ;;  %v748_v10 = vpack.c.bf16 %v498_v1, %v6259_v51  ;;  %v750_v11 = vpack.c.bf16 %v500_v2, %v6262_v52  ;;  %v6277_v13 = vpack.c.b16 %v980_v6, %v977_v5  ;;  %v6279_v14 = vpack.c.b16 %v981_v8, %v978_v7  ;;  %8288 = vst [vmem:[#allocation25_spill] sm:$0xff] %v6286_v17 }
  0x6d   : > { %v537_v3 = vrot.slane %v410_v62, 1  ;;  %v539_v4 = vrot.slane %v411_v63, 1  ;;  %8289 = vst [vmem:[#allocation26_spill] sm:$0xff] %v6289_v22 }
  0x6e   : > { %v6275_v12 = vld [vmem:[#allocation2 + $0x30] sm:$0xff]  ;;  %8286 = vst [vmem:[#allocation23_spill] sm:$0xff] %v6277_v13  ;;  %v935_v18 = vunpack.c.l.b16 %v748_v10  ;;  %v938_v19 = vunpack.c.l.b16 %v750_v11  ;;  %v936_v20 = vunpack.c.h.b16 %v748_v10  ;;  %v939_v21 = vunpack.c.h.b16 %v750_v11  ;;  %1313 = vmatmul.bf16.vlgmr.msra.gmra.mxu2 %v6277_v13  ;;  %1402 = vmatmul.bf16.vlgmr.msra.gmra.mxu3 %v6279_v14  ;;  %v6329_v10 = vld [vmem:[%s6168_s16 + $0x30] sm:$0xff]  ;;  %v6332_v11 = vld [vmem:[%s6168_s16 + $0x38] sm:$0xff] }
  0x6f   : > { %8287 = vst [vmem:[#allocation24_spill] sm:$0xff] %v6279_v14  ;;  %v538_v25 = vsel %vm490_vm0, %v536_v0, %v537_v3  ;;  %v540_v26 = vsel %vm490_vm0, %v537_v3, %v539_v4  ;;  %v501_v38 = vrot.slane %v6275_v12, 1 }
  0x70   : > { %v6281_v15 = vld [vmem:[#allocation2 + $0x38] sm:$0xff]  ;;  %v6283_v16 = vld [vmem:[#allocation2 + $0x40] sm:$0x3]  ;;  %354 = vst [vmem:[#allocation2 + $0x49] sm:$0xff] %v6286_v17  ;;  %v6303_v32 = vpack.c.b16 %v938_v19, %v935_v18  ;;  %v6305_v33 = vpack.c.b16 %v939_v21, %v936_v20  ;;  %v780_v45 = vpack.c.bf16 %v538_v25, %v409_v59  ;;  %v782_v46 = vpack.c.bf16 %v540_v26, %v410_v62  ;;  %v6344_v25 = vld [vmem:[%s6168_s16 + $0xb8] sm:$0xff] }
  0x71   : > { %8290 = vst [vmem:[#allocation27_spill] sm:$0xff] %v6293_v23  ;;  %v502_v39 = vrot.slane %v6281_v15, 1  ;;  %v504_v40 = vrot.slane %v6283_v16, 1  ;;  %v412_v58 = vld [vmem:[#allocation2 + $0xf0] sm:$0xff]  ;;  %v6335_v18 = vld [vmem:[%s6168_s16 + $0xb0] sm:$0xff] }
  0x72   : > { %8291 = vst [vmem:[#allocation28_spill] sm:$0xff] %v6296_v24  ;;  %1278 = vmatmul.bf16.gmra.mxu0 %v6303_v32  ;;  %1367 = vmatmul.bf16.gmra.mxu1 %v6305_v33  ;;  %v983_v54 = vunpack.c.l.b16 %v780_v45  ;;  %v986_v55 = vunpack.c.l.b16 %v782_v46  ;;  %v984_v56 = vunpack.c.h.b16 %v780_v45  ;;  %v987_v57 = vunpack.c.h.b16 %v782_v46  ;;  %v413_v60 = vld [vmem:[#allocation2 + $0xf8] sm:$0xff]  ;;  %v414_v59 = vld [vmem:[#allocation2 + $0x100] sm:$0x3] }
  0x73   : > { %355 = vst [vmem:[#allocation2 + $0x51] sm:$0xff] %v6289_v22  ;;  %v503_v47 = vsel %vm490_vm0, %v501_v38, %v502_v39  ;;  %v505_v48 = vsel %vm490_vm0, %v502_v39, %v504_v40  ;;  %v541_v4 = vrot.slane %v412_v58, 1  ;;  %v542_v5 = vrot.slane %v413_v60, 1  ;;  %v5649_v38 = vld [vmem:[#allocation6 + $0x120] sm:$0xff] }
  0x74   : > { %370 = vst [vmem:[#allocation2 + $0x109] sm:$0xff] %v6293_v23  ;;  %v752_v49 = vpack.c.bf16 %v503_v47, %v6275_v12  ;;  %v754_v50 = vpack.c.bf16 %v505_v48, %v6281_v15  ;;  %v6318_v1 = vpack.c.b16 %v986_v55, %v983_v54  ;;  %v6320_v2 = vpack.c.b16 %v987_v57, %v984_v56 }
  0x75   : > { %371 = vst [vmem:[#allocation2 + $0x111] sm:$0xff] %v6296_v24  ;;  %v544_v6 = vrot.slane %v414_v59, 1  ;;  %v543_v39 = vsel %vm490_vm0, %v541_v4, %v542_v5  ;;  %1868 = vmatpush.bf16.msrb.mxu0 %v5649_v38  ;;  %v6372_v38 = vld [vmem:[%s6168_s16 + $0x40] sm:$0xff]  ;;  %v6424_v24 = vld [vmem:[%s6168_s16 + $0x50] sm:$0xff] }
  0x76   : > { %v941_v61 = vunpack.c.l.b16 %v752_v49  ;;  %v944_v62 = vunpack.c.l.b16 %v754_v50  ;;  %v942_v63 = vunpack.c.h.b16 %v752_v49  ;;  %v945_v0 = vunpack.c.h.b16 %v754_v50  ;;  %8292 = vst [vmem:[#allocation29_spill] sm:$0xff] %v6318_v1 }
  0x77   : > { %8293 = vst [vmem:[#allocation30_spill] sm:$0xff] %v6320_v2  ;;  %v6322_v3 = vld [vmem:[#allocation2 + $0x48] sm:$0xff]  ;;  %v545_v40 = vsel %vm490_vm0, %v542_v5, %v544_v6  ;;  %v784_v45 = vpack.c.bf16 %v543_v39, %v412_v58  ;;  %v6375_v39 = vld [vmem:[%s6168_s16 + $0x48] sm:$0xff] }
  0x78   : > { %8294 = vst [vmem:[#allocation31_spill] sm:$0xff] %v6329_v10  ;;  %v6337_v19 = vpack.c.b16 %v944_v62, %v941_v61  ;;  %v6339_v20 = vpack.c.b16 %v945_v0, %v942_v63  ;;  %v506_v21 = vrot.slane %v6322_v3, 1  ;;  %v786_v46 = vpack.c.bf16 %v545_v40, %v413_v60  ;;  %v6378_v40 = vld [vmem:[%s6168_s16 + $0xc0] sm:$0xff] }
  0x79   : > { %8295 = vst [vmem:[#allocation32_spill] sm:$0xff] %v6332_v11  ;;  %v989_v54 = vunpack.c.l.b16 %v784_v45  ;;  %v990_v56 = vunpack.c.h.b16 %v784_v45 }
  0x7a   : > { %v6324_v7 = vld [vmem:[#allocation2 + $0x50] sm:$0xff]  ;;  %v6326_v8 = vld [vmem:[#allocation2 + $0x58] sm:$0x3]  ;;  %8296 = vst [vmem:[#allocation33_spill] sm:$0xff] %v6335_v18  ;;  %v992_v55 = vunpack.c.l.b16 %v786_v46  ;;  %v993_v57 = vunpack.c.h.b16 %v786_v46 }
  0x7b   : > { %356 = vst [vmem:[#allocation2 + $0x61] sm:$0xff] %v6329_v10  ;;  %v507_v26 = vrot.slane %v6324_v7, 1  ;;  %v509_v27 = vrot.slane %v6326_v8, 1  ;;  %v415_v59 = vld [vmem:[#allocation2 + $0x108] sm:$0xff] }
  0x7c   : > { %8297 = vst [vmem:[#allocation34_spill] sm:$0xff] %v6344_v25  ;;  %v416_v61 = vld [vmem:[#allocation2 + $0x110] sm:$0xff]  ;;  %v417_v58 = vld [vmem:[#allocation2 + $0x118] sm:$0x3]  ;;  %v6361_v4 = vpack.c.b16 %v992_v55, %v989_v54  ;;  %v6363_v5 = vpack.c.b16 %v993_v57, %v990_v56  ;;  %v5632_v54 = vld [vmem:[#allocation6 + $0x98] sm:$0xff] }
  0x7d   : > { %357 = vst [vmem:[#allocation2 + $0x69] sm:$0xff] %v6332_v11  ;;  %v508_v47 = vsel %vm490_vm0, %v506_v21, %v507_v26  ;;  %v510_v48 = vsel %vm490_vm0, %v507_v26, %v509_v27  ;;  %v546_v21 = vrot.slane %v415_v59, 1  ;;  %v547_v26 = vrot.slane %v416_v61, 1  ;;  %v5640_v55 = vld [vmem:[#allocation6 + $0xd8] sm:$0xff]  ;;  %1447 = vmatpush.bf16.msrb.mxu2 %v5632_v54  ;;  %v6478_v11 = vld [vmem:[%s6168_s16 + $0x60] sm:$0xff] }
  0x7e   : > { %1318 = vmatmul.bf16.gmra.mxu2 %v6318_v1  ;;  %1407 = vmatmul.bf16.gmra.mxu3 %v6320_v2  ;;  %372 = vst [vmem:[#allocation2 + $0x121] sm:$0xff] %v6335_v18  ;;  %v756_v49 = vpack.c.bf16 %v508_v47, %v6322_v3  ;;  %v758_v50 = vpack.c.bf16 %v510_v48, %v6324_v7  ;;  %v549_v27 = vrot.slane %v417_v58, 1  ;;  %v6387_v48 = vld [vmem:[%s6168_s16 + $0xc8] sm:$0xff]  ;;  %v5648_v56 = vld [vmem:[#allocation6 + $0x118] sm:$0xff] }
  0x7f   : > { %373 = vst [vmem:[#allocation2 + $0x129] sm:$0xff] %v6344_v25  ;;  %v548_v57 = vsel %vm490_vm0, %v546_v21, %v547_v26  ;;  %1780 = vmatpush.bf16.msrb.mxu3 %v5640_v55  ;;  %1869 = vmatpush.bf16.msrb.mxu0 %v5648_v56 }
  0x80   : > { %v947_v60 = vunpack.c.l.b16 %v756_v49  ;;  %v950_v62 = vunpack.c.l.b16 %v758_v50  ;;  %v948_v63 = vunpack.c.h.b16 %v756_v49  ;;  %v951_v0 = vunpack.c.h.b16 %v758_v50  ;;  %8298 = vst [vmem:[#allocation35_spill] sm:$0xff] %v6363_v5 }
  0x81   : > { %8299 = vst [vmem:[#allocation36_spill] sm:$0xff] %v6372_v38  ;;  %v550_v58 = vsel %vm490_vm0, %v547_v26, %v549_v27  ;;  %1448 = vmatpush.bf16.msrb.mxu2 %v5631_v43 }
  0x82   : > { %1283 = vmatmul.bf16.gmra.mxu0 %v6337_v19  ;;  %1372 = vmatmul.bf16.gmra.mxu1 %v6339_v20  ;;  %v6365_v6 = vld [vmem:[#allocation2 + $0x60] sm:$0xff]  ;;  %8300 = vst [vmem:[#allocation37_spill] sm:$0xff] %v6375_v39  ;;  %v6380_v45 = vpack.c.b16 %v950_v62, %v947_v60  ;;  %v6382_v46 = vpack.c.b16 %v951_v0, %v948_v63 }
  0x83   : > { %8301 = vst [vmem:[#allocation38_spill] sm:$0xff] %v6378_v40  ;;  %v511_v47 = vrot.slane %v6365_v6, 1  ;;  %v788_v60 = vpack.c.bf16 %v548_v57, %v415_v59  ;;  %v790_v62 = vpack.c.bf16 %v550_v58, %v416_v61  ;;  %1781 = vmatpush.bf16.msrb.mxu3 %v5639_v37 }
  0x84   : > { %v6367_v28 = vld [vmem:[#allocation2 + $0x68] sm:$0xff]  ;;  %v6369_v29 = vld [vmem:[#allocation2 + $0x70] sm:$0x3]  ;;  %358 = vst [vmem:[#allocation2 + $0x79] sm:$0xff] %v6372_v38 }
  0x85   : > { %8302 = vst [vmem:[#allocation39_spill] sm:$0xff] %v6387_v48  ;;  %v512_v49 = vrot.slane %v6367_v28, 1  ;;  %v514_v50 = vrot.slane %v6369_v29, 1  ;;  %v995_v27 = vunpack.c.l.b16 %v788_v60  ;;  %v998_v54 = vunpack.c.l.b16 %v790_v62 }
  0x86   : > { %359 = vst [vmem:[#allocation2 + $0x81] sm:$0xff] %v6375_v39  ;;  %v996_v55 = vunpack.c.h.b16 %v788_v60  ;;  %v6406_v25 = vld [vmem:[#allocation2 + $0x128] sm:$0xff]  ;;  %v6408_v59 = vld [vmem:[#allocation2 + $0x130] sm:$0x3] }
  0x87   : > { %374 = vst [vmem:[#allocation2 + $0x139] sm:$0xff] %v6378_v40  ;;  %v513_v63 = vsel %vm490_vm0, %v511_v47, %v512_v49  ;;  %v515_v0 = vsel %vm490_vm0, %v512_v49, %v514_v50  ;;  %v999_v40 = vunpack.c.h.b16 %v790_v62  ;;  %v6410_v56 = vpack.c.b16 %v998_v54, %v995_v27 }
  0x88   : > { %375 = vst [vmem:[#allocation2 + $0x141] sm:$0xff] %v6387_v48  ;;  %v760_v21 = vpack.c.bf16 %v513_v63, %v6365_v6  ;;  %v762_v26 = vpack.c.bf16 %v515_v0, %v6367_v28  ;;  %v6404_v48 = vld [vmem:[#allocation2 + $0x120] sm:$0xff]  ;;  %v552_v62 = vrot.slane %v6406_v25, 1  ;;  %v554_v63 = vrot.slane %v6408_v59, 1 }
  0x89   : > { %8303 = vst [vmem:[#allocation40_spill] sm:$0xff] %v6408_v59  ;;  %v6412_v57 = vpack.c.b16 %v999_v40, %v996_v55  ;;  %v551_v60 = vrot.slane %v6404_v48, 1  ;;  %v6439_v55 = vld [vmem:[%s6168_s16 + $0xd8] sm:$0xff]  ;;  %v5654_v59 = vld [vmem:[#allocation6 + $0x148] sm:$0xff] }
  0x8a   : > { %v953_v61 = vunpack.c.l.b16 %v760_v21  ;;  %v956_v47 = vunpack.c.l.b16 %v762_v26  ;;  %v954_v49 = vunpack.c.h.b16 %v760_v21  ;;  %v957_v50 = vunpack.c.h.b16 %v762_v26  ;;  %8304 = vst [vmem:[#allocation41_spill] sm:$0xff] %v6410_v56  ;;  %v6427_v21 = vld [vmem:[%s6168_s16 + $0x58] sm:$0xff]  ;;  %v6430_v26 = vld [vmem:[%s6168_s16 + $0xd0] sm:$0xff] }
  0x8b   : > { %8305 = vst [vmem:[#allocation42_spill] sm:$0xff] %v6412_v57  ;;  %v6414_v58 = vld [vmem:[#allocation2 + $0x78] sm:$0xff] }
  0x8c   : > { %8306 = vst [vmem:[#allocation43_spill] sm:$0xff] %v6424_v24  ;;  %v6432_v40 = vpack.c.b16 %v956_v47, %v953_v61  ;;  %v6434_v27 = vpack.c.b16 %v957_v50, %v954_v49  ;;  %v516_v54 = vrot.slane %v6414_v58, 1  ;;  %v5647_v61 = vld [vmem:[#allocation6 + $0x110] sm:$0xff]  ;;  %v553_v47 = vsel %vm490_vm0, %v551_v60, %v552_v62 }
  0x8d   : > { %v6419_v0 = vld [vmem:[#allocation2 + $0x80] sm:$0xff]  ;;  %v6421_v18 = vld [vmem:[#allocation2 + $0x88] sm:$0x3]  ;;  %8307 = vst [vmem:[#allocation44_spill] sm:$0xff] %v6427_v21  ;;  %v555_v49 = vsel %vm490_vm0, %v552_v62, %v554_v63  ;;  %v792_v50 = vpack.c.bf16 %v553_v47, %v6404_v48  ;;  %1870 = vmatpush.bf16.msrb.mxu0 %v5647_v61 }
  0x8e   : > { %1323 = vmatmul.bf16.gmra.mxu2 %v6361_v4  ;;  %1412 = vmatmul.bf16.gmra.mxu3 %v6363_v5  ;;  %8308 = vst [vmem:[#allocation45_spill] sm:$0xff] %v6430_v26  ;;  %v517_v23 = vrot.slane %v6419_v0, 1  ;;  %v519_v44 = vrot.slane %v6421_v18, 1  ;;  %v794_v36 = vpack.c.bf16 %v555_v49, %v6406_v25  ;;  %v6458_v30 = vld [vmem:[#allocation2 + $0x138] sm:$0xff] }
  0x8f   : > { %360 = vst [vmem:[#allocation2 + $0x91] sm:$0xff] %v6424_v24  ;;  %v1001_v37 = vunpack.c.l.b16 %v792_v50  ;;  %v6460_v47 = vld [vmem:[#allocation2 + $0x140] sm:$0xff]  ;;  %v6462_v49 = vld [vmem:[#allocation2 + $0x148] sm:$0x3] }
  0x90   : > { %8309 = vst [vmem:[#allocation46_spill] sm:$0xff] %v6439_v55  ;;  %v518_v31 = vsel %vm490_vm0, %v516_v54, %v517_v23  ;;  %v520_v60 = vsel %vm490_vm0, %v517_v23, %v519_v44  ;;  %v1004_v63 = vunpack.c.l.b16 %v794_v36  ;;  %v559_v24 = vrot.slane %v6462_v49, 1 }
  0x91   : > { %361 = vst [vmem:[#allocation2 + $0x99] sm:$0xff] %v6427_v21  ;;  %v764_v62 = vpack.c.bf16 %v518_v31, %v6414_v58  ;;  %v766_v43 = vpack.c.bf16 %v520_v60, %v6419_v0 }
  0x92   : > { %1288 = vmatmul.bf16.gmra.mxu0 %v6380_v45  ;;  %1377 = vmatmul.bf16.gmra.mxu1 %v6382_v46  ;;  %376 = vst [vmem:[#allocation2 + $0x151] sm:$0xff] %v6430_v26  ;;  %v1005_v26 = vunpack.c.h.b16 %v794_v36  ;;  %v6464_v31 = vpack.c.b16 %v1004_v63, %v1001_v37  ;;  %v556_v36 = vrot.slane %v6458_v30, 1  ;;  %v6493_v63 = vld [vmem:[%s6168_s16 + $0xe8] sm:$0xff] }
  0x93   : > { %377 = vst [vmem:[#allocation2 + $0x159] sm:$0xff] %v6439_v55  ;;  %v1002_v55 = vunpack.c.h.b16 %v792_v50  ;;  %v959_v54 = vunpack.c.l.b16 %v764_v62  ;;  %v962_v44 = vunpack.c.l.b16 %v766_v43  ;;  %v960_v23 = vunpack.c.h.b16 %v764_v62  ;;  %v6481_v62 = vld [vmem:[%s6168_s16 + $0x68] sm:$0xff] }
  0x94   : > { %8310 = vst [vmem:[#allocation47_spill] sm:$0xff] %v6458_v30  ;;  %v963_v61 = vunpack.c.h.b16 %v766_v43  ;;  %v557_v50 = vrot.slane %v6460_v47, 1  ;;  %v6484_v43 = vld [vmem:[%s6168_s16 + $0xe0] sm:$0xff] }
  0x95   : > { %8311 = vst [vmem:[#allocation48_spill] sm:$0xff] %v6460_v47  ;;  %v6466_v60 = vpack.c.b16 %v1005_v26, %v1002_v55  ;;  %v6486_v26 = vpack.c.b16 %v962_v44, %v959_v54  ;;  %v5630_v54 = vld [vmem:[#allocation6 + $0x88] sm:$0xff] }
  0x96   : > { %8312 = vst [vmem:[#allocation49_spill] sm:$0xff] %v6462_v49  ;;  %v6470_v21 = vld [vmem:[#allocation2 + $0x90] sm:$0xff]  ;;  %v6488_v55 = vpack.c.b16 %v963_v61, %v960_v23  ;;  %v558_v10 = vsel %vm490_vm0, %v556_v36, %v557_v50  ;;  %v5638_v44 = vld [vmem:[#allocation6 + $0xc8] sm:$0xff]  ;;  %v560_v61 = vsel %vm490_vm0, %v557_v50, %v559_v24  ;;  %1449 = vmatpush.bf16.msrb.mxu2 %v5630_v54  ;;  %v5659_v24 = vld [vmem:[#allocation6 + $0x170] sm:$0xff] }
  0x97   : > { %8313 = vst [vmem:[#allocation50_spill] sm:$0xff] %v6464_v31  ;;  %v521_v37 = vrot.slane %v6470_v21, 1  ;;  %v5646_v23 = vld [vmem:[#allocation6 + $0x108] sm:$0xff]  ;;  %1782 = vmatpush.bf16.msrb.mxu3 %v5638_v44  ;;  %v796_v36 = vpack.c.bf16 %v558_v10, %v6458_v30  ;;  %v798_v42 = vpack.c.bf16 %v560_v61, %v6460_v47 }
  0x98   : > { %8314 = vst [vmem:[#allocation51_spill] sm:$0xff] %v6466_v60  ;;  %v6473_v39 = vld [vmem:[#allocation2 + $0x98] sm:$0xff]  ;;  %v6475_v38 = vld [vmem:[#allocation2 + $0xa0] sm:$0x3]  ;;  %1871 = vmatpush.bf16.msrb.mxu0 %v5646_v23 }
  0x99   : > { %8315 = vst [vmem:[#allocation52_spill] sm:$0xff] %v6478_v11  ;;  %v522_v22 = vrot.slane %v6473_v39, 1  ;;  %v524_v17 = vrot.slane %v6475_v38, 1  ;;  %v1007_v44 = vunpack.c.l.b16 %v796_v36  ;;  %v1011_v35 = vunpack.c.h.b16 %v798_v42  ;;  %v6512_v10 = vld [vmem:[#allocation2 + $0x150] sm:$0xff] }
  0x9a   : > { %8316 = vst [vmem:[#allocation53_spill] sm:$0xff] %v6481_v62  ;;  %v6514_v34 = vld [vmem:[#allocation2 + $0x158] sm:$0xff]  ;;  %v6516_v61 = vld [vmem:[#allocation2 + $0x160] sm:$0x3] }
  0x9b   : > { %8317 = vst [vmem:[#allocation54_spill] sm:$0xff] %v6484_v43  ;;  %v523_v41 = vsel %vm490_vm0, %v521_v37, %v522_v22 }
  0x9c   : > { %8318 = vst [vmem:[#allocation55_spill] sm:$0xff] %v6486_v26  ;;  %v768_v50 = vpack.c.bf16 %v523_v41, %v6470_v21 }
  0x9d   : > { %8319 = vst [vmem:[#allocation56_spill] sm:$0xff] %v6488_v55 }
  0x9e   : > { %1328 = vmatmul.bf16.gmra.mxu2 %v6410_v56  ;;  %1417 = vmatmul.bf16.gmra.mxu3 %v6412_v57  ;;  %362 = vst [vmem:[#allocation2 + $0xa9] sm:$0xff] %v6478_v11  ;;  %v5660_v11 = vld [vmem:[#allocation6 + $0x178] sm:$0xff]  ;;  %v965_v37 = vunpack.c.l.b16 %v768_v50  ;;  %v5655_v57 = vld [vmem:[#allocation6 + $0x150] sm:$0xff] }
  0x9f   : > { %8320 = vst [vmem:[#allocation57_spill] sm:$0xff] %v6493_v63  ;;  %1954 = vmatpush.bf16.msrb.mxu1 %v5660_v11 }
  0xa0   : > { %363 = vst [vmem:[#allocation2 + $0xb1] sm:$0xff] %v6481_v62  ;;  %v525_v62 = vsel %vm490_vm0, %v522_v22, %v524_v17  ;;  %v966_v22 = vunpack.c.h.b16 %v768_v50 }
  0xa1   : > { %378 = vst [vmem:[#allocation2 + $0x169] sm:$0xff] %v6484_v43  ;;  %v770_v54 = vpack.c.bf16 %v525_v62, %v6473_v39  ;;  %v1008_v43 = vunpack.c.h.b16 %v796_v36  ;;  %v561_v62 = vrot.slane %v6512_v10, 1  ;;  %v562_v36 = vrot.slane %v6514_v34, 1 }
  0xa2   : > { %1293 = vmatmul.bf16.gmra.mxu0 %v6432_v40  ;;  %1382 = vmatmul.bf16.gmra.mxu1 %v6434_v27  ;;  %379 = vst [vmem:[#allocation2 + $0x171] sm:$0xff] %v6493_v63  ;;  %v1010_v63 = vunpack.c.l.b16 %v798_v42  ;;  %v564_v42 = vrot.slane %v6516_v61, 1 }
  0xa3   : > { %1955 = vmatpush.bf16.msrb.mxu1 %v5659_v24  ;;  %8321 = vst [vmem:[#allocation58_spill] sm:$0xff] %v6512_v10  ;;  %v968_v17 = vunpack.c.l.b16 %v770_v54  ;;  %v969_v11 = vunpack.c.h.b16 %v770_v54  ;;  %v6520_v41 = vpack.c.b16 %v1011_v35, %v1008_v43  ;;  %v563_v47 = vsel %vm490_vm0, %v561_v62, %v562_v36  ;;  %v5656_v62 = vld [vmem:[#allocation6 + $0x158] sm:$0xff] }
  0xa4   : > { %8322 = vst [vmem:[#allocation59_spill] sm:$0xff] %v6514_v34  ;;  %v6518_v23 = vpack.c.b16 %v1010_v63, %v1007_v44  ;;  %v5658_v63 = vld [vmem:[#allocation6 + $0x168] sm:$0xff]  ;;  %v5629_v44 = vld [vmem:[#allocation6 + $0x80] sm:$0xff] }
  0xa5   : > { %8323 = vst [vmem:[#allocation60_spill] sm:$0xff] %v6516_v61  ;;  %v6525_v24 = vld [vmem:[#allocation2 + $0xa8] sm:$0xff]  ;;  %v6531_v49 = vpack.c.b16 %v968_v17, %v965_v37  ;;  %v6533_v50 = vpack.c.b16 %v969_v11, %v966_v22  ;;  %v5637_v61 = vld [vmem:[#allocation6 + $0xc0] sm:$0xff]  ;;  %v565_v37 = vsel %vm490_vm0, %v562_v36, %v564_v42  ;;  %1450 = vmatpush.bf16.msrb.mxu2 %v5629_v44 }
  0xa6   : > { %8324 = vst [vmem:[#allocation61_spill] sm:$0xff] %v6518_v23  ;;  %v526_v35 = vrot.slane %v6525_v24, 1  ;;  %v5657_v17 = vld [vmem:[#allocation6 + $0x160] sm:$0xff]  ;;  %1783 = vmatpush.bf16.msrb.mxu3 %v5637_v61  ;;  %v800_v11 = vpack.c.bf16 %v563_v47, %v6512_v10 }
  0xa7   : > { %8325 = vst [vmem:[#allocation62_spill] sm:$0xff] %v6520_v41  ;;  %1956 = vmatpush.bf16.msrb.mxu1 %v5658_v63  ;;  %v5645_v22 = vld [vmem:[#allocation6 + $0x100] sm:$0xff] }
  0xa8   : > { %8326 = vst [vmem:[#allocation63_spill] sm:$0xff] %v6531_v49  ;;  %1872 = vmatpush.bf16.msrb.mxu0 %v5645_v22  ;;  %v1013_v61 = vunpack.c.l.b16 %v800_v11  ;;  %v1014_v44 = vunpack.c.h.b16 %v800_v11  ;;  %v6550_v47 = vld [vmem:[#allocation2 + $0x168] sm:$0xff] }
  0xa9   : > { %8327 = vst [vmem:[#allocation64_spill] sm:$0xff] %v6533_v50 }
  0xab   : > { %1957 = vmatpush.bf16.msrb.mxu1 %v5657_v17 }
  0xae   : > { %1333 = vmatmul.bf16.gmra.mxu2 %v6464_v31  ;;  %1422 = vmatmul.bf16.gmra.mxu3 %v6466_v60  ;;  %v6527_v31 = vld [vmem:[#allocation2 + $0xb0] sm:$0xff]  ;;  %v6529_v60 = vld [vmem:[#allocation2 + $0xb8] sm:$0x3] }
  0xaf   : > { %v527_v43 = vrot.slane %v6527_v31, 1  ;;  %v529_v54 = vrot.slane %v6529_v60, 1  ;;  %1958 = vmatpush.bf16.msrb.mxu1 %v5656_v62 }
  0xb1   : > { %v530_v30 = vsel %vm490_vm0, %v527_v43, %v529_v54 }
  0xb2   : > { %1298 = vmatmul.bf16.gmra.mxu0 %v6486_v26  ;;  %1387 = vmatmul.bf16.gmra.mxu1 %v6488_v55  ;;  %v774_v42 = vpack.c.bf16 %v530_v30, %v6527_v31  ;;  %v566_v30 = vrot.slane %v6550_v47, 1 }
  0xb3   : > { %1959 = vmatpush.bf16.msrb.mxu1 %v5655_v57 }
  0xb4   : > { %v974_v54 = vunpack.c.l.b16 %v774_v42  ;;  %v975_v22 = vunpack.c.h.b16 %v774_v42  ;;  %v5676_v42 = vld [vmem:[#allocation6 + $0x1f8] sm:$0xff] }
  0xb5   : > { %2373 = vmatpush.bf16.msra.mxu3 %v5676_v42 }
  0xb7   : > { %1960 = vmatpush.bf16.msrb.mxu1 %v5654_v59 }
  0xbe   : > { %1338 = vmatmul.bf16.gmra.mxu2 %v6518_v23  ;;  %1427 = vmatmul.bf16.gmra.mxu3 %v6520_v41  ;;  %v802_v23 = vpack.c.bf16 %v565_v37, %v6514_v34  ;;  %v528_v41 = vsel %vm490_vm0, %v526_v35, %v527_v43  ;;  %v6552_v37 = vld [vmem:[#allocation2 + $0x170] sm:$0xff]  ;;  %v6554_v35 = vld [vmem:[#allocation2 + $0x178] sm:$0x3] }
  0xbf   : > { %v772_v36 = vpack.c.bf16 %v528_v41, %v6525_v24  ;;  %8328 = vst [vmem:[#allocation65_spill] sm:$0xff] %v6552_v37  ;;  %v569_v11 = vrot.slane %v6554_v35, 1 }
  0xc0   : > { %v1016_v63 = vunpack.c.l.b16 %v802_v23  ;;  %v1017_v56 = vunpack.c.h.b16 %v802_v23  ;;  %8329 = vst [vmem:[#allocation66_spill] sm:$0xff] %v6554_v35  ;;  %v567_v23 = vrot.slane %v6552_v37, 1  ;;  %v5850_v35 = vld [vmem:[#allocation2] sm:$0xff] }
  0xc1   : > { %v971_v43 = vunpack.c.l.b16 %v772_v36  ;;  %v972_v17 = vunpack.c.h.b16 %v772_v36  ;;  %v5668_v36 = vld [vmem:[#allocation6 + $0x1b8] sm:$0xff] }
  0xc2   : > { %1303 = vmatmul.bf16.gmra.mxu0 %v6531_v49  ;;  %1392 = vmatmul.bf16.gmra.mxu1 %v6533_v50  ;;  %v6556_v34 = vpack.c.b16 %v1016_v63, %v1013_v61  ;;  %v6558_v41 = vpack.c.b16 %v1017_v56, %v1014_v44  ;;  %v623_v56 = vrot.slane %v6259_v51, 2  ;;  %v624_v61 = vrot.slane %v6262_v52, 2 }
  0xc3   : > { %v6563_v62 = vpack.c.b16 %v974_v54, %v971_v43  ;;  %v6565_v10 = vpack.c.b16 %v975_v22, %v972_v17  ;;  %v626_v63 = vrot.slane %v6264_v53, 2  ;;  %v568_v44 = vsel %vm490_vm0, %v566_v30, %v567_v23  ;;  %2284 = vmatpush.bf16.msra.mxu2 %v5668_v36  ;;  %v5653_v43 = vld [vmem:[#allocation6 + $0x140] sm:$0xff]  ;;  %v5684_v17 = vld [vmem:[#allocation6 + $0x238] sm:$0xff] }
  0xc4   : > { %8330 = vst [vmem:[#allocation67_spill] sm:$0xff] %v6556_v34  ;;  %v570_v57 = vsel %vm490_vm0, %v567_v23, %v569_v11  ;;  %v804_v54 = vpack.c.bf16 %v568_v44, %v6550_v47  ;;  %v625_v52 = vsel %vm617_vm1, %v623_v56, %v624_v61  ;;  %1961 = vmatpush.bf16.msrb.mxu1 %v5653_v43  ;;  %v618_v56 = vrot.slane %v5850_v35, 2 }
  0xc5   : > { %8331 = vst [vmem:[#allocation68_spill] sm:$0xff] %v6558_v41  ;;  %v806_v51 = vpack.c.bf16 %v570_v57, %v6552_v37  ;;  %v627_v53 = vsel %vm617_vm1, %v624_v61, %v626_v63  ;;  %2462 = vmatpush.bf16.msra.mxu0 %v5684_v17  ;;  %v749_v59 = vpack.c.bf16 %v625_v52, %v625_v52  ;;  %v621_v61 = vrot.slane %v6192_v9, 2 }
  0xc6   : > { %8332 = vst [vmem:[#allocation69_spill] sm:$0xff] %v6563_v62  ;;  %v751_v22 = vpack.c.bf16 %v627_v53, %v627_v53  ;;  %v1019_v30 = vunpack.c.l.b16 %v804_v54  ;;  %v1020_v11 = vunpack.c.h.b16 %v804_v54  ;;  %v628_v54 = vrot.slane %v6275_v12, 2 }
  0xc7   : > { %8333 = vst [vmem:[#allocation70_spill] sm:$0xff] %v6565_v10  ;;  %v1022_v23 = vunpack.c.l.b16 %v806_v51  ;;  %v1023_v36 = vunpack.c.h.b16 %v806_v51  ;;  %v937_v42 = vunpack.c.l.b16 %v749_v59  ;;  %v629_v51 = vrot.slane %v6281_v15, 2 }
  0xc8   : > { %v631_v52 = vrot.slane %v6283_v16, 2  ;;  %v622_v53 = vsel %vm617_vm1, %v618_v56, %v621_v61  ;;  %v745_v35 = vpack.c.bf16 %v618_v56, %v618_v56  ;;  %v5667_v56 = vld [vmem:[#allocation6 + $0x1b0] sm:$0xff] }
  0xc9   : > { %v6582_v44 = vpack.c.b16 %v1023_v36, %v1020_v11  ;;  %v747_v9 = vpack.c.bf16 %v622_v53, %v622_v53  ;;  %v5675_v61 = vld [vmem:[#allocation6 + $0x1f0] sm:$0xff]  ;;  %2285 = vmatpush.bf16.msra.mxu2 %v5667_v56  ;;  %v638_v56 = vrot.slane %v6365_v6, 2 }
  0xca   : > { %v632_v17 = vsel %vm617_vm1, %v629_v51, %v631_v52  ;;  %v931_v15 = vunpack.c.l.b16 %v745_v35  ;;  %v636_v52 = vrot.slane %v6326_v8, 2  ;;  %2374 = vmatpush.bf16.msra.mxu3 %v5675_v61  ;;  %v639_v61 = vrot.slane %v6367_v28, 2 }
  0xcb   : > { %8334 = vst [vmem:[#allocation71_spill] sm:$0xff] %v6582_v44 }
  0xce   : > { %1343 = vmatmul.bf16.gmra.mxu2 %v6556_v34  ;;  %1432 = vmatmul.bf16.gmra.mxu3 %v6558_v41  ;;  %v940_v34 = vunpack.c.l.b16 %v751_v22  ;;  %v6580_v41 = vpack.c.b16 %v1022_v23, %v1019_v30  ;;  %v755_v30 = vpack.c.bf16 %v632_v17, %v632_v17  ;;  %v934_v23 = vunpack.c.l.b16 %v747_v9 }
  0xd0   : > { %v1030_v43 = vpack.c.b16 %v940_v34, %v937_v42  ;;  %v630_v34 = vsel %vm617_vm1, %v628_v54, %v629_v51  ;;  %v946_v11 = vunpack.c.l.b16 %v755_v30  ;;  %v1027_v36 = vpack.c.b16 %v934_v23, %v931_v15 }
  0xd1   : > { %v1274_v57 = vpop.f32.mrf.mxu0  ;;  %v753_v12 = vpack.c.bf16 %v630_v34, %v630_v34  ;;  %v633_v54 = vrot.slane %v6322_v3, 2  ;;  %v634_v51 = vrot.slane %v6324_v7, 2  ;;  %v5683_v34 = vld [vmem:[#allocation6 + $0x230] sm:$0xff] }
  0xd2   : > { %1308 = vmatmul.bf16.gmra.mxu0 %v6563_v62  ;;  %1397 = vmatmul.bf16.gmra.mxu1 %v6565_v10  ;;  %v1363_v37 = vpop.f32.mrf.mxu1 }
  0xd3   : > { %v6585_v63 = vadd.f32 %v1363_v37, %v1274_v57  ;;  %v943_v16 = vunpack.c.l.b16 %v753_v12  ;;  %v637_v3 = vsel %vm617_vm1, %v634_v51, %v636_v52  ;;  %2463 = vmatpush.bf16.msra.mxu0 %v5683_v34 }
  0xd4   : > { %v759_v8 = vpack.c.bf16 %v637_v3, %v637_v3 }
  0xd5   : > { %v6598_v42 = vpack.c.b16 %v946_v11, %v943_v16 }
  0xd6   : > { %v952_v16 = vunpack.c.l.b16 %v759_v8 }
  0xd9   : > { %v1276_v37 = vpop.f32.mrf.mxu0 }
  0xda   : > { %v1365_v59 = vpop.f32.mrf.mxu1 }
  0xdb   : > { %v6596_v22 = vadd.f32 %v1365_v59, %v1276_v37  ;;  %v635_v37 = vsel %vm617_vm1, %v633_v54, %v634_v51  ;;  %v641_v54 = vrot.slane %v6369_v29, 2 }
  0xdc   : > { %v757_v7 = vpack.c.bf16 %v635_v37, %v635_v37 }
  0xdd   : > { %v642_v37 = vsel %vm617_vm1, %v639_v61, %v641_v54  ;;  %v646_v54 = vrot.slane %v6421_v18, 2 }
  0xde   : > { %1348 = vmatmul.bf16.gmra.mxu2 %v6580_v41  ;;  %1437 = vmatmul.bf16.gmra.mxu3 %v6582_v44  ;;  %v949_v23 = vunpack.c.l.b16 %v757_v7  ;;  %v763_v6 = vpack.c.bf16 %v642_v37, %v642_v37 }
  0xe2   : > { %1873 = vmatmul.bf16.vlgmr.msrb.gmra.mxu0 %v6305_v33  ;;  %1962 = vmatmul.bf16.vlgmr.msrb.gmra.mxu1 %v1030_v43 }
  0xee   : > { %1451 = vmatmul.bf16.vlgmr.msrb.gmra.mxu2 %v1027_v36  ;;  %1784 = vmatmul.bf16.vlgmr.msrb.gmra.mxu3 %v6303_v32  ;;  %v6616_v36 = vpack.c.b16 %v952_v16, %v949_v23 }
  0xef   : > { %v1279_v33 = vpop.f32.mrf.mxu0  ;;  %v1368_v57 = vpop.f32.mrf.mxu1 }
  0xf0   : > { %v6604_v53 = vadd.f32 %v1368_v57, %v1279_v33 }
  0xf1   : > { %v1314_v35 = vpop.f32.mrf.mxu2  ;;  %v1403_v9 = vpop.f32.mrf.mxu3 }
  0xf2   : > { %1878 = vmatmul.bf16.gmra.mxu0 %v6339_v20  ;;  %1967 = vmatmul.bf16.gmra.mxu1 %v6598_v42  ;;  %v6608_v32 = vadd.f32 %v1403_v9, %v1314_v35 }
  0xf7   : > { %v1281_v17 = vpop.f32.mrf.mxu0  ;;  %v1370_v59 = vpop.f32.mrf.mxu1 }
  0xf8   : > { %v6612_v12 = vadd.f32 %v1370_v59, %v1281_v17  ;;  %v958_v59 = vunpack.c.l.b16 %v763_v6  ;;  %v5682_v6 = vld [vmem:[#allocation6 + $0x228] sm:$0xff] }
  0xf9   : > { %v1316_v30 = vpop.f32.mrf.mxu2  ;;  %v1405_v15 = vpop.f32.mrf.mxu3  ;;  %2464 = vmatpush.bf16.msra.mxu0 %v5682_v6 }
  0xfa   : > { %v6614_v11 = vadd.f32 %v1405_v15, %v1316_v30 }
  0xfe   : > { %1456 = vmatmul.bf16.gmra.mxu2 %v1030_v43  ;;  %1789 = vmatmul.bf16.gmra.mxu3 %v6337_v19  ;;  %v640_v43 = vsel %vm617_vm1, %v638_v56, %v639_v61  ;;  %v643_v56 = vrot.slane %v6414_v58, 2  ;;  %v644_v61 = vrot.slane %v6419_v0, 2 }
  0xff   : > { %v1284_v33 = vpop.f32.mrf.mxu0  ;;  %v1373_v57 = vpop.f32.mrf.mxu1  ;;  %v761_v3 = vpack.c.bf16 %v640_v43, %v640_v43 }
 0x100   : > { %v6622_v51 = vadd.f32 %v1373_v57, %v1284_v33  ;;  %v5666_v33 = vld [vmem:[#allocation6 + $0x1a8] sm:$0xff]  ;;  %v647_v58 = vsel %vm617_vm1, %v644_v61, %v646_v54  ;;  %v649_v54 = vrot.slane %v6473_v39, 2 }
 0x101   : > { %v1319_v52 = vpop.f32.mrf.mxu2  ;;  %v1408_v35 = vpop.f32.mrf.mxu3  ;;  %v955_v17 = vunpack.c.l.b16 %v761_v3  ;;  %v5674_v57 = vld [vmem:[#allocation6 + $0x1e8] sm:$0xff]  ;;  %2286 = vmatpush.bf16.msra.mxu2 %v5666_v33  ;;  %v645_v3 = vsel %vm617_vm1, %v643_v56, %v644_v61  ;;  %v767_v18 = vpack.c.bf16 %v647_v58, %v647_v58  ;;  %v648_v61 = vrot.slane %v6470_v21, 2 }
 0x102   : > { %1883 = vmatmul.bf16.gmra.mxu0 %v6382_v46  ;;  %1972 = vmatmul.bf16.gmra.mxu1 %v6616_v36  ;;  %v6626_v9 = vadd.f32 %v1408_v35, %v1319_v52  ;;  %v765_v0 = vpack.c.bf16 %v645_v3, %v645_v3 }
 0x103   : > { %v6634_v15 = vpack.c.b16 %v958_v59, %v955_v17  ;;  %2375 = vmatpush.bf16.msra.mxu3 %v5674_v57 }
 0x104   : > { %v961_v59 = vunpack.c.l.b16 %v765_v0  ;;  %v650_v0 = vsel %vm617_vm1, %v648_v61, %v649_v54 }
 0x107   : > { %v1286_v34 = vpop.f32.mrf.mxu0  ;;  %v1375_v28 = vpop.f32.mrf.mxu1 }
 0x108   : > { %v6630_v7 = vadd.f32 %v1375_v28, %v1286_v34 }
 0x109   : > { %v1321_v29 = vpop.f32.mrf.mxu2  ;;  %v1410_v8 = vpop.f32.mrf.mxu3 }
 0x10a   : > { %v6632_v30 = vadd.f32 %v1410_v8, %v1321_v29 }
 0x10e   : > { %1461 = vmatmul.bf16.gmra.mxu2 %v6598_v42  ;;  %1794 = vmatmul.bf16.gmra.mxu3 %v6380_v45 }
 0x10f   : > { %v1289_v23 = vpop.f32.mrf.mxu0  ;;  %v1378_v16 = vpop.f32.mrf.mxu1 }
 0x110   : > { %v6641_v52 = vadd.f32 %v1378_v16, %v1289_v23  ;;  %v964_v23 = vunpack.c.l.b16 %v767_v18 }
 0x111   : > { %v1324_v35 = vpop.f32.mrf.mxu2  ;;  %v1413_v43 = vpop.f32.mrf.mxu3 }
 0x112   : > { %1888 = vmatmul.bf16.gmra.mxu0 %v6434_v27  ;;  %1977 = vmatmul.bf16.gmra.mxu1 %v6634_v15  ;;  %v6645_v37 = vadd.f32 %v1413_v43, %v1324_v35  ;;  %v6653_v33 = vpack.c.b16 %v964_v23, %v961_v59  ;;  %v651_v35 = vrot.slane %v6475_v38, 2 }
 0x114   : > { %8335 = vst [vmem:[#allocation72_spill] sm:$0xff] %v6645_v37  ;;  %v652_v18 = vsel %vm617_vm1, %v649_v54, %v651_v35  ;;  %v5665_v35 = vld [vmem:[#allocation6 + $0x1a0] sm:$0xff] }
 0x115   : > { %8337 = vst [vmem:[#allocation74_spill] sm:$0xff] %v6653_v33  ;;  %v771_v21 = vpack.c.bf16 %v652_v18, %v652_v18  ;;  %v656_v18 = vrot.slane %v6529_v60, 2  ;;  %2287 = vmatpush.bf16.msra.mxu2 %v5665_v35 }
 0x117   : > { %v1291_v34 = vpop.f32.mrf.mxu0  ;;  %v1380_v28 = vpop.f32.mrf.mxu1  ;;  %v970_v23 = vunpack.c.l.b16 %v771_v21 }
 0x118   : > { %v6649_v29 = vadd.f32 %v1380_v28, %v1291_v34  ;;  %v769_v34 = vpack.c.bf16 %v650_v0, %v650_v0  ;;  %v654_v0 = vrot.slane %v6527_v31, 2 }
 0x119   : > { %v1326_v8 = vpop.f32.mrf.mxu2  ;;  %v1415_v17 = vpop.f32.mrf.mxu3 }
 0x11a   : > { %v6651_v16 = vadd.f32 %v1415_v17, %v1326_v8  ;;  %v967_v59 = vunpack.c.l.b16 %v769_v34 }
 0x11c   : > { %8336 = vst [vmem:[#allocation73_spill] sm:$0xff] %v6651_v16  ;;  %v5679_v16 = vld [vmem:[#allocation6 + $0x210] sm:$0xff] }
 0x11e   : > { %1466 = vmatmul.bf16.gmra.mxu2 %v6616_v36  ;;  %1799 = vmatmul.bf16.gmra.mxu3 %v6432_v40 }
 0x11f   : > { %v1294_v57 = vpop.f32.mrf.mxu0  ;;  %v1383_v56 = vpop.f32.mrf.mxu1 }
 0x120   : > { %v6660_v43 = vadd.f32 %v1383_v56, %v1294_v57  ;;  %v6672_v56 = vpack.c.b16 %v970_v23, %v967_v59 }
 0x121   : > { %v1329_v3 = vpop.f32.mrf.mxu2  ;;  %v1418_v58 = vpop.f32.mrf.mxu3 }
 0x122   : > { %1893 = vmatmul.bf16.gmra.mxu0 %v6488_v55  ;;  %1982 = vmatmul.bf16.gmra.mxu1 %v6653_v33  ;;  %v6664_v6 = vadd.f32 %v1418_v58, %v1329_v3  ;;  %8340 = vst [vmem:[#allocation77_spill] sm:$0xff] %v6672_v56  ;;  %v5673_v3 = vld [vmem:[#allocation6 + $0x1e0] sm:$0xff]  ;;  %v653_v58 = vrot.slane %v6525_v24, 2  ;;  %v657_v24 = vsel %vm617_vm1, %v654_v0, %v656_v18  ;;  %v5851_v18 = vld [vmem:[#allocation2 + $0xc0] sm:$0xff] }
 0x123   : > { %2376 = vmatpush.bf16.msra.mxu3 %v5673_v3  ;;  %v775_v60 = vpack.c.bf16 %v657_v24, %v657_v24 }
 0x124   : > { %8338 = vst [vmem:[#allocation75_spill] sm:$0xff] %v6664_v6 }
 0x127   : > { %v1296_v28 = vpop.f32.mrf.mxu0  ;;  %v1385_v39 = vpop.f32.mrf.mxu1 }
 0x128   : > { %v6668_v8 = vadd.f32 %v1385_v39, %v1296_v28 }
 0x129   : > { %v1331_v38 = vpop.f32.mrf.mxu2  ;;  %v1420_v17 = vpop.f32.mrf.mxu3 }
 0x12a   : > { %v6670_v57 = vadd.f32 %v1420_v17, %v1331_v38  ;;  %v655_v38 = vsel %vm617_vm1, %v653_v58, %v654_v0  ;;  %v5681_v17 = vld [vmem:[#allocation6 + $0x220] sm:$0xff] }
 0x12b   : > { %2465 = vmatpush.bf16.msra.mxu0 %v5681_v17  ;;  %v773_v31 = vpack.c.bf16 %v655_v38, %v655_v38  ;;  %v5852_v38 = vld [vmem:[#allocation2 + $0xc8] sm:$0xff]  ;;  %v5853_v17 = vld [vmem:[#allocation2 + $0xd0] sm:$0x3] }
 0x12c   : > { %8339 = vst [vmem:[#allocation76_spill] sm:$0xff] %v6670_v57  ;;  %v659_v24 = vrot.slane %v5852_v38, 2 }
 0x12d   : > { %v973_v3 = vunpack.c.l.b16 %v773_v31 }
 0x12e   : > { %1471 = vmatmul.bf16.gmra.mxu2 %v6634_v15  ;;  %1804 = vmatmul.bf16.gmra.mxu3 %v6486_v26 }
 0x12f   : > { %v1299_v61 = vpop.f32.mrf.mxu0  ;;  %v1388_v54 = vpop.f32.mrf.mxu1 }
 0x130   : > { %v6679_v34 = vadd.f32 %v1388_v54, %v1299_v61 }
 0x131   : > { %v1334_v21 = vpop.f32.mrf.mxu2  ;;  %v1423_v28 = vpop.f32.mrf.mxu3 }
 0x132   : > { %1898 = vmatmul.bf16.gmra.mxu0 %v6533_v50  ;;  %1987 = vmatmul.bf16.gmra.mxu1 %v6672_v56  ;;  %v6683_v39 = vadd.f32 %v1423_v28, %v1334_v21  ;;  %v976_v50 = vunpack.c.l.b16 %v775_v60  ;;  %v658_v28 = vrot.slane %v5851_v18, 2 }
 0x134   : > { %8341 = vst [vmem:[#allocation78_spill] sm:$0xff] %v6683_v39  ;;  %v6691_v21 = vpack.c.b16 %v976_v50, %v973_v3 }
 0x136   : > { %8343 = vst [vmem:[#allocation80_spill] sm:$0xff] %v6691_v21 }
 0x137   : > { %v1301_v59 = vpop.f32.mrf.mxu0  ;;  %v1390_v23 = vpop.f32.mrf.mxu1 }
 0x138   : > { %v6687_v61 = vadd.f32 %v1390_v23, %v1301_v59  ;;  %v661_v59 = vrot.slane %v5853_v17, 2 }
 0x139   : > { %v1336_v54 = vpop.f32.mrf.mxu2  ;;  %v1425_v35 = vpop.f32.mrf.mxu3 }
 0x13a   : > { %v6689_v57 = vadd.f32 %v1425_v35, %v1336_v54  ;;  %v660_v54 = vsel %vm617_vm1, %v658_v28, %v659_v24  ;;  %v662_v35 = vsel %vm617_vm1, %v659_v24, %v661_v59  ;;  %v5664_v59 = vld [vmem:[#allocation6 + $0x198] sm:$0xff] }
 0x13b   : > { %v777_v3 = vpack.c.bf16 %v660_v54, %v660_v54  ;;  %v779_v18 = vpack.c.bf16 %v662_v35, %v662_v35  ;;  %2288 = vmatpush.bf16.msra.mxu2 %v5664_v59 }
 0x13c   : > { %8342 = vst [vmem:[#allocation79_spill] sm:$0xff] %v6689_v57 }
 0x13d   : > { %v979_v17 = vunpack.c.l.b16 %v777_v3 }
 0x13e   : > { %1476 = vmatmul.bf16.gmra.mxu2 %v6653_v33  ;;  %1809 = vmatmul.bf16.gmra.mxu3 %v6531_v49  ;;  %v982_v49 = vunpack.c.l.b16 %v779_v18 }
 0x13f   : > { %v1304_v58 = vpop.f32.mrf.mxu0  ;;  %v1393_v0 = vpop.f32.mrf.mxu1 }
 0x140   : > { %v6695_v23 = vadd.f32 %v1393_v0, %v1304_v58 }
 0x141   : > { %v1339_v31 = vpop.f32.mrf.mxu2  ;;  %v1428_v60 = vpop.f32.mrf.mxu3 }
 0x142   : > { %1903 = vmatmul.bf16.gmra.mxu0 %v6565_v10  ;;  %1992 = vmatmul.bf16.gmra.mxu1 %v6691_v21  ;;  %v6699_v50 = vadd.f32 %v1428_v60, %v1339_v31  ;;  %v6707_v10 = vpack.c.b16 %v982_v49, %v979_v17  ;;  %v5672_v31 = vld [vmem:[#allocation6 + $0x1d8] sm:$0xff]  ;;  %v5854_v60 = vld [vmem:[#allocation2 + $0xd8] sm:$0xff] }
 0x143   : > { %v663_v54 = vrot.slane %v5854_v60, 2  ;;  %2377 = vmatpush.bf16.msra.mxu3 %v5672_v31 }
 0x144   : > { %8344 = vst [vmem:[#allocation81_spill] sm:$0xff] %v6699_v50 }
 0x145   : > { %8346 = vst [vmem:[#allocation83_spill] sm:$0xff] %v6707_v10 }
 0x147   : > { %v1306_v57 = vpop.f32.mrf.mxu0  ;;  %v1395_v38 = vpop.f32.mrf.mxu1 }
 0x148   : > { %v6703_v39 = vadd.f32 %v1395_v38, %v1306_v57  ;;  %v5855_v57 = vld [vmem:[#allocation2 + $0xe0] sm:$0xff]  ;;  %v5856_v38 = vld [vmem:[#allocation2 + $0xe8] sm:$0x3] }
 0x149   : > { %v1341_v58 = vpop.f32.mrf.mxu2  ;;  %v1430_v0 = vpop.f32.mrf.mxu3  ;;  %v664_v35 = vrot.slane %v5855_v57, 2  ;;  %v666_v50 = vrot.slane %v5856_v38, 2 }
 0x14a   : > { %v6705_v6 = vadd.f32 %v1430_v0, %v1341_v58 }
 0x14b   : > { %v665_v0 = vsel %vm617_vm1, %v663_v54, %v664_v35  ;;  %v667_v17 = vsel %vm617_vm1, %v664_v35, %v666_v50  ;;  %v5857_v35 = vld [vmem:[#allocation2 + $0xf0] sm:$0xff] }
 0x14c   : > { %8345 = vst [vmem:[#allocation82_spill] sm:$0xff] %v6705_v6  ;;  %v781_v60 = vpack.c.bf16 %v665_v0, %v665_v0  ;;  %v783_v57 = vpack.c.bf16 %v667_v17, %v667_v17  ;;  %v5858_v0 = vld [vmem:[#allocation2 + $0xf8] sm:$0xff]  ;;  %v5859_v17 = vld [vmem:[#allocation2 + $0x100] sm:$0x3] }
 0x14e   : > { %1481 = vmatmul.bf16.gmra.mxu2 %v6672_v56  ;;  %1814 = vmatmul.bf16.gmra.mxu3 %v6563_v62  ;;  %v985_v62 = vunpack.c.l.b16 %v781_v60 }
 0x14f   : > { %v1309_v28 = vpop.f32.mrf.mxu0  ;;  %v1398_v24 = vpop.f32.mrf.mxu1 }
 0x150   : > { %v6711_v3 = vadd.f32 %v1398_v24, %v1309_v28  ;;  %v5680_v28 = vld [vmem:[#allocation6 + $0x218] sm:$0xff] }
 0x151   : > { %v1344_v49 = vpop.f32.mrf.mxu2  ;;  %v1433_v18 = vpop.f32.mrf.mxu3  ;;  %2466 = vmatpush.bf16.msra.mxu0 %v5680_v28 }
 0x152   : > { %1908 = vmatmul.bf16.gmra.mxu0 %v6279_v14  ;;  %1997 = vmatmul.bf16.gmra.mxu1 %v6707_v10  ;;  %v6715_v58 = vadd.f32 %v1433_v18, %v1344_v49  ;;  %v988_v14 = vunpack.c.l.b16 %v783_v57  ;;  %v668_v18 = vrot.slane %v5857_v35, 2 }
 0x154   : > { %8347 = vst [vmem:[#allocation84_spill] sm:$0xff] %v6715_v58  ;;  %v6723_v49 = vpack.c.b16 %v988_v14, %v985_v62 }
 0x155   : > { %2467 = vmatpush.bf16.msra.mxu0 %v5679_v16 }
 0x157   : > { %v1311_v6 = vpop.f32.mrf.mxu0  ;;  %v1400_v38 = vpop.f32.mrf.mxu1 }
 0x158   : > { %v6719_v24 = vadd.f32 %v1400_v38, %v1311_v6  ;;  %v669_v6 = vrot.slane %v5858_v0, 2  ;;  %v671_v38 = vrot.slane %v5859_v17, 2 }
 0x159   : > { %v1346_v59 = vpop.f32.mrf.mxu2  ;;  %v1435_v31 = vpop.f32.mrf.mxu3 }
 0x15a   : > { %v6721_v56 = vadd.f32 %v1435_v31, %v1346_v59  ;;  %v670_v62 = vsel %vm617_vm1, %v668_v18, %v669_v6  ;;  %v672_v60 = vsel %vm617_vm1, %v669_v6, %v671_v38  ;;  %v5663_v6 = vld [vmem:[#allocation6 + $0x190] sm:$0xff] }
 0x15b   : > { %v785_v57 = vpack.c.bf16 %v670_v62, %v670_v62  ;;  %v787_v59 = vpack.c.bf16 %v672_v60, %v672_v60  ;;  %v5671_v38 = vld [vmem:[#allocation6 + $0x1d0] sm:$0xff]  ;;  %v5861_v60 = vld [vmem:[#allocation2 + $0x110] sm:$0xff]  ;;  %2289 = vmatpush.bf16.msra.mxu2 %v5663_v6 }
 0x15c   : > { %8348 = vst [vmem:[#allocation85_spill] sm:$0xff] %v6721_v56  ;;  %v5692_v56 = vld [vmem:[#allocation8 + $0x38] sm:$0xff]  ;;  %2378 = vmatpush.bf16.msra.mxu3 %v5671_v38 }
 0x15d   : > { %3528 = vmatpush.bf16.msra.mxu1 %v5692_v56  ;;  %v674_v56 = vrot.slane %v5861_v60, 2 }
 0x15e   : > { %1486 = vmatmul.bf16.gmra.mxu2 %v6691_v21  ;;  %1819 = vmatmul.bf16.gmra.mxu3 %v6277_v13  ;;  %v991_v13 = vunpack.c.l.b16 %v785_v57  ;;  %v994_v21 = vunpack.c.l.b16 %v787_v59  ;;  %v6742_v57 = vld [vmem:[%s8165_s2] ss:$0 sm:$0xff] }
 0x15f   : > { %v1874_v50 = vpop.f32.mrf.mxu0  ;;  %v1963_v54 = vpop.f32.mrf.mxu1 }
 0x161   : > { %v1349_v28 = vpop.f32.mrf.mxu2  ;;  %v1438_v58 = vpop.f32.mrf.mxu3 }
 0x162   : > { %1913 = vmatmul.bf16.gmra.mxu0 %v6320_v2  ;;  %2002 = vmatmul.bf16.gmra.mxu1 %v6723_v49  ;;  %v6729_v14 = vadd.f32 %v1438_v58, %v1349_v28  ;;  %v6735_v2 = vpack.c.b16 %v994_v21, %v991_v13  ;;  %v5860_v28 = vld [vmem:[#allocation2 + $0x108] sm:$0xff] }
 0x163   : > { %v673_v62 = vrot.slane %v5860_v28, 2 }
 0x164   : > { %8349 = vst [vmem:[#allocation86_spill] sm:$0xff] %v6729_v14  ;;  %v5862_v14 = vld [vmem:[#allocation2 + $0x118] sm:$0x3] }
 0x165   : > { %v676_v26 = vrot.slane %v5862_v14, 2 }
 0x167   : > { %v1876_v31 = vpop.f32.mrf.mxu0  ;;  %v1965_v35 = vpop.f32.mrf.mxu1  ;;  %v677_v14 = vsel %vm617_vm1, %v674_v56, %v676_v26 }
 0x169   : > { %v1351_v0 = vpop.f32.mrf.mxu2  ;;  %v1440_v17 = vpop.f32.mrf.mxu3 }
 0x16a   : > { %v6733_v55 = vadd.f32 %v1440_v17, %v1351_v0  ;;  %v675_v17 = vsel %vm617_vm1, %v673_v62, %v674_v56 }
 0x16c   : > { %8350 = vst [vmem:[#allocation87_spill] sm:$0xff] %v6733_v55  ;;  %v789_v55 = vpack.c.bf16 %v675_v17, %v675_v17 }
 0x16e   : > { %1491 = vmatmul.bf16.gmra.mxu2 %v6707_v10  ;;  %1824 = vmatmul.bf16.gmra.mxu3 %v6318_v1  ;;  %v791_v1 = vpack.c.bf16 %v677_v14, %v677_v14  ;;  %v997_v33 = vunpack.c.l.b16 %v789_v55  ;;  %v8351_v55 = vld [vmem:[#allocation40_spill] sm:$0xff] }
 0x16f   : > { %v1879_v58 = vpop.f32.mrf.mxu0  ;;  %v1968_v18 = vpop.f32.mrf.mxu1 }
 0x171   : > { %v1452_v13 = vpop.f32.mrf.mxu2  ;;  %v1785_v21 = vpop.f32.mrf.mxu3 }
 0x172   : > { %1918 = vmatmul.bf16.gmra.mxu0 %v6363_v5  ;;  %2007 = vmatmul.bf16.gmra.mxu1 %v6735_v2  ;;  %v1453_v59 = vadd.f32 %v1452_v13, %v6585_v63  ;;  %v1875_v0 = vadd.f32 %v1874_v50, %v1785_v21  ;;  %v1000_v63 = vunpack.c.l.b16 %v791_v1  ;;  %v679_v1 = vrot.slane %v6406_v25, 2 }
 0x174   : > { %v1535_v28 = vadd.f32 %v6742_v57, %v1453_v59  ;;  %v1964_v60 = vadd.f32 %v1963_v54, %v1875_v0  ;;  %v6754_v13 = vpack.c.b16 %v1000_v63, %v997_v33  ;;  %v678_v59 = vrot.slane %v6404_v48, 2 }
 0x176   : > { %v6750_v6 = vadd.f32 %v1964_v60, %v1535_v28  ;;  %v680_v0 = vsel %vm617_vm1, %v678_v59, %v679_v1 }
 0x177   : > { %v1881_v38 = vpop.f32.mrf.mxu0  ;;  %v1970_v10 = vpop.f32.mrf.mxu1  ;;  %v793_v28 = vpack.c.bf16 %v680_v0, %v680_v0  ;;  %v5662_v0 = vld [vmem:[#allocation6 + $0x188] sm:$0xff] }
 0x178   : > { %2290 = vmatpush.bf16.msra.mxu2 %v5662_v0 }
 0x179   : > { %v1454_v5 = vpop.f32.mrf.mxu2  ;;  %v1787_v37 = vpop.f32.mrf.mxu3 }
 0x17a   : > { %v1455_v50 = vadd.f32 %v1454_v5, %v6596_v22  ;;  %v1877_v62 = vadd.f32 %v1876_v31, %v1787_v37  ;;  %v681_v5 = vrot.slane %v8351_v55, 2  ;;  %v8352_v31 = vld [vmem:[#allocation42_spill] sm:$0xff]  ;;  %v1003_v55 = vunpack.c.l.b16 %v793_v28  ;;  %v8357_v28 = vld [vmem:[#allocation48_spill] sm:$0xff] }
 0x17c   : > { %v1536_v26 = vadd.f32 %v6742_v57, %v1455_v50  ;;  %v1966_v56 = vadd.f32 %v1965_v35, %v1877_v62  ;;  %v682_v17 = vsel %vm617_vm1, %v679_v1, %v681_v5  ;;  %v5691_v62 = vld [vmem:[#allocation8 + $0x30] sm:$0xff] }
 0x17d   : > { %v795_v25 = vpack.c.bf16 %v682_v17, %v682_v17  ;;  %3529 = vmatpush.bf16.msra.mxu1 %v5691_v62  ;;  %v5670_v17 = vld [vmem:[#allocation6 + $0x1c8] sm:$0xff] }
 0x17e   : > { %v6756_v54 = vadd.f32 %v1966_v56, %v1536_v26  ;;  %1496 = vmatmul.bf16.gmra.mxu2 %v6723_v49  ;;  %1829 = vmatmul.bf16.gmra.mxu3 %v6361_v4 }
 0x17f   : > { %v1884_v21 = vpop.f32.mrf.mxu0  ;;  %v1973_v16 = vpop.f32.mrf.mxu1  ;;  %2379 = vmatpush.bf16.msra.mxu3 %v5670_v17 }
 0x181   : > { %v1457_v22 = vpop.f32.mrf.mxu2  ;;  %v1790_v37 = vpop.f32.mrf.mxu3 }
 0x182   : > { %1923 = vmatmul.bf16.gmra.mxu0 %v8352_v31  ;;  %2012 = vmatmul.bf16.gmra.mxu1 %v6754_v13  ;;  %v1458_v33 = vadd.f32 %v1457_v22, %v6604_v53  ;;  %v1880_v35 = vadd.f32 %v1879_v58, %v1790_v37  ;;  %v1006_v53 = vunpack.c.l.b16 %v795_v25  ;;  %v8355_v37 = vld [vmem:[#allocation41_spill] sm:$0xff] }
 0x184   : > { %v1537_v14 = vadd.f32 %v6742_v57, %v1458_v33  ;;  %v1969_v48 = vadd.f32 %v1968_v18, %v1880_v35  ;;  %v6773_v22 = vpack.c.b16 %v1006_v53, %v1003_v55 }
 0x186   : > { %v6769_v60 = vadd.f32 %v1969_v48, %v1537_v14  ;;  %v8356_v14 = vld [vmem:[#allocation47_spill] sm:$0xff] }
 0x187   : > { %v1886_v63 = vpop.f32.mrf.mxu0  ;;  %v1975_v50 = vpop.f32.mrf.mxu1  ;;  %v683_v48 = vrot.slane %v8356_v14, 2 }
 0x188   : > { %8353 = vst [vmem:[#allocation40_spill] sm:$0xff] %v6769_v60 }
 0x189   : > { %v1459_v26 = vpop.f32.mrf.mxu2  ;;  %v1792_v56 = vpop.f32.mrf.mxu3 }
 0x18a   : > { %v1460_v58 = vadd.f32 %v1459_v26, %v6612_v12  ;;  %v1882_v59 = vadd.f32 %v1881_v38, %v1792_v56  ;;  %v684_v12 = vrot.slane %v8357_v28, 2  ;;  %v8358_v38 = vld [vmem:[#allocation49_spill] sm:$0xff]  ;;  %v8359_v26 = vld [vmem:[#allocation51_spill] sm:$0xff] }
 0x18b   : > { %v686_v25 = vrot.slane %v8358_v38, 2  ;;  %v5678_v38 = vld [vmem:[#allocation6 + $0x208] sm:$0xff] }
 0x18c   : > { %v1538_v1 = vadd.f32 %v6742_v57, %v1460_v58  ;;  %v1971_v5 = vadd.f32 %v1970_v10, %v1882_v59  ;;  %v685_v53 = vsel %vm617_vm1, %v683_v48, %v684_v12  ;;  %2468 = vmatpush.bf16.msra.mxu0 %v5678_v38 }
 0x18d   : > { %v687_v58 = vsel %vm617_vm1, %v684_v12, %v686_v25 }
 0x18e   : > { %v6775_v18 = vadd.f32 %v1971_v5, %v1538_v1  ;;  %1501 = vmatmul.bf16.gmra.mxu2 %v6735_v2  ;;  %1834 = vmatmul.bf16.gmra.mxu3 %v8355_v37  ;;  %v797_v5 = vpack.c.bf16 %v685_v53, %v685_v53  ;;  %v799_v14 = vpack.c.bf16 %v687_v58, %v687_v58  ;;  %v8364_v53 = vld [vmem:[#allocation58_spill] sm:$0xff] }
 0x18f   : > { %v1889_v33 = vpop.f32.mrf.mxu0  ;;  %v1978_v35 = vpop.f32.mrf.mxu1  ;;  %v688_v58 = vrot.slane %v8364_v53, 2 }
 0x190   : > { %8354 = vst [vmem:[#allocation42_spill] sm:$0xff] %v6775_v18  ;;  %v1009_v60 = vunpack.c.l.b16 %v797_v5  ;;  %v8366_v5 = vld [vmem:[#allocation60_spill] sm:$0xff] }
 0x191   : > { %v1462_v10 = vpop.f32.mrf.mxu2  ;;  %v1795_v62 = vpop.f32.mrf.mxu3 }
 0x192   : > { %1928 = vmatmul.bf16.gmra.mxu0 %v8359_v26  ;;  %2017 = vmatmul.bf16.gmra.mxu1 %v6773_v22  ;;  %v1463_v56 = vadd.f32 %v1462_v10, %v6622_v51  ;;  %v1885_v55 = vadd.f32 %v1884_v21, %v1795_v62  ;;  %v1012_v51 = vunpack.c.l.b16 %v799_v14  ;;  %v8363_v62 = vld [vmem:[#allocation50_spill] sm:$0xff] }
 0x194   : > { %v1539_v59 = vadd.f32 %v6742_v57, %v1463_v56  ;;  %v1974_v1 = vadd.f32 %v1973_v16, %v1885_v55  ;;  %v6792_v10 = vpack.c.b16 %v1012_v51, %v1009_v60 }
 0x196   : > { %v6788_v0 = vadd.f32 %v1974_v1, %v1539_v59  ;;  %8361 = vst [vmem:[#allocation47_spill] sm:$0xff] %v6792_v10  ;;  %v8365_v59 = vld [vmem:[#allocation59_spill] sm:$0xff] }
 0x197   : > { %v1891_v17 = vpop.f32.mrf.mxu0  ;;  %v1980_v28 = vpop.f32.mrf.mxu1  ;;  %v689_v1 = vrot.slane %v8365_v59, 2 }
 0x198   : > { %8360 = vst [vmem:[#allocation41_spill] sm:$0xff] %v6788_v0 }
 0x199   : > { %v1464_v26 = vpop.f32.mrf.mxu2  ;;  %v1797_v18 = vpop.f32.mrf.mxu3  ;;  %v690_v14 = vsel %vm617_vm1, %v688_v58, %v689_v1 }
 0x19a   : > { %v1465_v21 = vadd.f32 %v1464_v26, %v6630_v7  ;;  %v1887_v48 = vadd.f32 %v1886_v63, %v1797_v18  ;;  %v691_v7 = vrot.slane %v8366_v5, 2  ;;  %v8367_v26 = vld [vmem:[#allocation62_spill] sm:$0xff] }
 0x19b   : > { %v5690_v5 = vld [vmem:[#allocation8 + $0x28] sm:$0xff] }
 0x19c   : > { %v1540_v12 = vadd.f32 %v6742_v57, %v1465_v21  ;;  %v1976_v25 = vadd.f32 %v1975_v50, %v1887_v48  ;;  %v692_v38 = vsel %vm617_vm1, %v689_v1, %v691_v7  ;;  %v801_v48 = vpack.c.bf16 %v690_v14, %v690_v14  ;;  %3530 = vmatpush.bf16.msra.mxu1 %v5690_v5 }
 0x19e   : > { %v6794_v16 = vadd.f32 %v1976_v25, %v1540_v12  ;;  %1506 = vmatmul.bf16.gmra.mxu2 %v6754_v13  ;;  %1839 = vmatmul.bf16.gmra.mxu3 %v8363_v62  ;;  %v803_v12 = vpack.c.bf16 %v692_v38, %v692_v38  ;;  %v8372_v38 = vld [vmem:[#allocation61_spill] sm:$0xff] }
 0x19f   : > { %v1894_v56 = vpop.f32.mrf.mxu0  ;;  %v1983_v55 = vpop.f32.mrf.mxu1 }
 0x1a0   : > { %8362 = vst [vmem:[#allocation48_spill] sm:$0xff] %v6794_v16 }
 0x1a1   : > { %v1467_v63 = vpop.f32.mrf.mxu2  ;;  %v1800_v18 = vpop.f32.mrf.mxu3 }
 0x1a2   : > { %1933 = vmatmul.bf16.gmra.mxu0 %v8367_v26  ;;  %2022 = vmatmul.bf16.gmra.mxu1 %v6792_v10  ;;  %v1468_v60 = vadd.f32 %v1467_v63, %v6641_v52  ;;  %v1890_v50 = vadd.f32 %v1889_v33, %v1800_v18  ;;  %v1015_v33 = vunpack.c.l.b16 %v801_v48  ;;  %v1018_v63 = vunpack.c.l.b16 %v803_v12  ;;  %v6812_v18 = vld [vmem:[%s6168_s16 + $0xf0] sm:$0xff]  ;;  %v8374_v12 = vld [vmem:[#allocation66_spill] sm:$0xff] }
 0x1a3   : > { %8369 = vst [vmem:[#allocation50_spill] sm:$0xff] %v6812_v18  ;;  %v696_v5 = vrot.slane %v8374_v12, 2 }
 0x1a4   : > { %v1541_v51 = vadd.f32 %v6742_v57, %v1468_v60  ;;  %v1979_v21 = vadd.f32 %v1978_v35, %v1890_v50  ;;  %v6815_v60 = vld [vmem:[%s6168_s16 + $0xf8] sm:$0xff]  ;;  %v6817_v50 = vpack.c.b16 %v1018_v63, %v1015_v33  ;;  %380 = vst [vmem:[#allocation2 + $0x181] sm:$0xff] %v6812_v18 }
 0x1a5   : > { %8370 = vst [vmem:[#allocation58_spill] sm:$0xff] %v6815_v60  ;;  %v8375_v63 = vld [vmem:[#allocation68_spill] sm:$0xff] }
 0x1a6   : > { %v6807_v25 = vadd.f32 %v1979_v21, %v1541_v51  ;;  %v8373_v21 = vld [vmem:[#allocation65_spill] sm:$0xff]  ;;  %381 = vst [vmem:[#allocation2 + $0x189] sm:$0xff] %v6815_v60 }
 0x1a7   : > { %v1896_v53 = vpop.f32.mrf.mxu0  ;;  %v1985_v59 = vpop.f32.mrf.mxu1  ;;  %v694_v48 = vrot.slane %v8373_v21, 2 }
 0x1a8   : > { %8368 = vst [vmem:[#allocation49_spill] sm:$0xff] %v6807_v25 }
 0x1a9   : > { %v1469_v26 = vpop.f32.mrf.mxu2  ;;  %v1802_v52 = vpop.f32.mrf.mxu3 }
 0x1aa   : > { %v1470_v58 = vadd.f32 %v1469_v26, %v6649_v29  ;;  %v1892_v1 = vadd.f32 %v1891_v17, %v1802_v52  ;;  %v5661_v17 = vld [vmem:[#allocation6 + $0x180] sm:$0xff] }
 0x1ab   : > { %v5669_v26 = vld [vmem:[#allocation6 + $0x1c0] sm:$0xff]  ;;  %2291 = vmatpush.bf16.msra.mxu2 %v5661_v17 }
 0x1ac   : > { %v1542_v7 = vadd.f32 %v6742_v57, %v1470_v58  ;;  %v1981_v35 = vadd.f32 %v1980_v28, %v1892_v1  ;;  %v693_v28 = vrot.slane %v6550_v47, 2  ;;  %2380 = vmatpush.bf16.msra.mxu3 %v5669_v26  ;;  %v697_v47 = vsel %vm617_vm1, %v694_v48, %v696_v5 }
 0x1ad   : > { %v807_v60 = vpack.c.bf16 %v697_v47, %v697_v47  ;;  %v432_v5 = vld [vmem:[#allocation2 + $0x190] sm:$0x3] }
 0x1ae   : > { %v6820_v14 = vadd.f32 %v1981_v35, %v1542_v7  ;;  %1511 = vmatmul.bf16.gmra.mxu2 %v6773_v22  ;;  %1844 = vmatmul.bf16.gmra.mxu3 %v8372_v38  ;;  %v695_v7 = vsel %vm617_vm1, %v693_v28, %v694_v48  ;;  %v431_v48 = vld [vmem:[#allocation2 + $0x188] sm:$0xff]  ;;  %v574_v47 = vrot.slane %v432_v5, 1 }
 0x1af   : > { %v1899_v51 = vpop.f32.mrf.mxu0  ;;  %v1988_v29 = vpop.f32.mrf.mxu1  ;;  %v805_v12 = vpack.c.bf16 %v695_v7, %v695_v7  ;;  %v572_v7 = vrot.slane %v431_v48, 1 }
 0x1b0   : > { %8371 = vst [vmem:[#allocation59_spill] sm:$0xff] %v6820_v14  ;;  %v5677_v14 = vld [vmem:[#allocation6 + $0x200] sm:$0xff] }
 0x1b1   : > { %v1472_v52 = vpop.f32.mrf.mxu2  ;;  %v1805_v33 = vpop.f32.mrf.mxu3  ;;  %2469 = vmatpush.bf16.msra.mxu0 %v5677_v14  ;;  %v1021_v38 = vunpack.c.l.b16 %v805_v12  ;;  %v8378_v14 = vld [vmem:[#allocation67_spill] sm:$0xff] }
 0x1b2   : > { %1938 = vmatmul.bf16.gmra.mxu0 %v8375_v63  ;;  %2027 = vmatmul.bf16.gmra.mxu1 %v6817_v50  ;;  %v1473_v58 = vadd.f32 %v1472_v52, %v6660_v43  ;;  %v1895_v1 = vadd.f32 %v1894_v56, %v1805_v33  ;;  %v1024_v43 = vunpack.c.l.b16 %v807_v60  ;;  %v430_v52 = vld [vmem:[#allocation2 + $0x180] sm:$0xff] }
 0x1b4   : > { %v1543_v35 = vadd.f32 %v6742_v57, %v1473_v58  ;;  %v1984_v21 = vadd.f32 %v1983_v55, %v1895_v1  ;;  %v6838_v58 = vpack.c.b16 %v1024_v43, %v1021_v38  ;;  %v571_v1 = vrot.slane %v430_v52, 1 }
 0x1b5   : > { %v575_v38 = vsel %vm490_vm0, %v572_v7, %v574_v47 }
 0x1b6   : > { %v6834_v17 = vadd.f32 %v1984_v21, %v1543_v35 }
 0x1b7   : > { %v1901_v26 = vpop.f32.mrf.mxu0  ;;  %v1990_v18 = vpop.f32.mrf.mxu1 }
 0x1b8   : > { %8376 = vst [vmem:[#allocation60_spill] sm:$0xff] %v6834_v17  ;;  %v810_v17 = vpack.c.bf16 %v575_v38, %v431_v48 }
 0x1b9   : > { %v1474_v63 = vpop.f32.mrf.mxu2  ;;  %v1807_v25 = vpop.f32.mrf.mxu3 }
 0x1ba   : > { %v1475_v56 = vadd.f32 %v1474_v63, %v6668_v8  ;;  %v1897_v28 = vadd.f32 %v1896_v53, %v1807_v25  ;;  %v698_v25 = vrot.slane %v430_v52, 2  ;;  %v699_v53 = vrot.slane %v431_v48, 2 }
 0x1bb   : > { %v701_v63 = vrot.slane %v432_v5, 2  ;;  %v1624_v47 = vunpack.c.h.b16 %v810_v17 }
 0x1bc   : > { %v1544_v55 = vadd.f32 %v6742_v57, %v1475_v56  ;;  %v1986_v33 = vadd.f32 %v1985_v59, %v1897_v28  ;;  %v573_v59 = vsel %vm490_vm0, %v571_v1, %v572_v7  ;;  %v700_v28 = vsel %vm617_vm1, %v698_v25, %v699_v53 }
 0x1be   : > { %v6840_v35 = vadd.f32 %v1986_v33, %v1544_v55  ;;  %1516 = vmatmul.bf16.gmra.mxu2 %v6792_v10  ;;  %1849 = vmatmul.bf16.gmra.mxu3 %v8378_v14  ;;  %v702_v55 = vsel %vm617_vm1, %v699_v53, %v701_v63  ;;  %v809_v14 = vpack.c.bf16 %v700_v28, %v700_v28  ;;  %v5689_v10 = vld [vmem:[#allocation8 + $0x20] sm:$0xff] }
 0x1bf   : > { %v1904_v60 = vpop.f32.mrf.mxu0  ;;  %v1993_v8 = vpop.f32.mrf.mxu1  ;;  %3531 = vmatpush.bf16.msra.mxu1 %v5689_v10 }
 0x1c0   : > { %8377 = vst [vmem:[#allocation65_spill] sm:$0xff] %v6840_v35  ;;  %v808_v35 = vpack.c.bf16 %v573_v59, %v430_v52  ;;  %v1622_v25 = vunpack.c.l.b16 %v809_v14 }
 0x1c1   : > { %v1477_v21 = vpop.f32.mrf.mxu2  ;;  %v1810_v12 = vpop.f32.mrf.mxu3 }
 0x1c2   : > { %1943 = vmatmul.bf16.gmra.mxu0 %v6582_v44  ;;  %2032 = vmatmul.bf16.gmra.mxu1 %v6838_v58  ;;  %v1478_v43 = vadd.f32 %v1477_v21, %v6679_v34  ;;  %v1900_v56 = vadd.f32 %v1899_v51, %v1810_v12  ;;  %v811_v44 = vpack.c.bf16 %v702_v55, %v702_v55  ;;  %v1621_v51 = vunpack.c.h.b16 %v808_v35 }
 0x1c3   : > { %v1620_v28 = vunpack.c.l.b16 %v808_v35  ;;  %v1623_v55 = vunpack.c.l.b16 %v810_v17 }
 0x1c4   : > { %v1545_v33 = vadd.f32 %v6742_v57, %v1478_v43  ;;  %v1989_v5 = vadd.f32 %v1988_v29, %v1900_v56  ;;  %v1625_v21 = vunpack.c.l.b16 %v811_v44  ;;  %v6856_v48 = vpack.c.b16 %v1624_v47, %v1621_v51 }
 0x1c6   : > { %v6852_v16 = vadd.f32 %v1989_v5, %v1545_v33  ;;  %v6858_v12 = vpack.c.b16 %v1625_v21, %v1622_v25  ;;  %v6871_v25 = vpack.c.b16 %v1623_v55, %v1620_v28 }
 0x1c7   : > { %v1906_v0 = vpop.f32.mrf.mxu0  ;;  %v1995_v1 = vpop.f32.mrf.mxu1 }
 0x1c9   : > { %v1479_v7 = vpop.f32.mrf.mxu2  ;;  %v1812_v34 = vpop.f32.mrf.mxu3 }
 0x1ca   : > { %v1480_v53 = vadd.f32 %v1479_v7, %v6687_v61  ;;  %v1902_v63 = vadd.f32 %v1901_v26, %v1812_v34 }
 0x1cc   : > { %v1546_v29 = vadd.f32 %v6742_v57, %v1480_v53  ;;  %v1991_v52 = vadd.f32 %v1990_v18, %v1902_v63 }
 0x1ce   : > { %v6860_v59 = vadd.f32 %v1991_v52, %v1546_v29  ;;  %1521 = vmatmul.bf16.gmra.mxu2 %v6817_v50  ;;  %1854 = vmatmul.bf16.gmra.mxu3 %v6580_v41 }
 0x1cf   : > { %v1909_v10 = vpop.f32.mrf.mxu0  ;;  %v1998_v38 = vpop.f32.mrf.mxu1 }
 0x1d1   : > { %v1482_v14 = vpop.f32.mrf.mxu2  ;;  %v1815_v44 = vpop.f32.mrf.mxu3 }
 0x1d2   : > { %1948 = vmatmul.bf16.gmra.mxu0 %v6856_v48  ;;  %2037 = vmatmul.bf16.gmra.mxu1 %v6858_v12  ;;  %v1483_v61 = vadd.f32 %v1482_v14, %v6695_v23  ;;  %v1905_v18 = vadd.f32 %v1904_v60, %v1815_v44  ;;  %v5688_v44 = vld [vmem:[#allocation8 + $0x18] sm:$0xff] }
 0x1d3   : > { %3532 = vmatpush.bf16.msra.mxu1 %v5688_v44 }
 0x1d4   : > { %v1547_v26 = vadd.f32 %v6742_v57, %v1483_v61  ;;  %v1994_v43 = vadd.f32 %v1993_v8, %v1905_v18 }
 0x1d6   : > { %v6868_v56 = vadd.f32 %v1994_v43, %v1547_v26 }
 0x1d7   : > { %v1911_v33 = vpop.f32.mrf.mxu0  ;;  %v2000_v5 = vpop.f32.mrf.mxu1 }
 0x1d9   : > { %v1484_v7 = vpop.f32.mrf.mxu2  ;;  %v1817_v34 = vpop.f32.mrf.mxu3 }
 0x1da   : > { %v1485_v51 = vadd.f32 %v1484_v7, %v6703_v39  ;;  %v1907_v47 = vadd.f32 %v1906_v0, %v1817_v34 }
 0x1dc   : > { %v1548_v21 = vadd.f32 %v6742_v57, %v1485_v51  ;;  %v1996_v23 = vadd.f32 %v1995_v1, %v1907_v47 }
 0x1de   : > { %v6874_v60 = vadd.f32 %v1996_v23, %v1548_v21  ;;  %1526 = vmatmul.bf16.gmra.mxu2 %v6838_v58  ;;  %1859 = vmatmul.bf16.gmra.mxu3 %v6871_v25 }
 0x1df   : > { %v1914_v35 = vpop.f32.mrf.mxu0  ;;  %v2003_v17 = vpop.f32.mrf.mxu1 }
 0x1e1   : > { %v1487_v8 = vpop.f32.mrf.mxu2  ;;  %v1820_v53 = vpop.f32.mrf.mxu3 }
 0x1e2   : > { %2470 = vmatmul.bf16.vlgmr.msra.gmra.mxu0 %v6598_v42  ;;  %v1488_v39 = vadd.f32 %v1487_v8, %v6711_v3  ;;  %v1910_v0 = vadd.f32 %v1909_v10, %v1820_v53 }
 0x1e4   : > { %v1549_v63 = vadd.f32 %v6742_v57, %v1488_v39  ;;  %v1999_v29 = vadd.f32 %v1998_v38, %v1910_v0 }
 0x1e6   : > { %v6881_v52 = vadd.f32 %v1999_v29, %v1549_v63 }
 0x1e7   : > { %v1916_v1 = vpop.f32.mrf.mxu0  ;;  %v2005_v14 = vpop.f32.mrf.mxu1 }
 0x1e9   : > { %v1489_v61 = vpop.f32.mrf.mxu2  ;;  %v1822_v18 = vpop.f32.mrf.mxu3 }
 0x1ea   : > { %v1490_v26 = vadd.f32 %v1489_v61, %v6719_v24  ;;  %v1912_v43 = vadd.f32 %v1911_v33, %v1822_v18  ;;  %v5687_v18 = vld [vmem:[#allocation8 + $0x10] sm:$0xff] }
 0x1eb   : > { %3533 = vmatpush.bf16.msra.mxu1 %v5687_v18 }
 0x1ec   : > { %v1550_v28 = vadd.f32 %v6742_v57, %v1490_v26  ;;  %v2001_v42 = vadd.f32 %v2000_v5, %v1912_v43 }
 0x1ee   : > { %v6885_v55 = vadd.f32 %v2001_v42, %v1550_v28  ;;  %2292 = vmatmul.bf16.vlgmr.msra.gmra.mxu2 %v6337_v19  ;;  %2381 = vmatmul.bf16.vlgmr.msra.gmra.mxu3 %v6339_v20 }
 0x1ef   : > { %v1919_v3 = vpop.f32.mrf.mxu0  ;;  %v2008_v10 = vpop.f32.mrf.mxu1 }
 0x1f1   : > { %v1492_v38 = vpop.f32.mrf.mxu2  ;;  %v1825_v7 = vpop.f32.mrf.mxu3 }
 0x1f2   : > { %2475 = vmatmul.bf16.gmra.mxu0 %v6616_v36  ;;  %v1493_v34 = vadd.f32 %v1492_v38, %v6608_v32  ;;  %v1915_v51 = vadd.f32 %v1914_v35, %v1825_v7  ;;  %v8379_v7 = vld [vmem:[#allocation74_spill] sm:$0xff] }
 0x1f4   : > { %v1551_v24 = vadd.f32 %v6742_v57, %v1493_v34  ;;  %v2004_v33 = vadd.f32 %v2003_v17, %v1915_v51  ;;  %v8380_v34 = vld [vmem:[#allocation72_spill] sm:$0xff] }
 0x1f6   : > { %v6892_v47 = vadd.f32 %v2004_v33, %v1551_v24 }
 0x1f7   : > { %v1921_v5 = vpop.f32.mrf.mxu0  ;;  %v2010_v21 = vpop.f32.mrf.mxu1 }
 0x1f9   : > { %v1494_v23 = vpop.f32.mrf.mxu2  ;;  %v1827_v19 = vpop.f32.mrf.mxu3 }
 0x1fa   : > { %v1495_v20 = vadd.f32 %v1494_v23, %v6614_v11  ;;  %v1917_v8 = vadd.f32 %v1916_v1, %v1827_v19 }
 0x1fc   : > { %v1552_v53 = vadd.f32 %v6742_v57, %v1495_v20  ;;  %v2006_v39 = vadd.f32 %v2005_v14, %v1917_v8  ;;  %v8381_v20 = vld [vmem:[#allocation73_spill] sm:$0xff] }
 0x1fe   : > { %v6896_v0 = vadd.f32 %v2006_v39, %v1552_v53  ;;  %2297 = vmatmul.bf16.gmra.mxu2 %v6380_v45  ;;  %2386 = vmatmul.bf16.gmra.mxu3 %v6382_v46 }
 0x1ff   : > { %v1924_v32 = vpop.f32.mrf.mxu0  ;;  %v2013_v36 = vpop.f32.mrf.mxu1 }
 0x201   : > { %v1497_v35 = vpop.f32.mrf.mxu2  ;;  %v1830_v17 = vpop.f32.mrf.mxu3 }
 0x202   : > { %2480 = vmatmul.bf16.gmra.mxu0 %v6634_v15  ;;  %v1498_v63 = vadd.f32 %v1497_v35, %v6626_v9  ;;  %v1920_v29 = vadd.f32 %v1919_v3, %v1830_v17  ;;  %v8382_v17 = vld [vmem:[#allocation55_spill] sm:$0xff] }
 0x204   : > { %v1553_v11 = vadd.f32 %v6742_v57, %v1498_v63  ;;  %v2009_v1 = vadd.f32 %v2008_v10, %v1920_v29 }
 0x206   : > { %v6903_v44 = vadd.f32 %v2009_v1, %v1553_v11  ;;  %v8384_v11 = vld [vmem:[#allocation77_spill] sm:$0xff]  ;;  %v8385_v1 = vld [vmem:[#allocation75_spill] sm:$0xff] }
 0x207   : > { %v1926_v14 = vpop.f32.mrf.mxu0  ;;  %v2015_v61 = vpop.f32.mrf.mxu1 }
 0x209   : > { %v1499_v45 = vpop.f32.mrf.mxu2  ;;  %v1832_v46 = vpop.f32.mrf.mxu3 }
 0x20a   : > { %v1500_v26 = vadd.f32 %v1499_v45, %v6632_v30  ;;  %v1922_v43 = vadd.f32 %v1921_v5, %v1832_v46 }
 0x20c   : > { %v1554_v28 = vadd.f32 %v6742_v57, %v1500_v26  ;;  %v2011_v15 = vadd.f32 %v2010_v21, %v1922_v43 }
 0x20e   : > { %v6907_v42 = vadd.f32 %v2011_v15, %v1554_v28  ;;  %2302 = vmatmul.bf16.gmra.mxu2 %v6432_v40  ;;  %2391 = vmatmul.bf16.gmra.mxu3 %v6434_v27  ;;  %v5686_v28 = vld [vmem:[#allocation8 + $0x8] sm:$0xff] }
 0x20f   : > { %v1929_v9 = vpop.f32.mrf.mxu0  ;;  %v2018_v3 = vpop.f32.mrf.mxu1  ;;  %3534 = vmatpush.bf16.msra.mxu1 %v5686_v28 }
 0x211   : > { %v1502_v10 = vpop.f32.mrf.mxu2  ;;  %v1835_v38 = vpop.f32.mrf.mxu3 }
 0x212   : > { %2485 = vmatmul.bf16.gmra.mxu0 %v8379_v7  ;;  %v1503_v51 = vadd.f32 %v1502_v10, %v8380_v34  ;;  %v1925_v24 = vadd.f32 %v1924_v32, %v1835_v38  ;;  %v8383_v32 = vld [vmem:[#allocation56_spill] sm:$0xff] }
 0x213   : > { %v8386_v38 = vld [vmem:[#allocation76_spill] sm:$0xff] }
 0x214   : > { %v1555_v30 = vadd.f32 %v6742_v57, %v1503_v51  ;;  %v2014_v33 = vadd.f32 %v2013_v36, %v1925_v24 }
 0x216   : > { %v6914_v5 = vadd.f32 %v2014_v33, %v1555_v30 }
 0x217   : > { %v1931_v21 = vpop.f32.mrf.mxu0  ;;  %v2020_v23 = vpop.f32.mrf.mxu1 }
 0x219   : > { %v1504_v19 = vpop.f32.mrf.mxu2  ;;  %v1837_v40 = vpop.f32.mrf.mxu3 }
 0x21a   : > { %v1505_v27 = vadd.f32 %v1504_v19, %v8381_v20  ;;  %v1927_v8 = vadd.f32 %v1926_v14, %v1837_v40  ;;  %v8388_v19 = vld [vmem:[#allocation64_spill] sm:$0xff] }
 0x21c   : > { %v1556_v53 = vadd.f32 %v6742_v57, %v1505_v27  ;;  %v2016_v39 = vadd.f32 %v2015_v61, %v1927_v8  ;;  %v8389_v27 = vld [vmem:[#allocation80_spill] sm:$0xff]  ;;  %v8390_v8 = vld [vmem:[#allocation78_spill] sm:$0xff] }
 0x21e   : > { %v6918_v35 = vadd.f32 %v2016_v39, %v1556_v53  ;;  %2307 = vmatmul.bf16.gmra.mxu2 %v8382_v17  ;;  %2396 = vmatmul.bf16.gmra.mxu3 %v8383_v32 }
 0x21f   : > { %v1934_v63 = vpop.f32.mrf.mxu0  ;;  %v2023_v46 = vpop.f32.mrf.mxu1 }
 0x221   : > { %v1507_v36 = vpop.f32.mrf.mxu2  ;;  %v1840_v29 = vpop.f32.mrf.mxu3 }
 0x222   : > { %2490 = vmatmul.bf16.gmra.mxu0 %v8384_v11  ;;  %v1508_v18 = vadd.f32 %v1507_v36, %v8385_v1  ;;  %v1930_v45 = vadd.f32 %v1929_v9, %v1840_v29  ;;  %v8387_v9 = vld [vmem:[#allocation63_spill] sm:$0xff] }
 0x223   : > { %v8391_v1 = vld [vmem:[#allocation79_spill] sm:$0xff] }
 0x224   : > { %v1557_v14 = vadd.f32 %v6742_v57, %v1508_v18  ;;  %v2019_v26 = vadd.f32 %v2018_v3, %v1930_v45 }
 0x226   : > { %v6925_v43 = vadd.f32 %v2019_v26, %v1557_v14 }
 0x227   : > { %v1936_v61 = vpop.f32.mrf.mxu0  ;;  %v2025_v30 = vpop.f32.mrf.mxu1 }
 0x229   : > { %v1509_v15 = vpop.f32.mrf.mxu2  ;;  %v1842_v10 = vpop.f32.mrf.mxu3 }
 0x22a   : > { %v1510_v7 = vadd.f32 %v1509_v15, %v8386_v38  ;;  %v1932_v34 = vadd.f32 %v1931_v21, %v1842_v10  ;;  %v8392_v15 = vld [vmem:[#allocation69_spill] sm:$0xff] }
 0x22c   : > { %v1558_v51 = vadd.f32 %v6742_v57, %v1510_v7  ;;  %v2021_v24 = vadd.f32 %v2020_v23, %v1932_v34  ;;  %v8394_v34 = vld [vmem:[#allocation83_spill] sm:$0xff] }
 0x22e   : > { %v6929_v33 = vadd.f32 %v2021_v24, %v1558_v51  ;;  %2312 = vmatmul.bf16.gmra.mxu2 %v8387_v9  ;;  %2401 = vmatmul.bf16.gmra.mxu3 %v8388_v19  ;;  %v8395_v51 = vld [vmem:[#allocation81_spill] sm:$0xff] }
 0x22f   : > { %v1939_v3 = vpop.f32.mrf.mxu0  ;;  %v2028_v36 = vpop.f32.mrf.mxu1 }
 0x231   : > { %v1512_v40 = vpop.f32.mrf.mxu2  ;;  %v1845_v20 = vpop.f32.mrf.mxu3 }
 0x232   : > { %2495 = vmatmul.bf16.gmra.mxu0 %v8389_v27  ;;  %v1513_v53 = vadd.f32 %v1512_v40, %v8390_v8  ;;  %v1935_v39 = vadd.f32 %v1934_v63, %v1845_v20  ;;  %v8393_v63 = vld [vmem:[#allocation70_spill] sm:$0xff]  ;;  %v5685_v20 = vld [vmem:[#allocation8] sm:$0xff] }
 0x233   : > { %3535 = vmatpush.bf16.msra.mxu1 %v5685_v20 }
 0x234   : > { %v1559_v21 = vadd.f32 %v6742_v57, %v1513_v53  ;;  %v2024_v17 = vadd.f32 %v2023_v46, %v1935_v39  ;;  %v8396_v53 = vld [vmem:[#allocation82_spill] sm:$0xff] }
 0x236   : > { %v6936_v32 = vadd.f32 %v2024_v17, %v1559_v21 }
 0x237   : > { %v1941_v23 = vpop.f32.mrf.mxu0  ;;  %v2030_v46 = vpop.f32.mrf.mxu1 }
 0x239   : > { %v1514_v29 = vpop.f32.mrf.mxu2  ;;  %v1847_v11 = vpop.f32.mrf.mxu3 }
 0x23a   : > { %v1515_v18 = vadd.f32 %v1514_v29, %v8391_v1  ;;  %v1937_v45 = vadd.f32 %v1936_v61, %v1847_v11 }
 0x23c   : > { %v1560_v14 = vadd.f32 %v6742_v57, %v1515_v18  ;;  %v2026_v26 = vadd.f32 %v2025_v30, %v1937_v45  ;;  %v8398_v18 = vld [vmem:[#allocation24_spill] sm:$0xff] }
 0x23e   : > { %v6940_v28 = vadd.f32 %v2026_v26, %v1560_v14  ;;  %2317 = vmatmul.bf16.gmra.mxu2 %v8392_v15  ;;  %2406 = vmatmul.bf16.gmra.mxu3 %v8393_v63  ;;  %v6956_v26 = vld [vmem:[#allocation2 + $0x10] sm:$0x3]  ;;  %v8399_v15 = vld [vmem:[#allocation84_spill] sm:$0xff] }
 0x23f   : > { %v1944_v10 = vpop.f32.mrf.mxu0  ;;  %v2033_v17 = vpop.f32.mrf.mxu1 }
 0x241   : > { %v1517_v38 = vpop.f32.mrf.mxu2  ;;  %v1850_v7 = vpop.f32.mrf.mxu3 }
 0x242   : > { %2500 = vmatmul.bf16.gmra.mxu0 %v8394_v34  ;;  %v1518_v24 = vadd.f32 %v1517_v38, %v8395_v51  ;;  %v1940_v9 = vadd.f32 %v1939_v3, %v1850_v7  ;;  %v8397_v3 = vld [vmem:[#allocation23_spill] sm:$0xff]  ;;  %v2758_v7 = vrot.slane %v6956_v26, 1 }
 0x243   : > { %v6959_v38 = vld [vmem:[#allocation2] sm:$0xff] }
 0x244   : > { %v1561_v61 = vadd.f32 %v6742_v57, %v1518_v24  ;;  %v2029_v19 = vadd.f32 %v2028_v36, %v1940_v9 }
 0x246   : > { %v6947_v40 = vadd.f32 %v2029_v19, %v1561_v61 }
 0x247   : > { %v1946_v30 = vpop.f32.mrf.mxu0  ;;  %v2035_v24 = vpop.f32.mrf.mxu1 }
 0x249   : > { %v1519_v27 = vpop.f32.mrf.mxu2  ;;  %v1852_v8 = vpop.f32.mrf.mxu3 }
 0x24a   : > { %v1520_v39 = vadd.f32 %v1519_v27, %v8396_v53  ;;  %v1942_v21 = vadd.f32 %v1941_v23, %v1852_v8 }
 0x24c   : > { %v1562_v29 = vadd.f32 %v6742_v57, %v1520_v39  ;;  %v2031_v11 = vadd.f32 %v2030_v46, %v1942_v21  ;;  %v6962_v46 = vrot.slane %v6959_v38, 1  ;;  %v8401_v21 = vld [vmem:[#allocation85_spill] sm:$0xff] }
 0x24e   : > { %v6951_v1 = vadd.f32 %v2031_v11, %v1562_v29  ;;  %2322 = vmatmul.bf16.gmra.mxu2 %v8397_v3  ;;  %2411 = vmatmul.bf16.gmra.mxu3 %v8398_v18  ;;  %v2759_v9 = vsel %vm490_vm0, %v6962_v46, %v2758_v7 }
 0x24f   : > { %v1949_v36 = vpop.f32.mrf.mxu0 }
 0x251   : > { %v1522_v45 = vpop.f32.mrf.mxu2  ;;  %v1855_v14 = vpop.f32.mrf.mxu3 }
 0x252   : > { %2505 = vmatmul.bf16.gmra.mxu0 %v6723_v49  ;;  %v1523_v63 = vadd.f32 %v1522_v45, %v8399_v15  ;;  %v1945_v23 = vadd.f32 %v1944_v10, %v1855_v14  ;;  %v6970_v49 = vpack.c.bf16 %v6962_v46, %v6959_v38  ;;  %v6973_v10 = vpack.c.bf16 %v2759_v9, %v6959_v38  ;;  %v8403_v45 = vld [vmem:[#allocation29_spill] sm:$0xff]  ;;  %v8404_v14 = vld [vmem:[#allocation30_spill] sm:$0xff]  ;;  %v2038_v15 = vpop.f32.mrf.mxu1 }
 0x254   : > { %v1563_v34 = vadd.f32 %v6742_v57, %v1523_v63  ;;  %v2034_v51 = vadd.f32 %v2033_v17, %v1945_v23  ;;  %v8243_v20 = vunpack.c.l.b16 %v6970_v49  ;;  %v3195_v27 = vunpack.c.l.b16 %v6973_v10 }
 0x256   : > { %v6975_v61 = vadd.f32 %v2034_v51, %v1563_v34  ;;  %v3288_v39 = vpack.c.b16 %v3195_v27, %v8243_v20  ;;  %v8405_v34 = vld [vmem:[#allocation86_spill] sm:$0xff]  ;;  %v5708_v27 = vld [vmem:[#allocation8 + $0xb8] sm:$0xff] }
 0x257   : > { %v1951_v19 = vpop.f32.mrf.mxu0  ;;  %3706 = vmatpush.bf16.msrb.mxu3 %v5708_v27  ;;  %v8423_v20 = vld [vmem:[#allocation68_spill] sm:$0xff] }
 0x258   : > { %8400 = vst [vmem:[#allocation66_spill] sm:$0xff] %v6975_v61  ;;  %3536 = vmatmul.bf16.vlgmr.msra.gmra.mxu1 %v3288_v39 }
 0x259   : > { %v1524_v8 = vpop.f32.mrf.mxu2  ;;  %v1857_v53 = vpop.f32.mrf.mxu3 }
 0x25a   : > { %v1525_v17 = vadd.f32 %v1524_v8, %v8401_v21  ;;  %v1947_v29 = vadd.f32 %v1946_v30, %v1857_v53  ;;  %v5700_v30 = vld [vmem:[#allocation8 + $0x78] sm:$0xff]  ;;  %v2040_v21 = vpop.f32.mrf.mxu1 }
 0x25b   : > { %3617 = vmatpush.bf16.msrb.mxu2 %v5700_v30 }
 0x25c   : > { %v1564_v11 = vadd.f32 %v6742_v57, %v1525_v17  ;;  %v2036_v3 = vadd.f32 %v2035_v24, %v1947_v29 }
 0x25e   : > { %v6983_v18 = vadd.f32 %v2036_v3, %v1564_v11  ;;  %2327 = vmatmul.bf16.gmra.mxu2 %v8403_v45  ;;  %2416 = vmatmul.bf16.gmra.mxu3 %v8404_v14  ;;  %v8407_v11 = vld [vmem:[#allocation87_spill] sm:$0xff]  ;;  %v5724_v14 = vld [vmem:[#allocation8 + $0x138] sm:$0xff] }
 0x25f   : > { %v2471_v63 = vpop.f32.mrf.mxu0  ;;  %4128 = vmatpush.bf16.msrb.mxu1 %v5724_v14 }
 0x260   : > { %8402 = vst [vmem:[#allocation74_spill] sm:$0xff] %v6983_v18  ;;  %v5695_v18 = vld [vmem:[#allocation8 + $0x50] sm:$0xff] }
 0x261   : > { %v1527_v23 = vpop.f32.mrf.mxu2  ;;  %v1860_v7 = vpop.f32.mrf.mxu3 }
 0x262   : > { %2510 = vmatmul.bf16.gmra.mxu0 %v6735_v2  ;;  %v1528_v51 = vadd.f32 %v1527_v23, %v8405_v34  ;;  %v1950_v9 = vadd.f32 %v1949_v36, %v1860_v7  ;;  %v5716_v2 = vld [vmem:[#allocation8 + $0xf8] sm:$0xff] }
 0x263   : > { %4039 = vmatpush.bf16.msrb.mxu0 %v5716_v2  ;;  %v5707_v2 = vld [vmem:[#allocation8 + $0xb0] sm:$0xff] }
 0x264   : > { %v1565_v8 = vadd.f32 %v6742_v57, %v1528_v51  ;;  %v2039_v24 = vadd.f32 %v2038_v15, %v1950_v9  ;;  %v8409_v15 = vld [vmem:[#allocation35_spill] sm:$0xff]  ;;  %3707 = vmatpush.bf16.msrb.mxu3 %v5707_v2  ;;  %v8411_v2 = vld [vmem:[#allocation42_spill] sm:$0xff] }
 0x266   : > { %v6990_v53 = vadd.f32 %v2039_v24, %v1565_v8 }
 0x267   : > { %v2473_v39 = vpop.f32.mrf.mxu0 }
 0x268   : > { %8406 = vst [vmem:[#allocation72_spill] sm:$0xff] %v6990_v53 }
 0x269   : > { %v1529_v17 = vpop.f32.mrf.mxu2  ;;  %v1862_v29 = vpop.f32.mrf.mxu3 }
 0x26a   : > { %v1530_v3 = vadd.f32 %v1529_v17, %v8407_v11  ;;  %v1952_v45 = vadd.f32 %v1951_v19, %v1862_v29 }
 0x26c   : > { %v1566_v36 = vadd.f32 %v6742_v57, %v1530_v3  ;;  %v2041_v23 = vadd.f32 %v2040_v21, %v1952_v45 }
 0x26e   : > { %v6994_v7 = vadd.f32 %v2041_v23, %v1566_v36  ;;  %2332 = vmatmul.bf16.gmra.mxu2 %v6361_v4  ;;  %2421 = vmatmul.bf16.gmra.mxu3 %v8409_v15 }
 0x26f   : > { %v2476_v34 = vpop.f32.mrf.mxu0 }
 0x270   : > { %8408 = vst [vmem:[#allocation73_spill] sm:$0xff] %v6994_v7  ;;  %v8427_v7 = vld [vmem:[#allocation65_spill] sm:$0xff] }
 0x271   : > { %v2293_v51 = vpop.f32.mrf.mxu2  ;;  %v2382_v9 = vpop.f32.mrf.mxu3 }
 0x272   : > { %2515 = vmatmul.bf16.gmra.mxu0 %v6754_v13  ;;  %v2383_v30 = vadd.f32 %v2382_v9, %v2293_v51 }
 0x274   : > { %v2472_v19 = vadd.f32 %v2471_v63, %v2383_v30  ;;  %v5699_v63 = vld [vmem:[#allocation8 + $0x70] sm:$0xff] }
 0x275   : > { %3618 = vmatpush.bf16.msrb.mxu2 %v5699_v63 }
 0x276   : > { %v2551_v27 = vadd.f32 %v2472_v19, %v6750_v6 }
 0x277   : > { %v2478_v8 = vpop.f32.mrf.mxu0 }
 0x278   : > { %v2583_v57 = vmax.f32 %v2551_v27, 0.0 }
 0x279   : > { %v2295_v24 = vpop.f32.mrf.mxu2  ;;  %v2384_v21 = vpop.f32.mrf.mxu3 }
 0x27a   : > { %2615 = vst [vmem:[#allocation2 + $0x19] sm:$0xff] %v2583_v57  ;;  %v2385_v17 = vadd.f32 %v2384_v21, %v2295_v24  ;;  %v5715_v57 = vld [vmem:[#allocation8 + $0xf0] sm:$0xff] }
 0x27b   : > { %v5723_v24 = vld [vmem:[#allocation8 + $0x130] sm:$0xff]  ;;  %4040 = vmatpush.bf16.msrb.mxu0 %v5715_v57 }
 0x27c   : > { %v2474_v29 = vadd.f32 %v2473_v39, %v2385_v17  ;;  %v8410_v39 = vld [vmem:[#allocation40_spill] sm:$0xff]  ;;  %4129 = vmatpush.bf16.msrb.mxu1 %v5723_v24  ;;  %v8413_v24 = vld [vmem:[#allocation47_spill] sm:$0xff] }
 0x27e   : > { %v2552_v4 = vadd.f32 %v2474_v29, %v6756_v54  ;;  %2337 = vmatmul.bf16.gmra.mxu2 %v8355_v37  ;;  %2426 = vmatmul.bf16.gmra.mxu3 %v8352_v31 }
 0x27f   : > { %v2481_v11 = vpop.f32.mrf.mxu0 }
 0x280   : > { %v2584_v3 = vmax.f32 %v2552_v4, 0.0 }
 0x281   : > { %v2298_v13 = vpop.f32.mrf.mxu2  ;;  %v2387_v45 = vpop.f32.mrf.mxu3  ;;  %v2650_v37 = vld [vmem:[#allocation2 + $0x18] sm:$0xff] }
 0x282   : > { %2520 = vmatmul.bf16.gmra.mxu0 %v6773_v22  ;;  %2616 = vst [vmem:[#allocation2 + $0x21] sm:$0xff] %v2584_v3  ;;  %v2388_v6 = vadd.f32 %v2387_v45, %v2298_v13  ;;  %v2760_v30 = vrot.slane %v2650_v37, 1  ;;  %v2886_v21 = vrot.slane %v2650_v37, 2 }
 0x284   : > { %v2477_v14 = vadd.f32 %v2476_v34, %v2388_v6 }
 0x286   : > { %v2553_v36 = vadd.f32 %v2477_v14, %v8410_v39  ;;  %v8412_v39 = vld [vmem:[#allocation51_spill] sm:$0xff] }
 0x287   : > { %v7005_v54 = vpop.f32.mrf.mxu0 }
 0x288   : > { %v2585_v23 = vmax.f32 %v2553_v36, 0.0 }
 0x289   : > { %v2300_v31 = vpop.f32.mrf.mxu2  ;;  %v2389_v15 = vpop.f32.mrf.mxu3  ;;  %v2651_v51 = vld [vmem:[#allocation2 + $0x20] sm:$0xff]  ;;  %v2652_v9 = vld [vmem:[#allocation2 + $0x28] sm:$0x3] }
 0x28a   : > { %2617 = vst [vmem:[#allocation2 + $0x31] sm:$0xff] %v2585_v23  ;;  %v2390_v22 = vadd.f32 %v2389_v15, %v2300_v31  ;;  %v2761_v19 = vrot.slane %v2651_v51, 1  ;;  %v2763_v27 = vrot.slane %v2652_v9, 1  ;;  %v2887_v34 = vrot.slane %v2651_v51, 2 }
 0x28b   : > { %v2889_v17 = vrot.slane %v2652_v9, 2 }
 0x28c   : > { %v2479_v29 = vadd.f32 %v2478_v8, %v2390_v22  ;;  %v2762_v4 = vsel %vm490_vm0, %v2760_v30, %v2761_v19  ;;  %v2764_v3 = vsel %vm490_vm0, %v2761_v19, %v2763_v27  ;;  %v2888_v6 = vsel %vm617_vm1, %v2886_v21, %v2887_v34 }
 0x28d   : > { %v3011_v13 = vpack.c.bf16 %v2762_v4, %v2650_v37  ;;  %v3013_v45 = vpack.c.bf16 %v2764_v3, %v2651_v51  ;;  %v2890_v63 = vsel %vm617_vm1, %v2887_v34, %v2889_v17  ;;  %v3012_v8 = vpack.c.bf16 %v2888_v6, %v2888_v6 }
 0x28e   : > { %v2554_v14 = vadd.f32 %v2479_v29, %v8411_v2  ;;  %2342 = vmatmul.bf16.gmra.mxu2 %v8363_v62  ;;  %2431 = vmatmul.bf16.gmra.mxu3 %v8412_v39  ;;  %v3014_v23 = vpack.c.bf16 %v2890_v63, %v2890_v63  ;;  %v8414_v29 = vld [vmem:[#allocation41_spill] sm:$0xff] }
 0x28f   : > { %v7014_v36 = vpop.f32.mrf.mxu0  ;;  %v3198_v31 = vunpack.c.l.b16 %v3011_v13  ;;  %v3201_v15 = vunpack.c.l.b16 %v3013_v45  ;;  %v3199_v9 = vunpack.c.h.b16 %v3011_v13  ;;  %v3202_v30 = vunpack.c.h.b16 %v3013_v45 }
 0x290   : > { %v2586_v37 = vmax.f32 %v2554_v14, 0.0  ;;  %v3200_v51 = vunpack.c.l.b16 %v3012_v8  ;;  %v3203_v22 = vunpack.c.l.b16 %v3014_v23 }
 0x291   : > { %v2303_v19 = vpop.f32.mrf.mxu2  ;;  %v2392_v27 = vpop.f32.mrf.mxu3  ;;  %v7016_v57 = vpack.c.b16 %v3201_v15, %v3198_v31  ;;  %v7019_v62 = vpack.c.b16 %v3202_v30, %v3199_v9  ;;  %v2653_v13 = vld [vmem:[#allocation2 + $0x30] sm:$0xff] }
 0x292   : > { %2525 = vmatmul.bf16.gmra.mxu0 %v8413_v24  ;;  %2618 = vst [vmem:[#allocation2 + $0x39] sm:$0xff] %v2586_v37  ;;  %v2393_v34 = vadd.f32 %v2392_v27, %v2303_v19  ;;  %v7021_v21 = vpack.c.b16 %v3203_v22, %v3200_v51  ;;  %v2765_v39 = vrot.slane %v2653_v13, 1  ;;  %v2891_v8 = vrot.slane %v2653_v13, 2 }
 0x293   : > { %3541 = vmatmul.bf16.gmra.mxu1 %v7016_v57 }
 0x294   : > { %v2482_v17 = vadd.f32 %v2481_v11, %v2393_v34 }
 0x296   : > { %v2555_v4 = vadd.f32 %v2482_v17, %v8414_v29  ;;  %v8415_v17 = vld [vmem:[#allocation48_spill] sm:$0xff] }
 0x297   : > { %v7025_v3 = vpop.f32.mrf.mxu0 }
 0x298   : > { %v2587_v45 = vmax.f32 %v2555_v4, 0.0  ;;  %v8416_v4 = vld [vmem:[#allocation61_spill] sm:$0xff] }
 0x299   : > { %v2305_v6 = vpop.f32.mrf.mxu2  ;;  %v2394_v63 = vpop.f32.mrf.mxu3  ;;  %v2654_v2 = vld [vmem:[#allocation2 + $0x38] sm:$0xff]  ;;  %v2655_v14 = vld [vmem:[#allocation2 + $0x40] sm:$0x3] }
 0x29a   : > { %2619 = vst [vmem:[#allocation2 + $0x49] sm:$0xff] %v2587_v45  ;;  %v2395_v23 = vadd.f32 %v2394_v63, %v2305_v6  ;;  %v2766_v31 = vrot.slane %v2654_v2, 1  ;;  %v2768_v15 = vrot.slane %v2655_v14, 1  ;;  %v2892_v9 = vrot.slane %v2654_v2, 2  ;;  %v8417_v45 = vld [vmem:[#allocation62_spill] sm:$0xff] }
 0x29b   : > { %v2894_v30 = vrot.slane %v2655_v14, 2 }
 0x29c   : > { %v2484_v11 = vadd.f32 %v7005_v54, %v2395_v23  ;;  %v2767_v37 = vsel %vm490_vm0, %v2765_v39, %v2766_v31  ;;  %v2769_v51 = vsel %vm490_vm0, %v2766_v31, %v2768_v15  ;;  %v2893_v22 = vsel %vm617_vm1, %v2891_v8, %v2892_v9 }
 0x29d   : > { %v3015_v19 = vpack.c.bf16 %v2767_v37, %v2653_v13  ;;  %v3017_v27 = vpack.c.bf16 %v2769_v51, %v2654_v2  ;;  %v2895_v24 = vsel %vm617_vm1, %v2892_v9, %v2894_v30  ;;  %v3016_v34 = vpack.c.bf16 %v2893_v22, %v2893_v22  ;;  %v5698_v37 = vld [vmem:[#allocation8 + $0x68] sm:$0xff] }
 0x29e   : > { %v2556_v29 = vadd.f32 %v2484_v11, %v8415_v17  ;;  %2347 = vmatmul.bf16.gmra.mxu2 %v8416_v4  ;;  %2436 = vmatmul.bf16.gmra.mxu3 %v8417_v45  ;;  %v3018_v54 = vpack.c.bf16 %v2895_v24, %v2895_v24  ;;  %v5706_v51 = vld [vmem:[#allocation8 + $0xa8] sm:$0xff] }
 0x29f   : > { %v7035_v6 = vpop.f32.mrf.mxu0  ;;  %v3204_v63 = vunpack.c.l.b16 %v3015_v19  ;;  %v3207_v14 = vunpack.c.l.b16 %v3017_v27  ;;  %v3205_v39 = vunpack.c.h.b16 %v3015_v19  ;;  %v3208_v23 = vunpack.c.h.b16 %v3017_v27  ;;  %3619 = vmatpush.bf16.msrb.mxu2 %v5698_v37  ;;  %3708 = vmatpush.bf16.msrb.mxu3 %v5706_v51  ;;  %v8420_v27 = vld [vmem:[#allocation49_spill] sm:$0xff] }
 0x2a0   : > { %v2588_v31 = vmax.f32 %v2556_v29, 0.0  ;;  %v3206_v8 = vunpack.c.l.b16 %v3016_v34  ;;  %v3209_v13 = vunpack.c.l.b16 %v3018_v54 }
 0x2a1   : > { %v2308_v2 = vpop.f32.mrf.mxu2  ;;  %v2397_v15 = vpop.f32.mrf.mxu3  ;;  %v7037_v9 = vpack.c.b16 %v3207_v14, %v3204_v63  ;;  %v7040_v30 = vpack.c.b16 %v3208_v23, %v3205_v39  ;;  %v2656_v17 = vld [vmem:[#allocation2 + $0x48] sm:$0xff] }
 0x2a2   : > { %2530 = vmatmul.bf16.gmra.mxu0 %v6817_v50  ;;  %2620 = vst [vmem:[#allocation2 + $0x51] sm:$0xff] %v2588_v31  ;;  %v2398_v11 = vadd.f32 %v2397_v15, %v2308_v2  ;;  %v7042_v22 = vpack.c.b16 %v3209_v13, %v3206_v8  ;;  %v2770_v63 = vrot.slane %v2656_v17, 1  ;;  %v5714_v31 = vld [vmem:[#allocation8 + $0xe8] sm:$0xff]  ;;  %v2896_v13 = vrot.slane %v2656_v17, 2 }
 0x2a3   : > { %8418 = vst [vmem:[#allocation55_spill] sm:$0xff] %v7037_v9  ;;  %3546 = vmatmul.bf16.gmra.mxu1 %v7037_v9  ;;  %v5722_v8 = vld [vmem:[#allocation8 + $0x128] sm:$0xff]  ;;  %4041 = vmatpush.bf16.msrb.mxu0 %v5714_v31 }
 0x2a4   : > { %8419 = vst [vmem:[#allocation56_spill] sm:$0xff] %v7042_v22  ;;  %v2487_v19 = vadd.f32 %v7014_v36, %v2398_v11  ;;  %4130 = vmatpush.bf16.msrb.mxu1 %v5722_v8 }
 0x2a6   : > { %v2557_v24 = vadd.f32 %v2487_v19, %v8420_v27 }
 0x2a7   : > { %v7047_v34 = vpop.f32.mrf.mxu0 }
 0x2a8   : > { %v2589_v50 = vmax.f32 %v2557_v24, 0.0 }
 0x2a9   : > { %v2310_v29 = vpop.f32.mrf.mxu2  ;;  %v2399_v4 = vpop.f32.mrf.mxu3  ;;  %v2657_v45 = vld [vmem:[#allocation2 + $0x50] sm:$0xff]  ;;  %v2658_v54 = vld [vmem:[#allocation2 + $0x58] sm:$0x3] }
 0x2aa   : > { %2621 = vst [vmem:[#allocation2 + $0x61] sm:$0xff] %v2589_v50  ;;  %v2400_v14 = vadd.f32 %v2399_v4, %v2310_v29  ;;  %v2771_v39 = vrot.slane %v2657_v45, 1  ;;  %v2773_v23 = vrot.slane %v2658_v54, 1  ;;  %v2897_v36 = vrot.slane %v2657_v45, 2  ;;  %v8421_v50 = vld [vmem:[#allocation59_spill] sm:$0xff] }
 0x2ab   : > { %v2899_v2 = vrot.slane %v2658_v54, 2  ;;  %v8422_v4 = vld [vmem:[#allocation67_spill] sm:$0xff] }
 0x2ac   : > { %v2489_v15 = vadd.f32 %v7025_v3, %v2400_v14  ;;  %v2772_v11 = vsel %vm490_vm0, %v2770_v63, %v2771_v39  ;;  %v2774_v37 = vsel %vm490_vm0, %v2771_v39, %v2773_v23  ;;  %v2898_v27 = vsel %vm617_vm1, %v2896_v13, %v2897_v36 }
 0x2ad   : > { %v3019_v51 = vpack.c.bf16 %v2772_v11, %v2656_v17  ;;  %v3021_v19 = vpack.c.bf16 %v2774_v37, %v2657_v45  ;;  %v2900_v24 = vsel %vm617_vm1, %v2897_v36, %v2899_v2  ;;  %v3020_v3 = vpack.c.bf16 %v2898_v27, %v2898_v27 }
 0x2ae   : > { %v2558_v29 = vadd.f32 %v2489_v15, %v8421_v50  ;;  %2352 = vmatmul.bf16.gmra.mxu2 %v8422_v4  ;;  %2441 = vmatmul.bf16.gmra.mxu3 %v8423_v20  ;;  %v3022_v63 = vpack.c.bf16 %v2900_v24, %v2900_v24 }
 0x2af   : > { %v7057_v54 = vpop.f32.mrf.mxu0  ;;  %v3210_v14 = vunpack.c.l.b16 %v3019_v51  ;;  %v3213_v39 = vunpack.c.l.b16 %v3021_v19  ;;  %v3211_v23 = vunpack.c.h.b16 %v3019_v51  ;;  %v3214_v31 = vunpack.c.h.b16 %v3021_v19  ;;  %v8426_v51 = vld [vmem:[#allocation60_spill] sm:$0xff] }
 0x2b0   : > { %v2590_v17 = vmax.f32 %v2558_v29, 0.0  ;;  %v3212_v45 = vunpack.c.l.b16 %v3020_v3  ;;  %v3215_v8 = vunpack.c.l.b16 %v3022_v63  ;;  %v5697_v63 = vld [vmem:[#allocation8 + $0x60] sm:$0xff] }
 0x2b1   : > { %v2313_v13 = vpop.f32.mrf.mxu2  ;;  %v2402_v11 = vpop.f32.mrf.mxu3  ;;  %v7059_v36 = vpack.c.b16 %v3213_v39, %v3210_v14  ;;  %v7062_v2 = vpack.c.b16 %v3214_v31, %v3211_v23  ;;  %v2659_v24 = vld [vmem:[#allocation2 + $0x60] sm:$0xff]  ;;  %3620 = vmatpush.bf16.msrb.mxu2 %v5697_v63  ;;  %v5712_v63 = vld [vmem:[#allocation8 + $0xd8] sm:$0xff] }
 0x2b2   : > { %2535 = vmatmul.bf16.gmra.mxu0 %v6838_v58  ;;  %2622 = vst [vmem:[#allocation2 + $0x69] sm:$0xff] %v2590_v17  ;;  %v2403_v20 = vadd.f32 %v2402_v11, %v2313_v13  ;;  %v7064_v15 = vpack.c.b16 %v3215_v8, %v3212_v45  ;;  %v2775_v39 = vrot.slane %v2659_v24, 1  ;;  %v5705_v17 = vld [vmem:[#allocation8 + $0xa0] sm:$0xff]  ;;  %v2901_v8 = vrot.slane %v2659_v24, 2 }
 0x2b3   : > { %8424 = vst [vmem:[#allocation77_spill] sm:$0xff] %v7059_v36  ;;  %3551 = vmatmul.bf16.gmra.mxu1 %v7059_v36  ;;  %v5713_v45 = vld [vmem:[#allocation8 + $0xe0] sm:$0xff]  ;;  %3709 = vmatpush.bf16.msrb.mxu3 %v5705_v17 }
 0x2b4   : > { %8425 = vst [vmem:[#allocation75_spill] sm:$0xff] %v7064_v15  ;;  %v2492_v37 = vadd.f32 %v7035_v6, %v2403_v20  ;;  %v7071_v6 = vld [vmem:[#allocation2 + $0x1a8] sm:$0x3]  ;;  %4042 = vmatpush.bf16.msrb.mxu0 %v5713_v45 }
 0x2b6   : > { %v2559_v19 = vadd.f32 %v2492_v37, %v8426_v51 }
 0x2b7   : > { %v7069_v27 = vpop.f32.mrf.mxu0 }
 0x2b8   : > { %v2591_v50 = vmax.f32 %v2559_v19, 0.0  ;;  %4043 = vmatpush.bf16.msrb.mxu0 %v5712_v63 }
 0x2b9   : > { %v2315_v29 = vpop.f32.mrf.mxu2  ;;  %v2404_v4 = vpop.f32.mrf.mxu3  ;;  %v2660_v3 = vld [vmem:[#allocation2 + $0x68] sm:$0xff]  ;;  %v2661_v58 = vld [vmem:[#allocation2 + $0x70] sm:$0x3] }
 0x2ba   : > { %2623 = vst [vmem:[#allocation2 + $0x79] sm:$0xff] %v2591_v50  ;;  %v2405_v14 = vadd.f32 %v2404_v4, %v2315_v29  ;;  %v2776_v23 = vrot.slane %v2660_v3, 1  ;;  %v2778_v31 = vrot.slane %v2661_v58, 1  ;;  %v2902_v37 = vrot.slane %v2660_v3, 2  ;;  %v5696_v29 = vld [vmem:[#allocation8 + $0x58] sm:$0xff] }
 0x2bb   : > { %v7077_v50 = vrot.slane %v6959_v38, 2  ;;  %v5704_v4 = vld [vmem:[#allocation8 + $0x98] sm:$0xff]  ;;  %3621 = vmatpush.bf16.msrb.mxu2 %v5696_v29 }
 0x2bc   : > { %v2494_v13 = vadd.f32 %v7047_v34, %v2405_v14  ;;  %v2777_v11 = vsel %vm490_vm0, %v2775_v39, %v2776_v23  ;;  %v2779_v20 = vsel %vm490_vm0, %v2776_v23, %v2778_v31  ;;  %v8428_v34 = vld [vmem:[#allocation71_spill] sm:$0xff]  ;;  %v706_v39 = vrot.slane %v7071_v6, 2  ;;  %3710 = vmatpush.bf16.msrb.mxu3 %v5704_v4 }
 0x2bd   : > { %v3023_v51 = vpack.c.bf16 %v2777_v11, %v2659_v24  ;;  %v3025_v19 = vpack.c.bf16 %v2779_v20, %v2660_v3  ;;  %v2903_v23 = vsel %vm617_vm1, %v2901_v8, %v2902_v37  ;;  %v2904_v24 = vrot.slane %v2661_v58, 2  ;;  %v5703_v8 = vld [vmem:[#allocation8 + $0x90] sm:$0xff] }
 0x2be   : > { %v2560_v53 = vadd.f32 %v2494_v13, %v8427_v7  ;;  %2357 = vmatmul.bf16.gmra.mxu2 %v6580_v41  ;;  %2446 = vmatmul.bf16.gmra.mxu3 %v8428_v34  ;;  %v3024_v41 = vpack.c.bf16 %v2903_v23, %v2903_v23  ;;  %v5694_v23 = vld [vmem:[#allocation8 + $0x48] sm:$0xff] }
 0x2bf   : > { %v7082_v14 = vpop.f32.mrf.mxu0  ;;  %v3216_v3 = vunpack.c.l.b16 %v3023_v51  ;;  %v3219_v31 = vunpack.c.l.b16 %v3025_v19  ;;  %v3217_v17 = vunpack.c.h.b16 %v3023_v51  ;;  %v3220_v45 = vunpack.c.h.b16 %v3025_v19  ;;  %v5711_v19 = vld [vmem:[#allocation8 + $0xd0] sm:$0xff]  ;;  %3622 = vmatpush.bf16.msrb.mxu2 %v5695_v18 }
 0x2c0   : > { %v2592_v11 = vmax.f32 %v2560_v53, 0.0  ;;  %v2905_v7 = vsel %vm617_vm1, %v2902_v37, %v2904_v24  ;;  %v707_v53 = vsel %vm617_vm1, %v7077_v50, %v706_v39  ;;  %v3218_v29 = vunpack.c.l.b16 %v3024_v41  ;;  %3711 = vmatpush.bf16.msrb.mxu3 %v5703_v8  ;;  %4044 = vmatpush.bf16.msrb.mxu0 %v5711_v19  ;;  %v5702_v24 = vld [vmem:[#allocation8 + $0x88] sm:$0xff] }
 0x2c1   : > { %v2318_v13 = vpop.f32.mrf.mxu2  ;;  %v2407_v20 = vpop.f32.mrf.mxu3  ;;  %v7087_v34 = vpack.c.b16 %v3219_v31, %v3216_v3  ;;  %v7090_v58 = vpack.c.b16 %v3220_v45, %v3217_v17  ;;  %v3026_v61 = vpack.c.bf16 %v2905_v7, %v2905_v7  ;;  %v815_v63 = vpack.c.bf16 %v707_v53, %v707_v53  ;;  %v5710_v3 = vld [vmem:[#allocation8 + $0xc8] sm:$0xff] }
 0x2c2   : > { %2540 = vmatmul.bf16.gmra.mxu0 %v6858_v12  ;;  %2624 = vst [vmem:[#allocation2 + $0x81] sm:$0xff] %v2592_v11  ;;  %v2408_v51 = vadd.f32 %v2407_v20, %v2318_v13  ;;  %v813_v12 = vpack.c.bf16 %v7077_v50, %v7077_v50  ;;  %v2662_v45 = vld [vmem:[#allocation2 + $0x78] sm:$0xff]  ;;  %v579_v13 = vrot.slane %v7071_v6, 1 }
 0x2c3   : > { %8429 = vst [vmem:[#allocation76_spill] sm:$0xff] %v7087_v34  ;;  %3556 = vmatmul.bf16.gmra.mxu1 %v7087_v34  ;;  %v3221_v37 = vunpack.c.l.b16 %v3026_v61  ;;  %3623 = vmatpush.bf16.msrb.mxu2 %v5694_v23  ;;  %v2780_v41 = vrot.slane %v2662_v45, 1  ;;  %v2133_v8 = vunpack.c.l.b16 %v815_v63 }
 0x2c4   : > { %v2497_v4 = vadd.f32 %v7057_v54, %v2408_v51  ;;  %3712 = vmatpush.bf16.msrb.mxu3 %v5702_v24  ;;  %4045 = vmatpush.bf16.msrb.mxu0 %v5710_v3  ;;  %v7104_v20 = vunpack.c.l.b16 %v813_v12  ;;  %v5693_v51 = vld [vmem:[#allocation8 + $0x40] sm:$0xff]  ;;  %v2906_v12 = vrot.slane %v2662_v45, 2 }
 0x2c5   : > { %v7098_v31 = vpack.c.b16 %v3221_v37, %v3218_v29  ;;  %v5721_v29 = vld [vmem:[#allocation8 + $0x120] sm:$0xff] }
 0x2c6   : > { %v2561_v39 = vadd.f32 %v2497_v4, %v6852_v16  ;;  %v5701_v37 = vld [vmem:[#allocation8 + $0x80] sm:$0xff]  ;;  %4131 = vmatpush.bf16.msrb.mxu1 %v5721_v29 }
 0x2c7   : > { %8430 = vst [vmem:[#allocation63_spill] sm:$0xff] %v7098_v31  ;;  %v7101_v17 = vpop.f32.mrf.mxu0  ;;  %v5709_v4 = vld [vmem:[#allocation8 + $0xc0] sm:$0xff]  ;;  %3624 = vmatpush.bf16.msrb.mxu2 %v5693_v51 }
 0x2c8   : > { %v2593_v61 = vmax.f32 %v2561_v39, 0.0  ;;  %3713 = vmatpush.bf16.msrb.mxu3 %v5701_v37  ;;  %4046 = vmatpush.bf16.msrb.mxu0 %v5709_v4 }
 0x2c9   : > { %v2320_v18 = vpop.f32.mrf.mxu2  ;;  %v2409_v54 = vpop.f32.mrf.mxu3  ;;  %v2663_v11 = vld [vmem:[#allocation2 + $0x80] sm:$0xff]  ;;  %v2664_v7 = vld [vmem:[#allocation2 + $0x88] sm:$0x3] }
 0x2ca   : > { %2625 = vst [vmem:[#allocation2 + $0x91] sm:$0xff] %v2593_v61  ;;  %v2410_v16 = vadd.f32 %v2409_v54, %v2320_v18  ;;  %v2781_v53 = vrot.slane %v2663_v11, 1  ;;  %v2783_v19 = vrot.slane %v2664_v7, 1  ;;  %v2907_v23 = vrot.slane %v2663_v11, 2 }
 0x2cb   : > { %v2909_v24 = vrot.slane %v2664_v7, 2  ;;  %v580_v18 = vsel %vm490_vm0, %v6962_v46, %v579_v13  ;;  %v2136_v54 = vpack.c.b16 %v2133_v8, %v7104_v20 }
 0x2cc   : > { %v2499_v3 = vadd.f32 %v7069_v27, %v2410_v16  ;;  %v2782_v39 = vsel %vm490_vm0, %v2780_v41, %v2781_v53  ;;  %v2784_v6 = vsel %vm490_vm0, %v2781_v53, %v2783_v19  ;;  %v2908_v7 = vsel %vm617_vm1, %v2906_v12, %v2907_v23 }
 0x2cd   : > { %v3027_v63 = vpack.c.bf16 %v2782_v39, %v2662_v45  ;;  %v3029_v61 = vpack.c.bf16 %v2784_v6, %v2663_v11  ;;  %v2910_v41 = vsel %vm617_vm1, %v2907_v23, %v2909_v24  ;;  %v814_v13 = vpack.c.bf16 %v580_v18, %v6959_v38 }
 0x2ce   : > { %v2562_v51 = vadd.f32 %v2499_v3, %v6860_v59  ;;  %2362 = vmatmul.bf16.gmra.mxu2 %v6871_v25  ;;  %2451 = vmatmul.bf16.gmra.mxu3 %v6856_v48  ;;  %v3028_v8 = vpack.c.bf16 %v2908_v7, %v2908_v7  ;;  %v3030_v19 = vpack.c.bf16 %v2910_v41, %v2910_v41  ;;  %v2129_v38 = vunpack.c.h.b16 %v6970_v49 }
 0x2cf   : > { %v7115_v27 = vpop.f32.mrf.mxu0  ;;  %v3222_v45 = vunpack.c.l.b16 %v3027_v63  ;;  %v3225_v11 = vunpack.c.l.b16 %v3029_v61  ;;  %v3223_v16 = vunpack.c.h.b16 %v3027_v63  ;;  %v3226_v53 = vunpack.c.h.b16 %v3029_v61 }
 0x2d0   : > { %v2594_v46 = vmax.f32 %v2562_v51, 0.0  ;;  %v3224_v4 = vunpack.c.l.b16 %v3028_v8  ;;  %v3227_v23 = vunpack.c.l.b16 %v3030_v19  ;;  %v2131_v3 = vunpack.c.l.b16 %v814_v13 }
 0x2d1   : > { %v2323_v59 = vpop.f32.mrf.mxu2  ;;  %v2412_v29 = vpop.f32.mrf.mxu3  ;;  %v7120_v25 = vpack.c.b16 %v3225_v11, %v3222_v45  ;;  %v7122_v48 = vpack.c.b16 %v3226_v53, %v3223_v16  ;;  %v2132_v6 = vunpack.c.h.b16 %v814_v13  ;;  %v2665_v61 = vld [vmem:[#allocation2 + $0x90] sm:$0xff]  ;;  %v2884_v53 = vrot.slane %v6956_v26, 2 }
 0x2d2   : > { %2545 = vmatmul.bf16.gmra.mxu0 %v2136_v54  ;;  %2626 = vst [vmem:[#allocation2 + $0x99] sm:$0xff] %v2594_v46  ;;  %v2413_v37 = vadd.f32 %v2412_v29, %v2323_v59  ;;  %v7126_v39 = vpack.c.b16 %v3227_v23, %v3224_v4  ;;  %v8433_v54 = vunpack.c.l.b16 %v6970_v49  ;;  %v2785_v16 = vrot.slane %v2665_v61, 1 }
 0x2d3   : > { %8431 = vst [vmem:[#allocation64_spill] sm:$0xff] %v7120_v25  ;;  %3561 = vmatmul.bf16.gmra.mxu1 %v7120_v25  ;;  %v2135_v45 = vpack.c.b16 %v2132_v6, %v2129_v38  ;;  %v2911_v46 = vrot.slane %v2665_v61, 2 }
 0x2d4   : > { %v2502_v24 = vadd.f32 %v7082_v14, %v2413_v37  ;;  %8432 = vst [vmem:[#allocation80_spill] sm:$0xff] %v7126_v39  ;;  %v2134_v51 = vpack.c.b16 %v2131_v3, %v8433_v54 }
 0x2d6   : > { %v2563_v12 = vadd.f32 %v2502_v24, %v6868_v56 }
 0x2d7   : > { %v7130_v63 = vpop.f32.mrf.mxu0 }
 0x2d8   : > { %v2595_v18 = vmax.f32 %v2563_v12, 0.0 }
 0x2d9   : > { %v2325_v7 = vpop.f32.mrf.mxu2  ;;  %v2414_v41 = vpop.f32.mrf.mxu3  ;;  %v2666_v11 = vld [vmem:[#allocation2 + $0x98] sm:$0xff]  ;;  %v2667_v14 = vld [vmem:[#allocation2 + $0xa0] sm:$0x3] }
 0x2da   : > { %2627 = vst [vmem:[#allocation2 + $0xa9] sm:$0xff] %v2595_v18  ;;  %v2415_v13 = vadd.f32 %v2414_v41, %v2325_v7  ;;  %v2786_v8 = vrot.slane %v2666_v11, 1  ;;  %v2788_v56 = vrot.slane %v2667_v14, 1  ;;  %v2912_v19 = vrot.slane %v2666_v11, 2 }
 0x2db   : > { %v2914_v59 = vrot.slane %v2667_v14, 2 }
 0x2dc   : > { %v2504_v29 = vadd.f32 %v7101_v17, %v2415_v13  ;;  %v2787_v49 = vsel %vm490_vm0, %v2785_v16, %v2786_v8  ;;  %v2789_v37 = vsel %vm490_vm0, %v2786_v8, %v2788_v56  ;;  %v2913_v4 = vsel %vm617_vm1, %v2911_v46, %v2912_v19 }
 0x2dd   : > { %v3031_v23 = vpack.c.bf16 %v2787_v49, %v2665_v61  ;;  %v3033_v24 = vpack.c.bf16 %v2789_v37, %v2666_v11  ;;  %v2915_v3 = vsel %vm617_vm1, %v2912_v19, %v2914_v59  ;;  %v3032_v26 = vpack.c.bf16 %v2913_v4, %v2913_v4 }
 0x2de   : > { %v2564_v6 = vadd.f32 %v2504_v29, %v6874_v60  ;;  %2367 = vmatmul.bf16.gmra.mxu2 %v2134_v51  ;;  %2456 = vmatmul.bf16.gmra.mxu3 %v2135_v45  ;;  %v2885_v17 = vsel %vm617_vm1, %v7077_v50, %v2884_v53  ;;  %v3034_v18 = vpack.c.bf16 %v2915_v3, %v2915_v3  ;;  %v3196_v56 = vunpack.c.h.b16 %v6973_v10 }
 0x2df   : > { %v7141_v12 = vpop.f32.mrf.mxu0  ;;  %v3228_v54 = vunpack.c.l.b16 %v3031_v23  ;;  %v3231_v7 = vunpack.c.l.b16 %v3033_v24  ;;  %v3229_v41 = vunpack.c.h.b16 %v3031_v23  ;;  %v3232_v14 = vunpack.c.h.b16 %v3033_v24 }
 0x2e0   : > { %v2596_v16 = vmax.f32 %v2564_v6, 0.0  ;;  %v3230_v61 = vunpack.c.l.b16 %v3032_v26  ;;  %v3233_v11 = vunpack.c.l.b16 %v3034_v18  ;;  %v3010_v60 = vpack.c.bf16 %v2885_v17, %v2885_v17 }
 0x2e1   : > { %v2328_v46 = vpop.f32.mrf.mxu2  ;;  %v2417_v13 = vpop.f32.mrf.mxu3  ;;  %v7145_v8 = vpack.c.b16 %v3231_v7, %v3228_v54  ;;  %v7148_v51 = vpack.c.b16 %v3232_v14, %v3229_v41  ;;  %v2668_v49 = vld [vmem:[#allocation2 + $0xa8] sm:$0xff]  ;;  %v3289_v23 = vpack.c.b16 %v3196_v56, %v2129_v38 }
 0x2e2   : > { %4047 = vmatmul.bf16.vlgmr.msrb.gmra.mxu0 %v7016_v57  ;;  %2628 = vst [vmem:[#allocation2 + $0xb1] sm:$0xff] %v2596_v16  ;;  %v2418_v45 = vadd.f32 %v2417_v13, %v2328_v46  ;;  %v7150_v50 = vpack.c.b16 %v3233_v11, %v3230_v61  ;;  %v3197_v19 = vunpack.c.l.b16 %v3010_v60  ;;  %v2790_v6 = vrot.slane %v2668_v49, 1  ;;  %v5720_v54 = vld [vmem:[#allocation8 + $0x118] sm:$0xff] }
 0x2e3   : > { %8434 = vst [vmem:[#allocation78_spill] sm:$0xff] %v7145_v8  ;;  %3566 = vmatmul.bf16.gmra.mxu1 %v7145_v8  ;;  %v2916_v17 = vrot.slane %v2668_v49, 2 }
 0x2e4   : > { %8435 = vst [vmem:[#allocation79_spill] sm:$0xff] %v7150_v50  ;;  %v2507_v53 = vadd.f32 %v7115_v27, %v2418_v45  ;;  %v3290_v24 = vpack.c.b16 %v3197_v19, %v7104_v20  ;;  %4132 = vmatpush.bf16.msrb.mxu1 %v5720_v54 }
 0x2e6   : > { %v2565_v59 = vadd.f32 %v2507_v53, %v6881_v52 }
 0x2e7   : > { %v7156_v29 = vpop.f32.mrf.mxu0 }
 0x2e8   : > { %v2597_v37 = vmax.f32 %v2565_v59, 0.0 }
 0x2e9   : > { %v2330_v57 = vpop.f32.mrf.mxu2  ;;  %v2419_v4 = vpop.f32.mrf.mxu3  ;;  %v2669_v3 = vld [vmem:[#allocation2 + $0xb0] sm:$0xff]  ;;  %v2670_v26 = vld [vmem:[#allocation2 + $0xb8] sm:$0x3] }
 0x2ea   : > { %2629 = vst [vmem:[#allocation2 + $0xc1] sm:$0xff] %v2597_v37  ;;  %v2420_v27 = vadd.f32 %v2419_v4, %v2330_v57  ;;  %v2791_v18 = vrot.slane %v2669_v3, 1  ;;  %v2793_v10 = vrot.slane %v2670_v26, 1  ;;  %v2917_v7 = vrot.slane %v2669_v3, 2 }
 0x2eb   : > { %v2919_v52 = vrot.slane %v2670_v26, 2 }
 0x2ec   : > { %v2509_v41 = vadd.f32 %v7130_v63, %v2420_v27  ;;  %v2792_v14 = vsel %vm490_vm0, %v2790_v6, %v2791_v18  ;;  %v2794_v16 = vsel %vm490_vm0, %v2791_v18, %v2793_v10  ;;  %v2918_v20 = vsel %vm617_vm1, %v2916_v17, %v2917_v7 }
 0x2ed   : > { %v3035_v38 = vpack.c.bf16 %v2792_v14, %v2668_v49  ;;  %v3037_v61 = vpack.c.bf16 %v2794_v16, %v2669_v3  ;;  %v2920_v11 = vsel %vm617_vm1, %v2917_v7, %v2919_v52  ;;  %v3036_v46 = vpack.c.bf16 %v2918_v20, %v2918_v20 }
 0x2ee   : > { %v2566_v13 = vadd.f32 %v2509_v41, %v6885_v55  ;;  %3625 = vmatmul.bf16.vlgmr.msrb.gmra.mxu2 %v3289_v23  ;;  %3714 = vmatmul.bf16.vlgmr.msrb.gmra.mxu3 %v3290_v24  ;;  %v3038_v45 = vpack.c.bf16 %v2920_v11, %v2920_v11 }
 0x2ef   : > { %v7165_v60 = vpop.f32.mrf.mxu0  ;;  %v3234_v63 = vunpack.c.l.b16 %v3035_v38  ;;  %v3237_v53 = vunpack.c.l.b16 %v3037_v61  ;;  %v3235_v56 = vunpack.c.h.b16 %v3035_v38  ;;  %v3238_v19 = vunpack.c.h.b16 %v3037_v61 }
 0x2f0   : > { %v2598_v59 = vmax.f32 %v2566_v13, 0.0  ;;  %v3236_v37 = vunpack.c.l.b16 %v3036_v46  ;;  %v3239_v57 = vunpack.c.l.b16 %v3038_v45 }
 0x2f1   : > { %v2333_v4 = vpop.f32.mrf.mxu2  ;;  %v2422_v49 = vpop.f32.mrf.mxu3  ;;  %v7167_v3 = vpack.c.b16 %v3237_v53, %v3234_v63  ;;  %v7170_v26 = vpack.c.b16 %v3238_v19, %v3235_v56  ;;  %v2671_v27 = vld [vmem:[#allocation2 + $0xc0] sm:$0xff] }
 0x2f2   : > { %4052 = vmatmul.bf16.gmra.mxu0 %v7037_v9  ;;  %2630 = vst [vmem:[#allocation2 + $0xc9] sm:$0xff] %v2598_v59  ;;  %v2423_v55 = vadd.f32 %v2422_v49, %v2333_v4  ;;  %v7172_v23 = vpack.c.b16 %v3239_v57, %v3236_v37  ;;  %v2795_v41 = vrot.slane %v2671_v27, 1  ;;  %v2921_v14 = vrot.slane %v2671_v27, 2  ;;  %v7184_v19 = vpop.f32.mrf.mxu1  ;;  %v8450_v9 = vld [vmem:[#allocation73_spill] sm:$0xff] }
 0x2f3   : > { %8436 = vst [vmem:[#allocation69_spill] sm:$0xff] %v7167_v3  ;;  %3571 = vmatmul.bf16.gmra.mxu1 %v7167_v3 }
 0x2f4   : > { %8437 = vst [vmem:[#allocation70_spill] sm:$0xff] %v7172_v23  ;;  %v2512_v24 = vadd.f32 %v7141_v12, %v2423_v55 }
 0x2f6   : > { %v2567_v6 = vadd.f32 %v2512_v24, %v6892_v47 }
 0x2f7   : > { %v7177_v17 = vpop.f32.mrf.mxu0 }
 0x2f8   : > { %v2599_v18 = vmax.f32 %v2567_v6, 0.0 }
 0x2f9   : > { %v2335_v10 = vpop.f32.mrf.mxu2  ;;  %v2424_v54 = vpop.f32.mrf.mxu3  ;;  %v2672_v7 = vld [vmem:[#allocation2 + $0xc8] sm:$0xff]  ;;  %v2673_v52 = vld [vmem:[#allocation2 + $0xd0] sm:$0x3] }
 0x2fa   : > { %2631 = vst [vmem:[#allocation2 + $0xd9] sm:$0xff] %v2599_v18  ;;  %v2425_v16 = vadd.f32 %v2424_v54, %v2335_v10  ;;  %v2796_v20 = vrot.slane %v2672_v7, 1  ;;  %v2798_v38 = vrot.slane %v2673_v52, 1  ;;  %v2922_v61 = vrot.slane %v2672_v7, 2 }
 0x2fb   : > { %v2924_v11 = vrot.slane %v2673_v52, 2 }
 0x2fc   : > { %v2514_v12 = vadd.f32 %v7156_v29, %v2425_v16  ;;  %v2797_v47 = vsel %vm490_vm0, %v2795_v41, %v2796_v20  ;;  %v2799_v46 = vsel %vm490_vm0, %v2796_v20, %v2798_v38  ;;  %v2923_v13 = vsel %vm617_vm1, %v2921_v14, %v2922_v61  ;;  %v7203_v38 = vpop.f32.mrf.mxu1 }
 0x2fd   : > { %v3039_v45 = vpack.c.bf16 %v2797_v47, %v2671_v27  ;;  %v3041_v63 = vpack.c.bf16 %v2799_v46, %v2672_v7  ;;  %v2925_v53 = vsel %vm617_vm1, %v2922_v61, %v2924_v11  ;;  %v3040_v56 = vpack.c.bf16 %v2923_v13, %v2923_v13 }
 0x2fe   : > { %v2568_v59 = vadd.f32 %v2514_v12, %v6896_v0  ;;  %3630 = vmatmul.bf16.gmra.mxu2 %v7019_v62  ;;  %3719 = vmatmul.bf16.gmra.mxu3 %v7021_v21  ;;  %v3042_v37 = vpack.c.bf16 %v2925_v53, %v2925_v53 }
 0x2ff   : > { %v7189_v29 = vpop.f32.mrf.mxu0  ;;  %v3240_v57 = vunpack.c.l.b16 %v3039_v45  ;;  %v3243_v4 = vunpack.c.l.b16 %v3041_v63  ;;  %v3241_v49 = vunpack.c.h.b16 %v3039_v45  ;;  %v3244_v55 = vunpack.c.h.b16 %v3041_v63 }
 0x300   : > { %v2600_v24 = vmax.f32 %v2568_v59, 0.0  ;;  %v3242_v6 = vunpack.c.l.b16 %v3040_v56  ;;  %v3245_v27 = vunpack.c.l.b16 %v3042_v37  ;;  %v5719_v59 = vld [vmem:[#allocation8 + $0x110] sm:$0xff] }
 0x301   : > { %v2338_v18 = vpop.f32.mrf.mxu2  ;;  %v2427_v10 = vpop.f32.mrf.mxu3  ;;  %v7191_v54 = vpack.c.b16 %v3243_v4, %v3240_v57  ;;  %v7194_v0 = vpack.c.b16 %v3244_v55, %v3241_v49  ;;  %v2674_v20 = vld [vmem:[#allocation2 + $0xd8] sm:$0xff]  ;;  %4133 = vmatpush.bf16.msrb.mxu1 %v5719_v59 }
 0x302   : > { %4057 = vmatmul.bf16.gmra.mxu0 %v7059_v36  ;;  %2632 = vst [vmem:[#allocation2 + $0xe1] sm:$0xff] %v2600_v24  ;;  %v2428_v7 = vadd.f32 %v2427_v10, %v2338_v18  ;;  %v7196_v52 = vpack.c.b16 %v3245_v27, %v3242_v6  ;;  %v2800_v13 = vrot.slane %v2674_v20, 1  ;;  %v2926_v45 = vrot.slane %v2674_v20, 2 }
 0x303   : > { %8438 = vst [vmem:[#allocation83_spill] sm:$0xff] %v7191_v54  ;;  %3576 = vmatmul.bf16.gmra.mxu1 %v7191_v54 }
 0x304   : > { %8439 = vst [vmem:[#allocation81_spill] sm:$0xff] %v7196_v52  ;;  %v2517_v41 = vadd.f32 %v7165_v60, %v2428_v7 }
 0x306   : > { %v2569_v14 = vadd.f32 %v2517_v41, %v6903_v44 }
 0x307   : > { %v7201_v16 = vpop.f32.mrf.mxu0 }
 0x308   : > { %v2601_v61 = vmax.f32 %v2569_v14, 0.0 }
 0x309   : > { %v2340_v11 = vpop.f32.mrf.mxu2  ;;  %v2429_v12 = vpop.f32.mrf.mxu3  ;;  %v2675_v47 = vld [vmem:[#allocation2 + $0xe0] sm:$0xff]  ;;  %v2676_v46 = vld [vmem:[#allocation2 + $0xe8] sm:$0x3] }
 0x30a   : > { %2633 = vst [vmem:[#allocation2 + $0xf1] sm:$0xff] %v2601_v61  ;;  %v2430_v63 = vadd.f32 %v2429_v12, %v2340_v11  ;;  %v2801_v53 = vrot.slane %v2675_v47, 1  ;;  %v2803_v56 = vrot.slane %v2676_v46, 1  ;;  %v2927_v60 = vrot.slane %v2675_v47, 2 }
 0x30b   : > { %v2929_v37 = vrot.slane %v2676_v46, 2 }
 0x30c   : > { %v2519_v44 = vadd.f32 %v7177_v17, %v2430_v63  ;;  %v2802_v57 = vsel %vm490_vm0, %v2800_v13, %v2801_v53  ;;  %v2804_v4 = vsel %vm490_vm0, %v2801_v53, %v2803_v56  ;;  %v2928_v49 = vsel %vm617_vm1, %v2926_v45, %v2927_v60 }
 0x30d   : > { %v3043_v55 = vpack.c.bf16 %v2802_v57, %v2674_v20  ;;  %v3045_v24 = vpack.c.bf16 %v2804_v4, %v2675_v47  ;;  %v2930_v6 = vsel %vm617_vm1, %v2927_v60, %v2929_v37  ;;  %v3044_v27 = vpack.c.bf16 %v2928_v49, %v2928_v49 }
 0x30e   : > { %v2570_v18 = vadd.f32 %v2519_v44, %v6907_v42  ;;  %3635 = vmatmul.bf16.gmra.mxu2 %v7040_v30  ;;  %3724 = vmatmul.bf16.gmra.mxu3 %v7042_v22  ;;  %v3046_v17 = vpack.c.bf16 %v2930_v6, %v2930_v6  ;;  %v8445_v22 = vld [vmem:[#allocation74_spill] sm:$0xff] }
 0x30f   : > { %v7213_v10 = vpop.f32.mrf.mxu0  ;;  %v3246_v7 = vunpack.c.l.b16 %v3043_v55  ;;  %v3249_v41 = vunpack.c.l.b16 %v3045_v24  ;;  %v3247_v14 = vunpack.c.h.b16 %v3043_v55  ;;  %v3250_v61 = vunpack.c.h.b16 %v3045_v24 }
 0x310   : > { %v2602_v11 = vmax.f32 %v2570_v18, 0.0  ;;  %v7215_v12 = vpop.f32.mrf.mxu1  ;;  %v3248_v20 = vunpack.c.l.b16 %v3044_v27  ;;  %v3251_v47 = vunpack.c.l.b16 %v3046_v17 }
 0x311   : > { %v2343_v46 = vpop.f32.mrf.mxu2  ;;  %v2432_v13 = vpop.f32.mrf.mxu3  ;;  %v7217_v45 = vpack.c.b16 %v3249_v41, %v3246_v7  ;;  %v7220_v42 = vpack.c.b16 %v3250_v61, %v3247_v14  ;;  %v2677_v37 = vld [vmem:[#allocation2 + $0xf0] sm:$0xff] }
 0x312   : > { %4062 = vmatmul.bf16.gmra.mxu0 %v7087_v34  ;;  %2634 = vst [vmem:[#allocation2 + $0xf9] sm:$0xff] %v2602_v11  ;;  %v2433_v63 = vadd.f32 %v2432_v13, %v2343_v46  ;;  %v7222_v53 = vpack.c.b16 %v3251_v47, %v3248_v20  ;;  %v2805_v6 = vrot.slane %v2677_v37, 1  ;;  %v2931_v27 = vrot.slane %v2677_v37, 2 }
 0x313   : > { %8440 = vst [vmem:[#allocation82_spill] sm:$0xff] %v7217_v45  ;;  %3581 = vmatmul.bf16.gmra.mxu1 %v7217_v45 }
 0x314   : > { %8441 = vst [vmem:[#allocation23_spill] sm:$0xff] %v7222_v53  ;;  %v2522_v56 = vadd.f32 %v7189_v29, %v2433_v63 }
 0x316   : > { %v2571_v59 = vadd.f32 %v2522_v56, %v6914_v5 }
 0x317   : > { %v7227_v60 = vpop.f32.mrf.mxu0 }
 0x318   : > { %v2603_v44 = vmax.f32 %v2571_v59, 0.0  ;;  %v7229_v57 = vpop.f32.mrf.mxu1 }
 0x319   : > { %v2345_v4 = vpop.f32.mrf.mxu2  ;;  %v2434_v49 = vpop.f32.mrf.mxu3  ;;  %v2678_v55 = vld [vmem:[#allocation2 + $0xf8] sm:$0xff]  ;;  %v2679_v24 = vld [vmem:[#allocation2 + $0x100] sm:$0x3] }
 0x31a   : > { %2635 = vst [vmem:[#allocation2 + $0x109] sm:$0xff] %v2603_v44  ;;  %v2435_v18 = vadd.f32 %v2434_v49, %v2345_v4  ;;  %v2806_v17 = vrot.slane %v2678_v55, 1  ;;  %v2808_v7 = vrot.slane %v2679_v24, 1  ;;  %v2932_v41 = vrot.slane %v2678_v55, 2 }
 0x31b   : > { %v2934_v29 = vrot.slane %v2679_v24, 2 }
 0x31c   : > { %v2524_v5 = vadd.f32 %v7201_v16, %v2435_v18  ;;  %v2807_v14 = vsel %vm490_vm0, %v2805_v6, %v2806_v17  ;;  %v2809_v61 = vsel %vm490_vm0, %v2806_v17, %v2808_v7  ;;  %v2933_v11 = vsel %vm617_vm1, %v2931_v27, %v2932_v41 }
 0x31d   : > { %v3047_v20 = vpack.c.bf16 %v2807_v14, %v2677_v37  ;;  %v3049_v47 = vpack.c.bf16 %v2809_v61, %v2678_v55  ;;  %v2935_v46 = vsel %vm617_vm1, %v2932_v41, %v2934_v29  ;;  %v3048_v13 = vpack.c.bf16 %v2933_v11, %v2933_v11 }
 0x31e   : > { %v2572_v63 = vadd.f32 %v2524_v5, %v6918_v35  ;;  %3640 = vmatmul.bf16.gmra.mxu2 %v7062_v2  ;;  %3729 = vmatmul.bf16.gmra.mxu3 %v7064_v15  ;;  %v3050_v16 = vpack.c.bf16 %v2935_v46, %v2935_v46 }
 0x31f   : > { %v7239_v56 = vpop.f32.mrf.mxu0  ;;  %v3252_v59 = vunpack.c.l.b16 %v3047_v20  ;;  %v3255_v44 = vunpack.c.l.b16 %v3049_v47  ;;  %v3253_v4 = vunpack.c.h.b16 %v3047_v20  ;;  %v3256_v49 = vunpack.c.h.b16 %v3049_v47 }
 0x320   : > { %v2604_v24 = vmax.f32 %v2572_v63, 0.0  ;;  %v7241_v6 = vpop.f32.mrf.mxu1  ;;  %v3254_v37 = vunpack.c.l.b16 %v3048_v13  ;;  %v3257_v55 = vunpack.c.l.b16 %v3050_v16 }
 0x321   : > { %v2348_v27 = vpop.f32.mrf.mxu2  ;;  %v2437_v18 = vpop.f32.mrf.mxu3  ;;  %v7243_v17 = vpack.c.b16 %v3255_v44, %v3252_v59  ;;  %v7246_v35 = vpack.c.b16 %v3256_v49, %v3253_v4  ;;  %v2680_v61 = vld [vmem:[#allocation2 + $0x108] sm:$0xff] }
 0x322   : > { %4067 = vmatmul.bf16.gmra.mxu0 %v7120_v25  ;;  %2636 = vst [vmem:[#allocation2 + $0x111] sm:$0xff] %v2604_v24  ;;  %v2438_v7 = vadd.f32 %v2437_v18, %v2348_v27  ;;  %v7248_v41 = vpack.c.b16 %v3257_v55, %v3254_v37  ;;  %v2810_v16 = vrot.slane %v2680_v61, 1  ;;  %v2936_v59 = vrot.slane %v2680_v61, 2  ;;  %v5718_v24 = vld [vmem:[#allocation8 + $0x108] sm:$0xff] }
 0x323   : > { %8442 = vst [vmem:[#allocation24_spill] sm:$0xff] %v7243_v17  ;;  %3586 = vmatmul.bf16.gmra.mxu1 %v7243_v17 }
 0x324   : > { %v2527_v29 = vadd.f32 %v7213_v10, %v2438_v7  ;;  %4134 = vmatpush.bf16.msrb.mxu1 %v5718_v24 }
 0x326   : > { %v2573_v5 = vadd.f32 %v2527_v29, %v6925_v43 }
 0x327   : > { %v7253_v14 = vpop.f32.mrf.mxu0 }
 0x328   : > { %v2605_v11 = vmax.f32 %v2573_v5, 0.0  ;;  %v7255_v20 = vpop.f32.mrf.mxu1 }
 0x329   : > { %v2350_v47 = vpop.f32.mrf.mxu2  ;;  %v2439_v46 = vpop.f32.mrf.mxu3  ;;  %v2681_v13 = vld [vmem:[#allocation2 + $0x110] sm:$0xff]  ;;  %v2682_v63 = vld [vmem:[#allocation2 + $0x118] sm:$0x3] }
 0x32a   : > { %2637 = vst [vmem:[#allocation2 + $0x121] sm:$0xff] %v2605_v11  ;;  %v2440_v44 = vadd.f32 %v2439_v46, %v2350_v47  ;;  %v2811_v4 = vrot.slane %v2681_v13, 1  ;;  %v2813_v49 = vrot.slane %v2682_v63, 1  ;;  %v2937_v10 = vrot.slane %v2681_v13, 2 }
 0x32b   : > { %v2939_v37 = vrot.slane %v2682_v63, 2 }
 0x32c   : > { %v2529_v43 = vadd.f32 %v7227_v60, %v2440_v44  ;;  %v2812_v55 = vsel %vm490_vm0, %v2810_v16, %v2811_v4  ;;  %v2814_v27 = vsel %vm490_vm0, %v2811_v4, %v2813_v49  ;;  %v2938_v18 = vsel %vm617_vm1, %v2936_v59, %v2937_v10 }
 0x32d   : > { %v3051_v7 = vpack.c.bf16 %v2812_v55, %v2680_v61  ;;  %v3053_v29 = vpack.c.bf16 %v2814_v27, %v2681_v13  ;;  %v2940_v5 = vsel %vm617_vm1, %v2937_v10, %v2939_v37  ;;  %v3052_v11 = vpack.c.bf16 %v2938_v18, %v2938_v18 }
 0x32e   : > { %v2574_v47 = vadd.f32 %v2529_v43, %v6929_v33  ;;  %3645 = vmatmul.bf16.gmra.mxu2 %v7090_v58  ;;  %3734 = vmatmul.bf16.gmra.mxu3 %v7098_v31  ;;  %v3054_v60 = vpack.c.bf16 %v2940_v5, %v2940_v5 }
 0x32f   : > { %v7265_v46 = vpop.f32.mrf.mxu0  ;;  %v3258_v63 = vunpack.c.l.b16 %v3051_v7  ;;  %v3261_v16 = vunpack.c.l.b16 %v3053_v29  ;;  %v3259_v44 = vunpack.c.h.b16 %v3051_v7  ;;  %v3262_v4 = vunpack.c.h.b16 %v3053_v29 }
 0x330   : > { %v2606_v49 = vmax.f32 %v2574_v47, 0.0  ;;  %v7267_v59 = vpop.f32.mrf.mxu1  ;;  %v3260_v61 = vunpack.c.l.b16 %v3052_v11  ;;  %v3263_v13 = vunpack.c.l.b16 %v3054_v60 }
 0x331   : > { %v2353_v24 = vpop.f32.mrf.mxu2  ;;  %v2442_v10 = vpop.f32.mrf.mxu3  ;;  %v7269_v37 = vpack.c.b16 %v3261_v16, %v3258_v63  ;;  %v7272_v33 = vpack.c.b16 %v3262_v4, %v3259_v44  ;;  %v2683_v29 = vld [vmem:[#allocation2 + $0x120] sm:$0xff] }
 0x332   : > { %4072 = vmatmul.bf16.gmra.mxu0 %v7145_v8  ;;  %2638 = vst [vmem:[#allocation2 + $0x129] sm:$0xff] %v2606_v49  ;;  %v2443_v43 = vadd.f32 %v2442_v10, %v2353_v24  ;;  %v7274_v55 = vpack.c.b16 %v3263_v13, %v3260_v61  ;;  %v2815_v44 = vrot.slane %v2683_v29, 1  ;;  %v2941_v4 = vrot.slane %v2683_v29, 2 }
 0x333   : > { %3591 = vmatmul.bf16.gmra.mxu1 %v7269_v37 }
 0x334   : > { %v2532_v27 = vadd.f32 %v7239_v56, %v2443_v43 }
 0x336   : > { %v2575_v18 = vadd.f32 %v2532_v27, %v6936_v32 }
 0x337   : > { %v7279_v7 = vpop.f32.mrf.mxu0 }
 0x338   : > { %v2607_v5 = vmax.f32 %v2575_v18, 0.0  ;;  %v7281_v11 = vpop.f32.mrf.mxu1 }
 0x339   : > { %v2355_v47 = vpop.f32.mrf.mxu2  ;;  %v2444_v60 = vpop.f32.mrf.mxu3  ;;  %v2684_v63 = vld [vmem:[#allocation2 + $0x128] sm:$0xff]  ;;  %v2685_v16 = vld [vmem:[#allocation2 + $0x130] sm:$0x3] }
 0x33a   : > { %2639 = vst [vmem:[#allocation2 + $0x139] sm:$0xff] %v2607_v5  ;;  %v2445_v49 = vadd.f32 %v2444_v60, %v2355_v47  ;;  %v2816_v61 = vrot.slane %v2684_v63, 1  ;;  %v2818_v13 = vrot.slane %v2685_v16, 1  ;;  %v2942_v24 = vrot.slane %v2684_v63, 2 }
 0x33b   : > { %v2944_v56 = vrot.slane %v2685_v16, 2 }
 0x33c   : > { %v2534_v32 = vadd.f32 %v7253_v14, %v2445_v49  ;;  %v2817_v10 = vsel %vm490_vm0, %v2815_v44, %v2816_v61  ;;  %v2819_v43 = vsel %vm490_vm0, %v2816_v61, %v2818_v13  ;;  %v2943_v27 = vsel %vm617_vm1, %v2941_v4, %v2942_v24 }
 0x33d   : > { %v3055_v18 = vpack.c.bf16 %v2817_v10, %v2683_v29  ;;  %v3057_v8 = vpack.c.bf16 %v2819_v43, %v2684_v63  ;;  %v2945_v25 = vsel %vm617_vm1, %v2942_v24, %v2944_v56  ;;  %v3056_v31 = vpack.c.bf16 %v2943_v27, %v2943_v27 }
 0x33e   : > { %v2576_v5 = vadd.f32 %v2534_v32, %v6940_v28  ;;  %3650 = vmatmul.bf16.gmra.mxu2 %v7122_v48  ;;  %3739 = vmatmul.bf16.gmra.mxu3 %v7126_v39  ;;  %v3058_v14 = vpack.c.bf16 %v2945_v25, %v2945_v25 }
 0x33f   : > { %v7291_v47 = vpop.f32.mrf.mxu0  ;;  %v3264_v60 = vunpack.c.l.b16 %v3055_v18  ;;  %v3267_v16 = vunpack.c.l.b16 %v3057_v8  ;;  %v3265_v44 = vunpack.c.h.b16 %v3055_v18  ;;  %v3268_v49 = vunpack.c.h.b16 %v3057_v8 }
 0x340   : > { %v2608_v61 = vmax.f32 %v2576_v5, 0.0  ;;  %v7293_v4 = vpop.f32.mrf.mxu1  ;;  %v3266_v29 = vunpack.c.l.b16 %v3056_v31  ;;  %v3269_v63 = vunpack.c.l.b16 %v3058_v14 }
 0x341   : > { %v2358_v13 = vpop.f32.mrf.mxu2  ;;  %v2447_v24 = vpop.f32.mrf.mxu3  ;;  %v7295_v56 = vpack.c.b16 %v3267_v16, %v3264_v60  ;;  %v7298_v28 = vpack.c.b16 %v3268_v49, %v3265_v44  ;;  %v2686_v43 = vld [vmem:[#allocation2 + $0x138] sm:$0xff] }
 0x342   : > { %4077 = vmatmul.bf16.gmra.mxu0 %v7167_v3  ;;  %2640 = vst [vmem:[#allocation2 + $0x141] sm:$0xff] %v2608_v61  ;;  %v2448_v32 = vadd.f32 %v2447_v24, %v2358_v13  ;;  %v7300_v25 = vpack.c.b16 %v3269_v63, %v3266_v29  ;;  %v2820_v44 = vrot.slane %v2686_v43, 1  ;;  %v2946_v49 = vrot.slane %v2686_v43, 2  ;;  %v5717_v13 = vld [vmem:[#allocation8 + $0x100] sm:$0xff] }
 0x343   : > { %3596 = vmatmul.bf16.gmra.mxu1 %v7295_v56 }
 0x344   : > { %v2537_v8 = vadd.f32 %v7265_v46, %v2448_v32  ;;  %4135 = vmatpush.bf16.msrb.mxu1 %v5717_v13 }
 0x346   : > { %v2577_v10 = vadd.f32 %v2537_v8, %v6947_v40 }
 0x347   : > { %v7305_v31 = vpop.f32.mrf.mxu0 }
 0x348   : > { %v2609_v27 = vmax.f32 %v2577_v10, 0.0  ;;  %v7307_v18 = vpop.f32.mrf.mxu1 }
 0x349   : > { %v2360_v5 = vpop.f32.mrf.mxu2  ;;  %v2449_v14 = vpop.f32.mrf.mxu3  ;;  %v2687_v60 = vld [vmem:[#allocation2 + $0x140] sm:$0xff]  ;;  %v2688_v16 = vld [vmem:[#allocation2 + $0x148] sm:$0x3] }
 0x34a   : > { %2641 = vst [vmem:[#allocation2 + $0x151] sm:$0xff] %v2609_v27  ;;  %v2450_v61 = vadd.f32 %v2449_v14, %v2360_v5  ;;  %v2821_v29 = vrot.slane %v2687_v60, 1  ;;  %v2823_v63 = vrot.slane %v2688_v16, 1  ;;  %v2947_v46 = vrot.slane %v2687_v60, 2 }
 0x34b   : > { %v2949_v24 = vrot.slane %v2688_v16, 2 }
 0x34c   : > { %v2539_v40 = vadd.f32 %v7279_v7, %v2450_v61  ;;  %v2822_v32 = vsel %vm490_vm0, %v2820_v44, %v2821_v29  ;;  %v2824_v8 = vsel %vm490_vm0, %v2821_v29, %v2823_v63  ;;  %v2948_v10 = vsel %vm617_vm1, %v2946_v49, %v2947_v46 }
 0x34d   : > { %v3059_v3 = vpack.c.bf16 %v2822_v32, %v2686_v43  ;;  %v3061_v39 = vpack.c.bf16 %v2824_v8, %v2687_v60  ;;  %v2950_v34 = vsel %vm617_vm1, %v2947_v46, %v2949_v24  ;;  %v3060_v27 = vpack.c.bf16 %v2948_v10, %v2948_v10 }
 0x34e   : > { %v2578_v5 = vadd.f32 %v2539_v40, %v6951_v1  ;;  %3655 = vmatmul.bf16.gmra.mxu2 %v7148_v51  ;;  %3744 = vmatmul.bf16.gmra.mxu3 %v7150_v50  ;;  %v3062_v7 = vpack.c.bf16 %v2950_v34, %v2950_v34 }
 0x34f   : > { %v7317_v14 = vpop.f32.mrf.mxu0  ;;  %v3270_v16 = vunpack.c.l.b16 %v3059_v3  ;;  %v3273_v44 = vunpack.c.l.b16 %v3061_v39  ;;  %v3271_v61 = vunpack.c.h.b16 %v3059_v3  ;;  %v3274_v29 = vunpack.c.h.b16 %v3061_v39  ;;  %v8444_v3 = vld [vmem:[#allocation66_spill] sm:$0xff] }
 0x350   : > { %v2610_v63 = vmax.f32 %v2578_v5, 0.0  ;;  %v7319_v49 = vpop.f32.mrf.mxu1  ;;  %v3272_v43 = vunpack.c.l.b16 %v3060_v27  ;;  %v3275_v60 = vunpack.c.l.b16 %v3062_v7 }
 0x351   : > { %v2363_v13 = vpop.f32.mrf.mxu2  ;;  %v2452_v46 = vpop.f32.mrf.mxu3  ;;  %v7321_v24 = vpack.c.b16 %v3273_v44, %v3270_v16  ;;  %v7324_v1 = vpack.c.b16 %v3274_v29, %v3271_v61  ;;  %v2689_v10 = vld [vmem:[#allocation2 + $0x150] sm:$0xff] }
 0x352   : > { %4082 = vmatmul.bf16.gmra.mxu0 %v7191_v54  ;;  %2642 = vst [vmem:[#allocation2 + $0x159] sm:$0xff] %v2610_v63  ;;  %v2453_v40 = vadd.f32 %v2452_v46, %v2363_v13  ;;  %v7326_v34 = vpack.c.b16 %v3275_v60, %v3272_v43  ;;  %v2825_v29 = vrot.slane %v2689_v10, 1  ;;  %v2951_v63 = vrot.slane %v2689_v10, 2 }
 0x353   : > { %8443 = vst [vmem:[#allocation84_spill] sm:$0xff] %v7321_v24  ;;  %3601 = vmatmul.bf16.gmra.mxu1 %v7321_v24 }
 0x354   : > { %v2542_v39 = vadd.f32 %v7291_v47, %v2453_v40 }
 0x356   : > { %v2579_v32 = vadd.f32 %v2542_v39, %v8444_v3 }
 0x357   : > { %v7331_v8 = vpop.f32.mrf.mxu0 }
 0x358   : > { %v2611_v27 = vmax.f32 %v2579_v32, 0.0  ;;  %v7333_v5 = vpop.f32.mrf.mxu1 }
 0x359   : > { %v2365_v7 = vpop.f32.mrf.mxu2  ;;  %v2454_v16 = vpop.f32.mrf.mxu3  ;;  %v2690_v44 = vld [vmem:[#allocation2 + $0x158] sm:$0xff]  ;;  %v2691_v61 = vld [vmem:[#allocation2 + $0x160] sm:$0x3] }
 0x35a   : > { %2643 = vst [vmem:[#allocation2 + $0x169] sm:$0xff] %v2611_v27  ;;  %v2455_v43 = vadd.f32 %v2454_v16, %v2365_v7  ;;  %v2826_v60 = vrot.slane %v2690_v44, 1  ;;  %v2828_v13 = vrot.slane %v2691_v61, 1  ;;  %v2952_v46 = vrot.slane %v2690_v44, 2  ;;  %v5740_v16 = vld [vmem:[#allocation8 + $0x1b8] sm:$0xff] }
 0x35b   : > { %v2954_v47 = vrot.slane %v2691_v61, 2  ;;  %4547 = vmatpush.bf16.msra.mxu3 %v5740_v16  ;;  %v5756_v16 = vld [vmem:[#allocation8 + $0x238] sm:$0xff] }
 0x35c   : > { %v2544_v40 = vadd.f32 %v7305_v31, %v2455_v43  ;;  %v2827_v39 = vsel %vm490_vm0, %v2825_v29, %v2826_v60  ;;  %v2829_v3 = vsel %vm490_vm0, %v2826_v60, %v2828_v13  ;;  %v2953_v32 = vsel %vm617_vm1, %v2951_v63, %v2952_v46  ;;  %v5732_v31 = vld [vmem:[#allocation8 + $0x178] sm:$0xff]  ;;  %4725 = vmatpush.bf16.msra.mxu1 %v5756_v16 }
 0x35d   : > { %v3063_v54 = vpack.c.bf16 %v2827_v39, %v2689_v10  ;;  %v3065_v50 = vpack.c.bf16 %v2829_v3, %v2690_v44  ;;  %v2955_v15 = vsel %vm617_vm1, %v2952_v46, %v2954_v47  ;;  %v3064_v36 = vpack.c.bf16 %v2953_v32, %v2953_v32  ;;  %4217 = vmatpush.bf16.msra.mxu2 %v5732_v31  ;;  %v5748_v31 = vld [vmem:[#allocation8 + $0x1f8] sm:$0xff] }
 0x35e   : > { %v2580_v27 = vadd.f32 %v2544_v40, %v8445_v22  ;;  %3660 = vmatmul.bf16.gmra.mxu2 %v7170_v26  ;;  %3749 = vmatmul.bf16.gmra.mxu3 %v7172_v23  ;;  %v3066_v61 = vpack.c.bf16 %v2955_v15, %v2955_v15 }
 0x35f   : > { %v7343_v7 = vpop.f32.mrf.mxu0  ;;  %v3276_v29 = vunpack.c.l.b16 %v3063_v54  ;;  %v3279_v43 = vunpack.c.l.b16 %v3065_v50  ;;  %v3277_v60 = vunpack.c.h.b16 %v3063_v54  ;;  %v3280_v63 = vunpack.c.h.b16 %v3065_v50  ;;  %v8448_v54 = vld [vmem:[#allocation72_spill] sm:$0xff]  ;;  %4636 = vmatpush.bf16.msra.mxu0 %v5748_v31 }
 0x360   : > { %8446 = vst [vmem:[#allocation85_spill] sm:$0xff] %v7343_v7  ;;  %v2612_v10 = vmax.f32 %v2580_v27, 0.0  ;;  %v7345_v44 = vpop.f32.mrf.mxu1  ;;  %v3278_v13 = vunpack.c.l.b16 %v3064_v36  ;;  %v3281_v22 = vunpack.c.l.b16 %v3066_v61 }
 0x361   : > { %v2368_v46 = vpop.f32.mrf.mxu2  ;;  %v2457_v47 = vpop.f32.mrf.mxu3  ;;  %v7347_v40 = vpack.c.b16 %v3279_v43, %v3276_v29  ;;  %v7350_v39 = vpack.c.b16 %v3280_v63, %v3277_v60  ;;  %v2692_v36 = vld [vmem:[#allocation2 + $0x168] sm:$0xff] }
 0x362   : > { %4087 = vmatmul.bf16.gmra.mxu0 %v7217_v45  ;;  %2644 = vst [vmem:[#allocation2 + $0x171] sm:$0xff] %v2612_v10  ;;  %v2458_v15 = vadd.f32 %v2457_v47, %v2368_v46  ;;  %v7352_v3 = vpack.c.b16 %v3281_v22, %v3278_v13  ;;  %v2830_v13 = vrot.slane %v2692_v36, 1  ;;  %v2956_v22 = vrot.slane %v2692_v36, 2 }
 0x363   : > { %8447 = vst [vmem:[#allocation29_spill] sm:$0xff] %v7347_v40  ;;  %3606 = vmatmul.bf16.gmra.mxu1 %v7347_v40 }
 0x364   : > { %v2547_v50 = vadd.f32 %v7317_v14, %v2458_v15 }
 0x366   : > { %v2581_v32 = vadd.f32 %v2547_v50, %v8448_v54 }
 0x367   : > { %v7357_v27 = vpop.f32.mrf.mxu0 }
 0x368   : > { %8449 = vst [vmem:[#allocation30_spill] sm:$0xff] %v7357_v27  ;;  %v2613_v61 = vmax.f32 %v2581_v32, 0.0  ;;  %v7359_v29 = vpop.f32.mrf.mxu1 }
 0x369   : > { %v2370_v43 = vpop.f32.mrf.mxu2  ;;  %v2459_v60 = vpop.f32.mrf.mxu3  ;;  %v2693_v63 = vld [vmem:[#allocation2 + $0x170] sm:$0xff]  ;;  %v2694_v10 = vld [vmem:[#allocation2 + $0x178] sm:$0x3] }
 0x36a   : > { %2645 = vst [vmem:[#allocation2 + $0x181] sm:$0xff] %v2613_v61  ;;  %v2460_v14 = vadd.f32 %v2459_v60, %v2370_v43  ;;  %v2831_v46 = vrot.slane %v2693_v63, 1  ;;  %v2833_v47 = vrot.slane %v2694_v10, 1  ;;  %v2957_v15 = vrot.slane %v2693_v63, 2 }
 0x36b   : > { %v2959_v50 = vrot.slane %v2694_v10, 2 }
 0x36c   : > { %v2549_v54 = vadd.f32 %v7331_v8, %v2460_v14  ;;  %v2832_v32 = vsel %vm490_vm0, %v2830_v13, %v2831_v46  ;;  %v2834_v27 = vsel %vm490_vm0, %v2831_v46, %v2833_v47  ;;  %v2958_v31 = vsel %vm617_vm1, %v2956_v22, %v2957_v15 }
 0x36d   : > { %v3067_v16 = vpack.c.bf16 %v2832_v32, %v2692_v36  ;;  %v3069_v7 = vpack.c.bf16 %v2834_v27, %v2693_v63  ;;  %v2960_v45 = vsel %vm617_vm1, %v2957_v15, %v2959_v50  ;;  %v3068_v23 = vpack.c.bf16 %v2958_v31, %v2958_v31 }
 0x36e   : > { %v2582_v61 = vadd.f32 %v2549_v54, %v8450_v9  ;;  %3665 = vmatmul.bf16.gmra.mxu2 %v7194_v0  ;;  %3754 = vmatmul.bf16.gmra.mxu3 %v7196_v52  ;;  %v3070_v8 = vpack.c.bf16 %v2960_v45, %v2960_v45 }
 0x36f   : > { %v7369_v43 = vpop.f32.mrf.mxu0  ;;  %v3282_v60 = vunpack.c.l.b16 %v3067_v16  ;;  %v3285_v10 = vunpack.c.l.b16 %v3069_v7  ;;  %v3283_v13 = vunpack.c.h.b16 %v3067_v16  ;;  %v3286_v14 = vunpack.c.h.b16 %v3069_v7 }
 0x370   : > { %8451 = vst [vmem:[#allocation86_spill] sm:$0xff] %v7369_v43  ;;  %v2614_v46 = vmax.f32 %v2582_v61, 0.0  ;;  %v7371_v22 = vpop.f32.mrf.mxu1  ;;  %v3284_v36 = vunpack.c.l.b16 %v3068_v23  ;;  %v3287_v27 = vunpack.c.l.b16 %v3070_v8 }
 0x371   : > { %v3626_v63 = vpop.f32.mrf.mxu2  ;;  %v3715_v47 = vpop.f32.mrf.mxu3  ;;  %v7373_v15 = vpack.c.b16 %v3285_v10, %v3282_v60  ;;  %v7376_v9 = vpack.c.b16 %v3286_v14, %v3283_v13  ;;  %v2695_v23 = vld [vmem:[#allocation2 + $0x180] sm:$0xff] }
 0x372   : > { %4092 = vmatmul.bf16.gmra.mxu0 %v7243_v17  ;;  %2646 = vst [vmem:[#allocation2 + $0x189] sm:$0xff] %v2614_v46  ;;  %v3627_v45 = vadd.f32 %v3626_v63, %v7184_v19  ;;  %v7379_v50 = vpack.c.b16 %v3287_v27, %v3284_v36  ;;  %v2835_v60 = vrot.slane %v2695_v23, 1  ;;  %v2961_v10 = vrot.slane %v2695_v23, 2 }
 0x373   : > { %8452 = vst [vmem:[#allocation87_spill] sm:$0xff] %v7373_v15  ;;  %3611 = vmatmul.bf16.gmra.mxu1 %v7373_v15 }
 0x374   : > { %v7382_v7 = vadd.f32 %v3715_v47, %v3627_v45 }
 0x376   : > { %8453 = vst [vmem:[#allocation35_spill] sm:$0xff] %v7382_v7 }
 0x377   : > { %v7384_v54 = vpop.f32.mrf.mxu0 }
 0x378   : > { %8454 = vst [vmem:[#allocation40_spill] sm:$0xff] %v7384_v54  ;;  %v7386_v32 = vpop.f32.mrf.mxu1 }
 0x379   : > { %v3628_v31 = vpop.f32.mrf.mxu2  ;;  %v3717_v16 = vpop.f32.mrf.mxu3  ;;  %v2696_v61 = vld [vmem:[#allocation2 + $0x188] sm:$0xff]  ;;  %v2697_v8 = vld [vmem:[#allocation2 + $0x190] sm:$0x3] }
 0x37a   : > { %v3629_v13 = vadd.f32 %v3628_v31, %v7203_v38  ;;  %v2836_v19 = vrot.slane %v2696_v61, 1  ;;  %v2838_v14 = vrot.slane %v2697_v8, 1  ;;  %v2962_v46 = vrot.slane %v2696_v61, 2  ;;  %v5731_v31 = vld [vmem:[#allocation8 + $0x170] sm:$0xff] }
 0x37b   : > { %v2964_v36 = vrot.slane %v2697_v8, 2  ;;  %4218 = vmatpush.bf16.msra.mxu2 %v5731_v31  ;;  %v5755_v31 = vld [vmem:[#allocation8 + $0x230] sm:$0xff] }
 0x37c   : > { %v7389_v27 = vadd.f32 %v3717_v16, %v3629_v13  ;;  %v2837_v63 = vsel %vm490_vm0, %v2835_v60, %v2836_v19  ;;  %v2839_v47 = vsel %vm490_vm0, %v2836_v19, %v2838_v14  ;;  %v2963_v45 = vsel %vm617_vm1, %v2961_v10, %v2962_v46  ;;  %v5739_v16 = vld [vmem:[#allocation8 + $0x1b0] sm:$0xff]  ;;  %4726 = vmatpush.bf16.msra.mxu1 %v5755_v31 }
 0x37d   : > { %v7394_v54 = vpack.c.bf16 %v2837_v63, %v2695_v23  ;;  %v7396_v43 = vpack.c.bf16 %v2839_v47, %v2696_v61  ;;  %v2965_v7 = vsel %vm617_vm1, %v2962_v46, %v2964_v36  ;;  %v3072_v17 = vpack.c.bf16 %v2963_v45, %v2963_v45  ;;  %4548 = vmatpush.bf16.msra.mxu3 %v5739_v16  ;;  %v5747_v45 = vld [vmem:[#allocation8 + $0x1f0] sm:$0xff] }
 0x37e   : > { %3670 = vmatmul.bf16.gmra.mxu2 %v7220_v42  ;;  %3759 = vmatmul.bf16.gmra.mxu3 %v7222_v53  ;;  %v3074_v8 = vpack.c.bf16 %v2965_v7, %v2965_v7 }
 0x37f   : > { %v7401_v38 = vpop.f32.mrf.mxu0  ;;  %v3884_v60 = vunpack.c.h.b16 %v7394_v54  ;;  %v3887_v10 = vunpack.c.h.b16 %v7396_v43  ;;  %v3885_v61 = vunpack.c.l.b16 %v3072_v17  ;;  %4637 = vmatpush.bf16.msra.mxu0 %v5747_v45 }
 0x380   : > { %v7405_v23 = vpop.f32.mrf.mxu1  ;;  %v3888_v13 = vunpack.c.l.b16 %v3074_v8 }
 0x381   : > { %v3631_v19 = vpop.f32.mrf.mxu2  ;;  %v3720_v14 = vpop.f32.mrf.mxu3  ;;  %v7408_v46 = vpack.c.b16 %v3887_v10, %v3884_v60 }
 0x382   : > { %4097 = vmatmul.bf16.gmra.mxu0 %v7269_v37  ;;  %v3632_v36 = vadd.f32 %v3631_v19, %v7215_v12  ;;  %v7411_v63 = vpack.c.b16 %v3888_v13, %v3885_v61 }
 0x383   : > { %4136 = vmatmul.bf16.vlgmr.msrb.gmra.mxu1 %v7019_v62 }
 0x384   : > { %8455 = vst [vmem:[#allocation42_spill] sm:$0xff] %v7411_v63  ;;  %v7414_v7 = vadd.f32 %v3720_v14, %v3632_v36 }
 0x387   : > { %v7416_v47 = vpop.f32.mrf.mxu0 }
 0x388   : > { %v7418_v17 = vpop.f32.mrf.mxu1 }
 0x389   : > { %v3633_v16 = vpop.f32.mrf.mxu2  ;;  %v3722_v8 = vpop.f32.mrf.mxu3 }
 0x38a   : > { %v3634_v60 = vadd.f32 %v3633_v16, %v7229_v57 }
 0x38c   : > { %v7421_v10 = vadd.f32 %v3722_v8, %v3634_v60 }
 0x38e   : > { %3675 = vmatmul.bf16.gmra.mxu2 %v7246_v35  ;;  %3764 = vmatmul.bf16.gmra.mxu3 %v7248_v41 }
 0x38f   : > { %v7425_v62 = vpop.f32.mrf.mxu0 }
 0x390   : > { %8456 = vst [vmem:[#allocation51_spill] sm:$0xff] %v7425_v62  ;;  %v7427_v12 = vpop.f32.mrf.mxu1 }
 0x391   : > { %v3636_v61 = vpop.f32.mrf.mxu2  ;;  %v3725_v13 = vpop.f32.mrf.mxu3 }
 0x392   : > { %4102 = vmatmul.bf16.gmra.mxu0 %v7295_v56  ;;  %v3637_v19 = vadd.f32 %v3636_v61, %v7241_v6  ;;  %v5730_v6 = vld [vmem:[#allocation8 + $0x168] sm:$0xff] }
 0x393   : > { %4141 = vmatmul.bf16.gmra.mxu1 %v7040_v30  ;;  %v5738_v61 = vld [vmem:[#allocation8 + $0x1a8] sm:$0xff]  ;;  %4219 = vmatpush.bf16.msra.mxu2 %v5730_v6 }
 0x394   : > { %v7432_v14 = vadd.f32 %v3725_v13, %v3637_v19  ;;  %4549 = vmatpush.bf16.msra.mxu3 %v5738_v61 }
 0x397   : > { %v7434_v57 = vpop.f32.mrf.mxu0 }
 0x398   : > { %8457 = vst [vmem:[#allocation47_spill] sm:$0xff] %v7434_v57  ;;  %v7436_v36 = vpop.f32.mrf.mxu1 }
 0x399   : > { %v3638_v45 = vpop.f32.mrf.mxu2  ;;  %v3727_v31 = vpop.f32.mrf.mxu3 }
 0x39a   : > { %v3639_v16 = vadd.f32 %v3638_v45, %v7255_v20 }
 0x39c   : > { %v7439_v8 = vadd.f32 %v3727_v31, %v3639_v16  ;;  %v5746_v16 = vld [vmem:[#allocation8 + $0x1e8] sm:$0xff] }
 0x39d   : > { %4638 = vmatpush.bf16.msra.mxu0 %v5746_v16 }
 0x39e   : > { %8458 = vst [vmem:[#allocation41_spill] sm:$0xff] %v7439_v8  ;;  %3680 = vmatmul.bf16.gmra.mxu2 %v7272_v33  ;;  %3769 = vmatmul.bf16.gmra.mxu3 %v7274_v55 }
 0x39f   : > { %v7443_v60 = vpop.f32.mrf.mxu0 }
 0x3a0   : > { %8459 = vst [vmem:[#allocation48_spill] sm:$0xff] %v7443_v60  ;;  %v7445_v13 = vpop.f32.mrf.mxu1  ;;  %v5754_v60 = vld [vmem:[#allocation8 + $0x228] sm:$0xff] }
 0x3a1   : > { %v3641_v19 = vpop.f32.mrf.mxu2  ;;  %v3730_v63 = vpop.f32.mrf.mxu3  ;;  %4727 = vmatpush.bf16.msra.mxu1 %v5754_v60 }
 0x3a2   : > { %4107 = vmatmul.bf16.gmra.mxu0 %v7321_v24  ;;  %v3642_v20 = vadd.f32 %v3641_v19, %v7267_v59  ;;  %v5745_v24 = vld [vmem:[#allocation8 + $0x1e0] sm:$0xff] }
 0x3a3   : > { %4146 = vmatmul.bf16.gmra.mxu1 %v7062_v2  ;;  %4639 = vmatpush.bf16.msra.mxu0 %v5745_v24  ;;  %v5753_v24 = vld [vmem:[#allocation8 + $0x220] sm:$0xff] }
 0x3a4   : > { %v7450_v45 = vadd.f32 %v3730_v63, %v3642_v20 }
 0x3a5   : > { %4728 = vmatpush.bf16.msra.mxu1 %v5753_v24 }
 0x3a6   : > { %8460 = vst [vmem:[#allocation61_spill] sm:$0xff] %v7450_v45  ;;  %v5737_v45 = vld [vmem:[#allocation8 + $0x1a0] sm:$0xff] }
 0x3a7   : > { %v7452_v31 = vpop.f32.mrf.mxu0  ;;  %4550 = vmatpush.bf16.msra.mxu3 %v5737_v45  ;;  %v5735_v45 = vld [vmem:[#allocation8 + $0x190] sm:$0xff] }
 0x3a8   : > { %8461 = vst [vmem:[#allocation62_spill] sm:$0xff] %v7452_v31  ;;  %v7454_v57 = vpop.f32.mrf.mxu1 }
 0x3a9   : > { %v3643_v6 = vpop.f32.mrf.mxu2  ;;  %v3732_v61 = vpop.f32.mrf.mxu3 }
 0x3aa   : > { %v3644_v62 = vadd.f32 %v3643_v6, %v7281_v11 }
 0x3ac   : > { %v7457_v8 = vadd.f32 %v3732_v61, %v3644_v62 }
 0x3ae   : > { %8462 = vst [vmem:[#allocation49_spill] sm:$0xff] %v7457_v8  ;;  %3685 = vmatmul.bf16.gmra.mxu2 %v7298_v28  ;;  %3774 = vmatmul.bf16.gmra.mxu3 %v7300_v25  ;;  %v5729_v8 = vld [vmem:[#allocation8 + $0x160] sm:$0xff] }
 0x3af   : > { %v7461_v59 = vpop.f32.mrf.mxu0  ;;  %4220 = vmatpush.bf16.msra.mxu2 %v5729_v8  ;;  %v5727_v8 = vld [vmem:[#allocation8 + $0x150] sm:$0xff] }
 0x3b0   : > { %8463 = vst [vmem:[#allocation59_spill] sm:$0xff] %v7461_v59  ;;  %v7463_v63 = vpop.f32.mrf.mxu1 }
 0x3b1   : > { %v3646_v19 = vpop.f32.mrf.mxu2  ;;  %v3735_v20 = vpop.f32.mrf.mxu3 }
 0x3b2   : > { %4112 = vmatmul.bf16.gmra.mxu0 %v7347_v40  ;;  %v3647_v60 = vadd.f32 %v3646_v19, %v7293_v4  ;;  %v5728_v19 = vld [vmem:[#allocation8 + $0x158] sm:$0xff] }
 0x3b3   : > { %4151 = vmatmul.bf16.gmra.mxu1 %v7090_v58  ;;  %4221 = vmatpush.bf16.msra.mxu2 %v5728_v19 }
 0x3b4   : > { %v7468_v16 = vadd.f32 %v3735_v20, %v3647_v60  ;;  %v5736_v60 = vld [vmem:[#allocation8 + $0x198] sm:$0xff] }
 0x3b5   : > { %4551 = vmatpush.bf16.msra.mxu3 %v5736_v60 }
 0x3b6   : > { %8464 = vst [vmem:[#allocation67_spill] sm:$0xff] %v7468_v16  ;;  %v5726_v16 = vld [vmem:[#allocation8 + $0x148] sm:$0xff] }
 0x3b7   : > { %v7470_v11 = vpop.f32.mrf.mxu0  ;;  %4222 = vmatpush.bf16.msra.mxu2 %v5727_v8  ;;  %v5725_v8 = vld [vmem:[#allocation8 + $0x140] sm:$0xff] }
 0x3b8   : > { %8465 = vst [vmem:[#allocation68_spill] sm:$0xff] %v7470_v11  ;;  %v7472_v62 = vpop.f32.mrf.mxu1  ;;  %v5744_v11 = vld [vmem:[#allocation8 + $0x1d8] sm:$0xff] }
 0x3b9   : > { %v3648_v6 = vpop.f32.mrf.mxu2  ;;  %v3737_v61 = vpop.f32.mrf.mxu3  ;;  %4640 = vmatpush.bf16.msra.mxu0 %v5744_v11  ;;  %4552 = vmatpush.bf16.msra.mxu3 %v5735_v45  ;;  %v3883_v11 = vunpack.c.l.b16 %v7394_v54  ;;  %v5741_v45 = vld [vmem:[#allocation8 + $0x1c0] sm:$0xff] }
 0x3ba   : > { %v3649_v59 = vadd.f32 %v3648_v6, %v7307_v18 }
 0x3bb   : > { %4223 = vmatpush.bf16.msra.mxu2 %v5726_v16 }
 0x3bc   : > { %v7475_v31 = vadd.f32 %v3737_v61, %v3649_v59 }
 0x3be   : > { %8466 = vst [vmem:[#allocation60_spill] sm:$0xff] %v7475_v31  ;;  %3690 = vmatmul.bf16.gmra.mxu2 %v7324_v1  ;;  %3779 = vmatmul.bf16.gmra.mxu3 %v7326_v34 }
 0x3bf   : > { %v7479_v4 = vpop.f32.mrf.mxu0  ;;  %4224 = vmatpush.bf16.msra.mxu2 %v5725_v8 }
 0x3c0   : > { %8467 = vst [vmem:[#allocation65_spill] sm:$0xff] %v7479_v4  ;;  %v7481_v20 = vpop.f32.mrf.mxu1  ;;  %v5743_v4 = vld [vmem:[#allocation8 + $0x1d0] sm:$0xff] }
 0x3c1   : > { %v3651_v18 = vpop.f32.mrf.mxu2  ;;  %v3740_v59 = vpop.f32.mrf.mxu3  ;;  %4641 = vmatpush.bf16.msra.mxu0 %v5743_v4 }
 0x3c2   : > { %4117 = vmatmul.bf16.gmra.mxu0 %v7373_v15  ;;  %v3652_v6 = vadd.f32 %v3651_v18, %v7319_v49  ;;  %v5734_v49 = vld [vmem:[#allocation8 + $0x188] sm:$0xff] }
 0x3c3   : > { %4156 = vmatmul.bf16.gmra.mxu1 %v7122_v48  ;;  %v5742_v18 = vld [vmem:[#allocation8 + $0x1c8] sm:$0xff]  ;;  %4553 = vmatpush.bf16.msra.mxu3 %v5734_v49 }
 0x3c4   : > { %v7486_v61 = vadd.f32 %v3740_v59, %v3652_v6  ;;  %v3886_v59 = vunpack.c.l.b16 %v7396_v43 }
 0x3c5   : > { %4642 = vmatpush.bf16.msra.mxu0 %v5742_v18 }
 0x3c6   : > { %v7501_v24 = vpack.c.b16 %v3886_v59, %v3883_v11 }
 0x3c7   : > { %v7488_v31 = vpop.f32.mrf.mxu0 }
 0x3c8   : > { %8468 = vst [vmem:[#allocation71_spill] sm:$0xff] %v7488_v31  ;;  %v7490_v40 = vpop.f32.mrf.mxu1  ;;  %v5733_v31 = vld [vmem:[#allocation8 + $0x180] sm:$0xff] }
 0x3c9   : > { %v3653_v15 = vpop.f32.mrf.mxu2  ;;  %v3742_v19 = vpop.f32.mrf.mxu3  ;;  %4554 = vmatpush.bf16.msra.mxu3 %v5733_v31  ;;  %4643 = vmatpush.bf16.msra.mxu0 %v5741_v45 }
 0x3ca   : > { %v3654_v60 = vadd.f32 %v3653_v15, %v7333_v5 }
 0x3cc   : > { %v7495_v6 = vadd.f32 %v3742_v19, %v3654_v60 }
 0x3ce   : > { %3695 = vmatmul.bf16.gmra.mxu2 %v7350_v39  ;;  %3784 = vmatmul.bf16.gmra.mxu3 %v7352_v3 }
 0x3cf   : > { %v7499_v4 = vpop.f32.mrf.mxu0 }
 0x3d0   : > { %v7503_v5 = vpop.f32.mrf.mxu1 }
 0x3d1   : > { %v3656_v43 = vpop.f32.mrf.mxu2  ;;  %v3745_v15 = vpop.f32.mrf.mxu3 }
 0x3d2   : > { %4122 = vmatmul.bf16.gmra.mxu0 %v7501_v24  ;;  %v3657_v54 = vadd.f32 %v3656_v43, %v7345_v44 }
 0x3d3   : > { %4161 = vmatmul.bf16.gmra.mxu1 %v7148_v51 }
 0x3d4   : > { %v7508_v16 = vadd.f32 %v3745_v15, %v3657_v54  ;;  %v5752_v54 = vld [vmem:[#allocation8 + $0x218] sm:$0xff] }
 0x3d5   : > { %4729 = vmatpush.bf16.msra.mxu1 %v5752_v54 }
 0x3d7   : > { %v7510_v49 = vpop.f32.mrf.mxu0 }
 0x3d8   : > { %8469 = vst [vmem:[#allocation66_spill] sm:$0xff] %v7510_v49  ;;  %v7512_v18 = vpop.f32.mrf.mxu1 }
 0x3d9   : > { %v3658_v19 = vpop.f32.mrf.mxu2  ;;  %v3747_v60 = vpop.f32.mrf.mxu3 }
 0x3da   : > { %v3659_v11 = vadd.f32 %v3658_v19, %v7359_v29 }
 0x3dc   : > { %v7515_v31 = vadd.f32 %v3747_v60, %v3659_v11 }
 0x3de   : > { %3700 = vmatmul.bf16.gmra.mxu2 %v7376_v9  ;;  %3789 = vmatmul.bf16.gmra.mxu3 %v7379_v50 }
 0x3df   : > { %v7519_v59 = vpop.f32.mrf.mxu0 }
 0x3e0   : > { %8470 = vst [vmem:[#allocation74_spill] sm:$0xff] %v7519_v59  ;;  %v7521_v44 = vpop.f32.mrf.mxu1 }
 0x3e1   : > { %v3661_v8 = vpop.f32.mrf.mxu2  ;;  %v3750_v45 = vpop.f32.mrf.mxu3 }
 0x3e2   : > { %4644 = vmatmul.bf16.vlgmr.msra.gmra.mxu0 %v7040_v30  ;;  %v3662_v43 = vadd.f32 %v3661_v8, %v7371_v22  ;;  %v8474_v30 = vld [vmem:[#allocation55_spill] sm:$0xff] }
 0x3e3   : > { %4166 = vmatmul.bf16.gmra.mxu1 %v7170_v26 }
 0x3e4   : > { %v7526_v15 = vadd.f32 %v3750_v45, %v3662_v43 }
 0x3e6   : > { %8471 = vst [vmem:[#allocation72_spill] sm:$0xff] %v7526_v15 }
 0x3e7   : > { %v7528_v29 = vpop.f32.mrf.mxu0 }
 0x3e8   : > { %8472 = vst [vmem:[#allocation73_spill] sm:$0xff] %v7528_v29  ;;  %v7530_v19 = vpop.f32.mrf.mxu1 }
 0x3e9   : > { %v3663_v60 = vpop.f32.mrf.mxu2  ;;  %v3752_v11 = vpop.f32.mrf.mxu3 }
 0x3ea   : > { %v3664_v59 = vadd.f32 %v3663_v60, %v7386_v32 }
 0x3ec   : > { %v7533_v49 = vadd.f32 %v3752_v11, %v3664_v59 }
 0x3ee   : > { %8473 = vst [vmem:[#allocation88_spill] sm:$0xff] %v7533_v49  ;;  %4225 = vmatmul.bf16.vlgmr.msra.gmra.mxu2 %v7021_v21  ;;  %4555 = vmatmul.bf16.vlgmr.msra.gmra.mxu3 %v8474_v30  ;;  %v8480_v49 = vld [vmem:[#allocation77_spill] sm:$0xff] }
 0x3ef   : > { %v7537_v22 = vpop.f32.mrf.mxu0 }
 0x3f0   : > { %8475 = vst [vmem:[#allocation55_spill] sm:$0xff] %v7537_v22  ;;  %v7539_v8 = vpop.f32.mrf.mxu1  ;;  %v8479_v22 = vld [vmem:[#allocation56_spill] sm:$0xff] }
 0x3f1   : > { %v3666_v45 = vpop.f32.mrf.mxu2  ;;  %v3755_v43 = vpop.f32.mrf.mxu3 }
 0x3f2   : > { %4649 = vmatmul.bf16.gmra.mxu0 %v7062_v2  ;;  %v3667_v54 = vadd.f32 %v3666_v45, %v7405_v23 }
 0x3f3   : > { %4171 = vmatmul.bf16.gmra.mxu1 %v7194_v0 }
 0x3f4   : > { %v7544_v29 = vadd.f32 %v3755_v43, %v3667_v54 }
 0x3f6   : > { %8476 = vst [vmem:[#allocation89_spill] sm:$0xff] %v7544_v29  ;;  %v8485_v29 = vld [vmem:[#allocation75_spill] sm:$0xff] }
 0x3f7   : > { %v7546_v32 = vpop.f32.mrf.mxu0 }
 0x3f8   : > { %8477 = vst [vmem:[#allocation90_spill] sm:$0xff] %v7546_v32  ;;  %v7548_v59 = vpop.f32.mrf.mxu1 }
 0x3f9   : > { %v3668_v21 = vpop.f32.mrf.mxu2  ;;  %v3757_v60 = vpop.f32.mrf.mxu3 }
 0x3fa   : > { %v3669_v11 = vadd.f32 %v3668_v21, %v7418_v17  ;;  %v5751_v21 = vld [vmem:[#allocation8 + $0x210] sm:$0xff] }
 0x3fb   : > { %4730 = vmatpush.bf16.msra.mxu1 %v5751_v21 }
 0x3fc   : > { %v7551_v30 = vadd.f32 %v3757_v60, %v3669_v11 }
 0x3fe   : > { %8478 = vst [vmem:[#allocation91_spill] sm:$0xff] %v7551_v30  ;;  %4230 = vmatmul.bf16.gmra.mxu2 %v8479_v22  ;;  %4560 = vmatmul.bf16.gmra.mxu3 %v8480_v49 }
 0x3ff   : > { %v7555_v2 = vpop.f32.mrf.mxu0 }
 0x400   : > { %8481 = vst [vmem:[#allocation56_spill] sm:$0xff] %v7555_v2  ;;  %v7557_v23 = vpop.f32.mrf.mxu1 }
 0x401   : > { %v3671_v45 = vpop.f32.mrf.mxu2  ;;  %v3760_v43 = vpop.f32.mrf.mxu3 }
 0x402   : > { %4654 = vmatmul.bf16.gmra.mxu0 %v7090_v58  ;;  %v3672_v54 = vadd.f32 %v3671_v45, %v7427_v12  ;;  %v8486_v58 = vld [vmem:[#allocation76_spill] sm:$0xff] }
 0x403   : > { %4176 = vmatmul.bf16.gmra.mxu1 %v7220_v42 }
 0x404   : > { %v7562_v32 = vadd.f32 %v3760_v43, %v3672_v54 }
 0x406   : > { %8482 = vst [vmem:[#allocation77_spill] sm:$0xff] %v7562_v32  ;;  %v8492_v32 = vld [vmem:[#allocation64_spill] sm:$0xff] }
 0x407   : > { %v7564_v17 = vpop.f32.mrf.mxu0 }
 0x408   : > { %8483 = vst [vmem:[#allocation92_spill] sm:$0xff] %v7564_v17  ;;  %v7566_v60 = vpop.f32.mrf.mxu1 }
 0x409   : > { %v3673_v49 = vpop.f32.mrf.mxu2  ;;  %v3762_v11 = vpop.f32.mrf.mxu3 }
 0x40a   : > { %v3674_v2 = vadd.f32 %v3673_v49, %v7436_v36 }
 0x40c   : > { %v7569_v30 = vadd.f32 %v3762_v11, %v3674_v2 }
 0x40e   : > { %8484 = vst [vmem:[#allocation93_spill] sm:$0xff] %v7569_v30  ;;  %4235 = vmatmul.bf16.gmra.mxu2 %v8485_v29  ;;  %4565 = vmatmul.bf16.gmra.mxu3 %v8486_v58  ;;  %v8491_v30 = vld [vmem:[#allocation63_spill] sm:$0xff] }
 0x40f   : > { %v7573_v12 = vpop.f32.mrf.mxu0 }
 0x410   : > { %8487 = vst [vmem:[#allocation75_spill] sm:$0xff] %v7573_v12  ;;  %v7575_v45 = vpop.f32.mrf.mxu1 }
 0x411   : > { %v3676_v43 = vpop.f32.mrf.mxu2  ;;  %v3765_v54 = vpop.f32.mrf.mxu3 }
 0x412   : > { %4659 = vmatmul.bf16.gmra.mxu0 %v7122_v48  ;;  %v3677_v21 = vadd.f32 %v3676_v43, %v7445_v13 }
 0x413   : > { %4181 = vmatmul.bf16.gmra.mxu1 %v7246_v35 }
 0x414   : > { %v7580_v17 = vadd.f32 %v3765_v54, %v3677_v21 }
 0x416   : > { %8488 = vst [vmem:[#allocation76_spill] sm:$0xff] %v7580_v17  ;;  %v8497_v17 = vld [vmem:[#allocation80_spill] sm:$0xff] }
 0x417   : > { %v7582_v36 = vpop.f32.mrf.mxu0 }
 0x418   : > { %8489 = vst [vmem:[#allocation94_spill] sm:$0xff] %v7582_v36  ;;  %v7584_v2 = vpop.f32.mrf.mxu1 }
 0x419   : > { %v3678_v49 = vpop.f32.mrf.mxu2  ;;  %v3767_v11 = vpop.f32.mrf.mxu3 }
 0x41a   : > { %v3679_v58 = vadd.f32 %v3678_v49, %v7454_v57  ;;  %v5750_v49 = vld [vmem:[#allocation8 + $0x208] sm:$0xff] }
 0x41b   : > { %4731 = vmatpush.bf16.msra.mxu1 %v5750_v49 }
 0x41c   : > { %v7587_v12 = vadd.f32 %v3767_v11, %v3679_v58 }
 0x41e   : > { %8490 = vst [vmem:[#allocation95_spill] sm:$0xff] %v7587_v12  ;;  %4240 = vmatmul.bf16.gmra.mxu2 %v8491_v30  ;;  %4570 = vmatmul.bf16.gmra.mxu3 %v8492_v32 }
 0x41f   : > { %v7591_v48 = vpop.f32.mrf.mxu0 }
 0x420   : > { %8493 = vst [vmem:[#allocation63_spill] sm:$0xff] %v7591_v48  ;;  %v7593_v13 = vpop.f32.mrf.mxu1 }
 0x421   : > { %v3681_v43 = vpop.f32.mrf.mxu2  ;;  %v3770_v54 = vpop.f32.mrf.mxu3 }
 0x422   : > { %4664 = vmatmul.bf16.gmra.mxu0 %v7148_v51  ;;  %v3682_v21 = vadd.f32 %v3681_v43, %v7463_v63  ;;  %v8498_v51 = vld [vmem:[#allocation78_spill] sm:$0xff] }
 0x423   : > { %4186 = vmatmul.bf16.gmra.mxu1 %v7272_v33 }
 0x424   : > { %v7598_v36 = vadd.f32 %v3770_v54, %v3682_v21 }
 0x426   : > { %8494 = vst [vmem:[#allocation64_spill] sm:$0xff] %v7598_v36  ;;  %v8504_v36 = vld [vmem:[#allocation69_spill] sm:$0xff] }
 0x427   : > { %v7600_v57 = vpop.f32.mrf.mxu0 }
 0x428   : > { %8495 = vst [vmem:[#allocation96_spill] sm:$0xff] %v7600_v57  ;;  %v7602_v11 = vpop.f32.mrf.mxu1 }
 0x429   : > { %v3683_v32 = vpop.f32.mrf.mxu2  ;;  %v3772_v58 = vpop.f32.mrf.mxu3 }
 0x42a   : > { %v3684_v48 = vadd.f32 %v3683_v32, %v7472_v62 }
 0x42c   : > { %v7605_v12 = vadd.f32 %v3772_v58, %v3684_v48 }
 0x42e   : > { %8496 = vst [vmem:[#allocation97_spill] sm:$0xff] %v7605_v12  ;;  %4245 = vmatmul.bf16.gmra.mxu2 %v8497_v17  ;;  %4575 = vmatmul.bf16.gmra.mxu3 %v8498_v51  ;;  %v8503_v12 = vld [vmem:[#allocation79_spill] sm:$0xff] }
 0x42f   : > { %v7609_v63 = vpop.f32.mrf.mxu0 }
 0x430   : > { %8499 = vst [vmem:[#allocation80_spill] sm:$0xff] %v7609_v63  ;;  %v7611_v43 = vpop.f32.mrf.mxu1 }
 0x431   : > { %v3686_v54 = vpop.f32.mrf.mxu2  ;;  %v3775_v21 = vpop.f32.mrf.mxu3 }
 0x432   : > { %4669 = vmatmul.bf16.gmra.mxu0 %v7170_v26  ;;  %v3687_v49 = vadd.f32 %v3686_v54, %v7481_v20 }
 0x433   : > { %4191 = vmatmul.bf16.gmra.mxu1 %v7298_v28 }
 0x434   : > { %v7616_v57 = vadd.f32 %v3775_v21, %v3687_v49 }
 0x436   : > { %8500 = vst [vmem:[#allocation78_spill] sm:$0xff] %v7616_v57  ;;  %v8509_v57 = vld [vmem:[#allocation70_spill] sm:$0xff] }
 0x437   : > { %v7618_v62 = vpop.f32.mrf.mxu0 }
 0x438   : > { %8501 = vst [vmem:[#allocation98_spill] sm:$0xff] %v7618_v62  ;;  %v7620_v48 = vpop.f32.mrf.mxu1 }
 0x439   : > { %v3688_v32 = vpop.f32.mrf.mxu2  ;;  %v3777_v58 = vpop.f32.mrf.mxu3 }
 0x43a   : > { %v3689_v51 = vadd.f32 %v3688_v32, %v7490_v40  ;;  %v5749_v40 = vld [vmem:[#allocation8 + $0x200] sm:$0xff] }
 0x43b   : > { %4732 = vmatpush.bf16.msra.mxu1 %v5749_v40 }
 0x43c   : > { %v7623_v63 = vadd.f32 %v3777_v58, %v3689_v51 }
 0x43e   : > { %8502 = vst [vmem:[#allocation99_spill] sm:$0xff] %v7623_v63  ;;  %4250 = vmatmul.bf16.gmra.mxu2 %v8503_v12  ;;  %4580 = vmatmul.bf16.gmra.mxu3 %v8504_v36 }
 0x43f   : > { %v7627_v26 = vpop.f32.mrf.mxu0 }
 0x440   : > { %8505 = vst [vmem:[#allocation79_spill] sm:$0xff] %v7627_v26  ;;  %v7629_v20 = vpop.f32.mrf.mxu1 }
 0x441   : > { %v3691_v54 = vpop.f32.mrf.mxu2  ;;  %v3780_v21 = vpop.f32.mrf.mxu3 }
 0x442   : > { %4674 = vmatmul.bf16.gmra.mxu0 %v7194_v0  ;;  %v3692_v49 = vadd.f32 %v3691_v54, %v7503_v5  ;;  %v8510_v0 = vld [vmem:[#allocation83_spill] sm:$0xff] }
 0x443   : > { %4196 = vmatmul.bf16.gmra.mxu1 %v7324_v1 }
 0x444   : > { %v7634_v62 = vadd.f32 %v3780_v21, %v3692_v49 }
 0x446   : > { %8506 = vst [vmem:[#allocation69_spill] sm:$0xff] %v7634_v62 }
 0x447   : > { %v7638_v58 = vpop.f32.mrf.mxu0 }
 0x448   : > { %v7636_v32 = vpop.f32.mrf.mxu1  ;;  %8507 = vst [vmem:[#allocation100_spill] sm:$0xff] %v7638_v58 }
 0x449   : > { %v3693_v36 = vpop.f32.mrf.mxu2  ;;  %v3782_v51 = vpop.f32.mrf.mxu3 }
 0x44a   : > { %v3694_v26 = vadd.f32 %v3693_v36, %v7512_v18 }
 0x44c   : > { %v7641_v63 = vadd.f32 %v3782_v51, %v3694_v26 }
 0x44e   : > { %8508 = vst [vmem:[#allocation101_spill] sm:$0xff] %v7641_v63  ;;  %4255 = vmatmul.bf16.gmra.mxu2 %v8509_v57  ;;  %4585 = vmatmul.bf16.gmra.mxu3 %v8510_v0 }
 0x44f   : > { %v7649_v58 = vpop.f32.mrf.mxu0 }
 0x450   : > { %v7645_v5 = vpop.f32.mrf.mxu1  ;;  %8511 = vst [vmem:[#allocation70_spill] sm:$0xff] %v7649_v58 }
 0x451   : > { %v3696_v54 = vpop.f32.mrf.mxu2  ;;  %v3785_v21 = vpop.f32.mrf.mxu3 }
 0x452   : > { %4679 = vmatmul.bf16.gmra.mxu0 %v7220_v42  ;;  %v3697_v49 = vadd.f32 %v3696_v54, %v7521_v44  ;;  %v8515_v42 = vld [vmem:[#allocation82_spill] sm:$0xff] }
 0x453   : > { %4201 = vmatmul.bf16.gmra.mxu1 %v7350_v39 }
 0x454   : > { %v7652_v40 = vadd.f32 %v3785_v21, %v3697_v49 }
 0x456   : > { %8512 = vst [vmem:[#allocation83_spill] sm:$0xff] %v7652_v40 }
 0x457   : > { %v7659_v63 = vpop.f32.mrf.mxu0 }
 0x458   : > { %v7654_v18 = vpop.f32.mrf.mxu1  ;;  %8514 = vst [vmem:[#allocation103_spill] sm:$0xff] %v7659_v63 }
 0x459   : > { %v3698_v26 = vpop.f32.mrf.mxu2  ;;  %v3787_v36 = vpop.f32.mrf.mxu3 }
 0x45a   : > { %v3699_v51 = vadd.f32 %v3698_v26, %v7530_v19 }
 0x45c   : > { %v7657_v0 = vadd.f32 %v3787_v36, %v3699_v51 }
 0x45e   : > { %8513 = vst [vmem:[#allocation102_spill] sm:$0xff] %v7657_v0  ;;  %4260 = vmatmul.bf16.gmra.mxu2 %v7196_v52  ;;  %4590 = vmatmul.bf16.gmra.mxu3 %v8515_v42  ;;  %v7678_v0 = vld [vmem:[%s8167_s4] ss:$0 sm:$0xff] }
 0x45f   : > { %v4645_v19 = vpop.f32.mrf.mxu0 }
 0x460   : > { %v7663_v44 = vpop.f32.mrf.mxu1 }
 0x461   : > { %v3701_v54 = vpop.f32.mrf.mxu2  ;;  %v3790_v58 = vpop.f32.mrf.mxu3 }
 0x462   : > { %4684 = vmatmul.bf16.gmra.mxu0 %v7246_v35  ;;  %v3702_v21 = vadd.f32 %v3701_v54, %v7539_v8  ;;  %v8518_v35 = vld [vmem:[#allocation24_spill] sm:$0xff]  ;;  %v8519_v8 = vld [vmem:[#allocation85_spill] sm:$0xff] }
 0x463   : > { %4206 = vmatmul.bf16.gmra.mxu1 %v7376_v9 }
 0x464   : > { %v7668_v49 = vadd.f32 %v3790_v58, %v3702_v21  ;;  %v4138_v58 = vadd.f32 %v7557_v23, %v8519_v8 }
 0x466   : > { %8516 = vst [vmem:[#allocation82_spill] sm:$0xff] %v7668_v49 }
 0x467   : > { %v4647_v21 = vpop.f32.mrf.mxu0 }
 0x468   : > { %v7670_v26 = vpop.f32.mrf.mxu1 }
 0x469   : > { %v3703_v36 = vpop.f32.mrf.mxu2  ;;  %v3792_v51 = vpop.f32.mrf.mxu3 }
 0x46a   : > { %v3704_v63 = vadd.f32 %v3703_v36, %v7548_v59  ;;  %v8520_v59 = vld [vmem:[#allocation35_spill] sm:$0xff] }
 0x46c   : > { %v7673_v42 = vadd.f32 %v3792_v51, %v3704_v63  ;;  %v3798_v63 = vadd.f32 %v7678_v0, %v8520_v59 }
 0x46e   : > { %8517 = vst [vmem:[#allocation104_spill] sm:$0xff] %v7673_v42  ;;  %4265 = vmatmul.bf16.gmra.mxu2 %v7222_v53  ;;  %4595 = vmatmul.bf16.gmra.mxu3 %v8518_v35  ;;  %v8521_v35 = vld [vmem:[#allocation30_spill] sm:$0xff] }
 0x46f   : > { %v4140_v23 = vadd.f32 %v7566_v60, %v8521_v35 }
 0x470   : > { %v7684_v54 = vpop.f32.mrf.mxu1 }
 0x471   : > { %v4226_v49 = vpop.f32.mrf.mxu2  ;;  %v4556_v40 = vpop.f32.mrf.mxu3 }
 0x472   : > { %4689 = vmatmul.bf16.gmra.mxu0 %v7272_v33  ;;  %v4227_v36 = vadd.f32 %v4226_v49, %v4138_v58  ;;  %v7689_v51 = vadd.f32 %v4645_v19, %v4556_v40  ;;  %v3799_v33 = vadd.f32 %v7678_v0, %v7389_v27  ;;  %v4650_v49 = vpop.f32.mrf.mxu0  ;;  %v8522_v19 = vld [vmem:[#allocation86_spill] sm:$0xff] }
 0x473   : > { %4211 = vmatmul.bf16.gmra.mxu1 %v7408_v46  ;;  %v4143_v60 = vadd.f32 %v7575_v45, %v8522_v19 }
 0x474   : > { %v7692_v42 = vadd.f32 %v4227_v36, %v3798_v63 }
 0x478   : > { %v7696_v8 = vpop.f32.mrf.mxu1 }
 0x479   : > { %v4228_v62 = vpop.f32.mrf.mxu2  ;;  %v4558_v53 = vpop.f32.mrf.mxu3 }
 0x47a   : > { %v4229_v52 = vadd.f32 %v4228_v62, %v4140_v23  ;;  %v7700_v15 = vadd.f32 %v4647_v21, %v4558_v53  ;;  %v3800_v53 = vadd.f32 %v7678_v0, %v7414_v7  ;;  %v8523_v21 = vld [vmem:[#allocation40_spill] sm:$0xff] }
 0x47b   : > { %v4145_v45 = vadd.f32 %v7584_v2, %v8523_v21 }
 0x47c   : > { %v7702_v40 = vadd.f32 %v4229_v52, %v3799_v33 }
 0x47e   : > { %4270 = vmatmul.bf16.gmra.mxu2 %v7248_v41  ;;  %4600 = vmatmul.bf16.gmra.mxu3 %v7269_v37  ;;  %v4652_v37 = vpop.f32.mrf.mxu0 }
 0x480   : > { %v7708_v58 = vpop.f32.mrf.mxu1 }
 0x481   : > { %v4231_v59 = vpop.f32.mrf.mxu2  ;;  %v4561_v63 = vpop.f32.mrf.mxu3 }
 0x482   : > { %4694 = vmatmul.bf16.gmra.mxu0 %v7298_v28  ;;  %v4232_v27 = vadd.f32 %v4231_v59, %v4143_v60  ;;  %v7713_v62 = vadd.f32 %v4650_v49, %v4561_v63  ;;  %v3801_v28 = vadd.f32 %v7678_v0, %v7421_v10  ;;  %v3802_v10 = vadd.f32 %v7678_v0, %v7432_v14 }
 0x483   : > { %4733 = vmatmul.bf16.vlgmr.msra.gmra.mxu1 %v8479_v22  ;;  %v4148_v22 = vadd.f32 %v7593_v13, %v7401_v38 }
 0x484   : > { %v7716_v52 = vadd.f32 %v4232_v27, %v3800_v53 }
 0x486   : > { %v4655_v19 = vpop.f32.mrf.mxu0 }
 0x488   : > { %v7720_v36 = vpop.f32.mrf.mxu1 }
 0x489   : > { %v4233_v35 = vpop.f32.mrf.mxu2  ;;  %v4563_v23 = vpop.f32.mrf.mxu3 }
 0x48a   : > { %v4234_v33 = vadd.f32 %v4233_v35, %v4145_v45  ;;  %v7724_v7 = vadd.f32 %v4652_v37, %v4563_v23  ;;  %v8524_v45 = vld [vmem:[#allocation41_spill] sm:$0xff] }
 0x48c   : > { %v7726_v49 = vadd.f32 %v4234_v33, %v3801_v28  ;;  %v8526_v28 = vld [vmem:[#allocation51_spill] sm:$0xff] }
 0x48e   : > { %4275 = vmatmul.bf16.gmra.mxu2 %v7274_v55  ;;  %4605 = vmatmul.bf16.gmra.mxu3 %v7295_v56  ;;  %v4150_v56 = vadd.f32 %v7602_v11, %v7416_v47  ;;  %v4657_v38 = vpop.f32.mrf.mxu0  ;;  %v4153_v47 = vadd.f32 %v7611_v43, %v8526_v28  ;;  %v8529_v43 = vld [vmem:[#allocation49_spill] sm:$0xff] }
 0x490   : > { %v7732_v2 = vpop.f32.mrf.mxu1 }
 0x491   : > { %v4236_v60 = vpop.f32.mrf.mxu2  ;;  %v4566_v59 = vpop.f32.mrf.mxu3 }
 0x492   : > { %4699 = vmatmul.bf16.gmra.mxu0 %v7324_v1  ;;  %v4237_v63 = vadd.f32 %v4236_v60, %v4148_v22  ;;  %v7737_v53 = vadd.f32 %v4655_v19, %v4566_v59  ;;  %v3803_v1 = vadd.f32 %v7678_v0, %v8524_v45  ;;  %v8527_v19 = vld [vmem:[#allocation61_spill] sm:$0xff] }
 0x493   : > { %4738 = vmatmul.bf16.gmra.mxu1 %v8485_v29  ;;  %v8525_v29 = vld [vmem:[#allocation84_spill] sm:$0xff]  ;;  %v3804_v22 = vadd.f32 %v7678_v0, %v8527_v19  ;;  %v8533_v19 = vld [vmem:[#allocation62_spill] sm:$0xff] }
 0x494   : > { %v7740_v27 = vadd.f32 %v4237_v63, %v3802_v10  ;;  %v8528_v10 = vld [vmem:[#allocation47_spill] sm:$0xff] }
 0x495   : > { %v4155_v63 = vadd.f32 %v7620_v48, %v8528_v10  ;;  %v8532_v48 = vld [vmem:[#allocation67_spill] sm:$0xff] }
 0x496   : > { %v3806_v28 = vadd.f32 %v7678_v0, %v8532_v48 }
 0x498   : > { %v7744_v13 = vpop.f32.mrf.mxu1 }
 0x499   : > { %v4238_v37 = vpop.f32.mrf.mxu2  ;;  %v4568_v21 = vpop.f32.mrf.mxu3 }
 0x49a   : > { %v4239_v35 = vadd.f32 %v4238_v37, %v4150_v56  ;;  %v7748_v14 = vadd.f32 %v4657_v38, %v4568_v21  ;;  %v3805_v37 = vadd.f32 %v7678_v0, %v8529_v43 }
 0x49c   : > { %v7750_v23 = vadd.f32 %v4239_v35, %v3803_v1  ;;  %v8531_v1 = vld [vmem:[#allocation48_spill] sm:$0xff] }
 0x49e   : > { %4280 = vmatmul.bf16.gmra.mxu2 %v7300_v25  ;;  %4610 = vmatmul.bf16.gmra.mxu3 %v8525_v29 }
 0x4a0   : > { %v7756_v11 = vpop.f32.mrf.mxu1 }
 0x4a1   : > { %v4241_v33 = vpop.f32.mrf.mxu2 }
 0x4a2   : > { %4704 = vmatmul.bf16.gmra.mxu0 %v7350_v39  ;;  %v4242_v60 = vadd.f32 %v4241_v33, %v4153_v47  ;;  %v8530_v39 = vld [vmem:[#allocation29_spill] sm:$0xff] }
 0x4a3   : > { %4743 = vmatmul.bf16.gmra.mxu1 %v8491_v30  ;;  %v4158_v30 = vadd.f32 %v7629_v20, %v8531_v1  ;;  %v8534_v20 = vld [vmem:[#allocation60_spill] sm:$0xff] }
 0x4a4   : > { %v7762_v59 = vadd.f32 %v4242_v60, %v3804_v22  ;;  %v4160_v22 = vadd.f32 %v7636_v32, %v8533_v19  ;;  %v3808_v32 = vadd.f32 %v7678_v0, %v7486_v61 }
 0x4a8   : > { %v7766_v56 = vpop.f32.mrf.mxu1 }
 0x4a9   : > { %v4243_v38 = vpop.f32.mrf.mxu2 }
 0x4aa   : > { %v4244_v21 = vadd.f32 %v4243_v38, %v4155_v63  ;;  %v3807_v63 = vadd.f32 %v7678_v0, %v8534_v20 }
 0x4ac   : > { %v7770_v45 = vadd.f32 %v4244_v21, %v3805_v37  ;;  %v8536_v37 = vld [vmem:[#allocation59_spill] sm:$0xff] }
 0x4ae   : > { %4285 = vmatmul.bf16.gmra.mxu2 %v7326_v34  ;;  %4615 = vmatmul.bf16.gmra.mxu3 %v8530_v39 }
 0x4b0   : > { %v7776_v35 = vpop.f32.mrf.mxu1 }
 0x4b1   : > { %v4246_v29 = vpop.f32.mrf.mxu2 }
 0x4b2   : > { %4709 = vmatmul.bf16.gmra.mxu0 %v7376_v9  ;;  %v4247_v47 = vadd.f32 %v4246_v29, %v4158_v30  ;;  %v8535_v9 = vld [vmem:[#allocation87_spill] sm:$0xff]  ;;  %v8537_v29 = vld [vmem:[#allocation68_spill] sm:$0xff] }
 0x4b3   : > { %4748 = vmatmul.bf16.gmra.mxu1 %v8497_v17  ;;  %v4163_v17 = vadd.f32 %v7645_v5, %v8536_v37  ;;  %v4165_v48 = vadd.f32 %v7654_v18, %v8537_v29  ;;  %v3809_v5 = vadd.f32 %v7678_v0, %v7495_v6  ;;  %v3810_v18 = vadd.f32 %v7678_v0, %v7508_v16 }
 0x4b4   : > { %v7782_v33 = vadd.f32 %v4247_v47, %v3806_v28  ;;  %v4173_v16 = vadd.f32 %v7684_v54, %v7499_v4 }
 0x4b8   : > { %v7786_v60 = vpop.f32.mrf.mxu1 }
 0x4b9   : > { %v4248_v10 = vpop.f32.mrf.mxu2 }
 0x4ba   : > { %v4249_v38 = vadd.f32 %v4248_v10, %v4160_v22 }
 0x4bc   : > { %v7790_v43 = vadd.f32 %v4249_v38, %v3807_v63  ;;  %v8539_v63 = vld [vmem:[#allocation71_spill] sm:$0xff] }
 0x4bd   : > { %v4170_v38 = vadd.f32 %v7670_v26, %v8539_v63 }
 0x4be   : > { %4290 = vmatmul.bf16.gmra.mxu2 %v7352_v3  ;;  %4620 = vmatmul.bf16.gmra.mxu3 %v8535_v9 }
 0x4c0   : > { %v7796_v21 = vpop.f32.mrf.mxu1 }
 0x4c1   : > { %v4251_v39 = vpop.f32.mrf.mxu2 }
 0x4c2   : > { %4714 = vmatmul.bf16.gmra.mxu0 %v7408_v46  ;;  %v4252_v1 = vadd.f32 %v4251_v39, %v4163_v17  ;;  %v8538_v46 = vld [vmem:[#allocation65_spill] sm:$0xff]  ;;  %v8540_v39 = vld [vmem:[#allocation42_spill] sm:$0xff] }
 0x4c3   : > { %4753 = vmatmul.bf16.gmra.mxu1 %v8503_v12  ;;  %v4168_v61 = vadd.f32 %v7663_v44, %v8538_v46  ;;  %v3811_v44 = vadd.f32 %v7678_v0, %v7515_v31  ;;  %v8543_v31 = vld [vmem:[#allocation66_spill] sm:$0xff] }
 0x4c4   : > { %v7802_v30 = vadd.f32 %v4252_v1, %v3808_v32  ;;  %v8541_v1 = vld [vmem:[#allocation72_spill] sm:$0xff] }
 0x4c5   : > { %v3812_v26 = vadd.f32 %v7678_v0, %v8541_v1 }
 0x4c8   : > { %v7806_v28 = vpop.f32.mrf.mxu1 }
 0x4c9   : > { %v4253_v47 = vpop.f32.mrf.mxu2 }
 0x4ca   : > { %v4254_v19 = vadd.f32 %v4253_v47, %v4165_v48  ;;  %v8542_v48 = vld [vmem:[#allocation81_spill] sm:$0xff] }
 0x4cc   : > { %v7810_v22 = vadd.f32 %v4254_v19, %v3809_v5  ;;  %v4175_v5 = vadd.f32 %v7696_v8, %v8543_v31  ;;  %v8547_v8 = vld [vmem:[#allocation23_spill] sm:$0xff] }
 0x4ce   : > { %4295 = vmatmul.bf16.gmra.mxu2 %v7379_v50  ;;  %4625 = vmatmul.bf16.gmra.mxu3 %v7501_v24 }
 0x4d0   : > { %v7816_v12 = vpop.f32.mrf.mxu1 }
 0x4d1   : > { %v4256_v10 = vpop.f32.mrf.mxu2 }
 0x4d2   : > { %v4257_v20 = vadd.f32 %v4256_v10, %v4168_v61  ;;  %v8544_v61 = vld [vmem:[#allocation88_spill] sm:$0xff] }
 0x4d3   : > { %4758 = vmatmul.bf16.gmra.mxu1 %v8509_v57  ;;  %v3813_v4 = vadd.f32 %v7678_v0, %v8544_v61 }
 0x4d4   : > { %v7821_v6 = vadd.f32 %v4257_v20, %v3810_v18  ;;  %v8545_v18 = vld [vmem:[#allocation74_spill] sm:$0xff] }
 0x4d5   : > { %v4178_v20 = vadd.f32 %v7708_v58, %v8545_v18 }
 0x4d8   : > { %v7825_v9 = vpop.f32.mrf.mxu1 }
 0x4d9   : > { %v4258_v24 = vpop.f32.mrf.mxu2 }
 0x4da   : > { %v4259_v37 = vadd.f32 %v4258_v24, %v4170_v38  ;;  %v8546_v24 = vld [vmem:[#allocation89_spill] sm:$0xff] }
 0x4dc   : > { %v7829_v17 = vadd.f32 %v4259_v37, %v3811_v44  ;;  %v3814_v44 = vadd.f32 %v7678_v0, %v8546_v24 }
 0x4de   : > { %4300 = vmatmul.bf16.gmra.mxu2 %v8540_v39 }
 0x4e0   : > { %v7834_v57 = vpop.f32.mrf.mxu1 }
 0x4e1   : > { %v4261_v32 = vpop.f32.mrf.mxu2 }
 0x4e2   : > { %v4262_v29 = vadd.f32 %v4261_v32, %v4173_v16  ;;  %v8548_v32 = vld [vmem:[#allocation73_spill] sm:$0xff] }
 0x4e3   : > { %4763 = vmatmul.bf16.gmra.mxu1 %v8542_v48  ;;  %v4180_v1 = vadd.f32 %v7720_v36, %v8548_v32  ;;  %v8549_v48 = vld [vmem:[#allocation91_spill] sm:$0xff] }
 0x4e4   : > { %v7839_v47 = vadd.f32 %v4262_v29, %v3812_v26  ;;  %v3815_v58 = vadd.f32 %v7678_v0, %v8549_v48 }
 0x4e8   : > { %v7843_v19 = vpop.f32.mrf.mxu1 }
 0x4e9   : > { %v4263_v46 = vpop.f32.mrf.mxu2 }
 0x4ea   : > { %v4264_v54 = vadd.f32 %v4263_v46, %v4175_v5  ;;  %v7864_v5 = vpop.f32.mrf.mxu0  ;;  %v7866_v46 = vpop.f32.mrf.mxu3 }
 0x4ec   : > { %v7847_v10 = vadd.f32 %v4264_v54, %v3813_v4  ;;  %v8550_v4 = vld [vmem:[#allocation55_spill] sm:$0xff] }
 0x4ed   : > { %v4183_v54 = vadd.f32 %v7732_v2, %v8550_v4 }
 0x4f0   : > { %v7851_v63 = vpop.f32.mrf.mxu1 }
 0x4f1   : > { %v4266_v38 = vpop.f32.mrf.mxu2 }
 0x4f2   : > { %v4267_v37 = vadd.f32 %v4266_v38, %v4178_v20  ;;  %v8551_v38 = vld [vmem:[#allocation77_spill] sm:$0xff]  ;;  %v7879_v32 = vpop.f32.mrf.mxu0  ;;  %v7882_v48 = vpop.f32.mrf.mxu3 }
 0x4f3   : > { %4768 = vmatmul.bf16.gmra.mxu1 %v8547_v8  ;;  %v3816_v24 = vadd.f32 %v7678_v0, %v8551_v38 }
 0x4f4   : > { %v7856_v16 = vadd.f32 %v4267_v37, %v3814_v44 }
 0x4f8   : > { %v7860_v26 = vpop.f32.mrf.mxu1 }
 0x4f9   : > { %v4268_v29 = vpop.f32.mrf.mxu2 }
 0x4fa   : > { %v4269_v31 = vadd.f32 %v4268_v29, %v4180_v1  ;;  %v8552_v1 = vld [vmem:[#allocation15_spill] sm:$0xff] }
 0x4fc   : > { %v7868_v61 = vadd.f32 %v4269_v31, %v3815_v58  ;;  %v8554_v31 = vld [vmem:[#allocation93_spill] sm:$0xff] }
 0x4fd   : > { %v3817_v4 = vadd.f32 %v7678_v0, %v8554_v31 }
 0x500   : > { %v4734_v18 = vpop.f32.mrf.mxu1 }
 0x501   : > { %v4735_v36 = vadd.f32 %v4734_v18, %v7689_v51  ;;  %v4271_v20 = vpop.f32.mrf.mxu2  ;;  %v8553_v51 = vld [vmem:[#allocation90_spill] sm:$0xff] }
 0x502   : > { %v4272_v44 = vadd.f32 %v4271_v20, %v4183_v54  ;;  %v4185_v2 = vadd.f32 %v7744_v13, %v8553_v51  ;;  %v8555_v20 = vld [vmem:[#allocation16_spill] sm:$0xff] }
 0x503   : > { %v4814_v37 = vadd.f32 %v4735_v36, %v7692_v42  ;;  %4773 = vmatmul.bf16.gmra.mxu1 %v7248_v41  ;;  %v8557_v51 = vld [vmem:[#allocation76_spill] sm:$0xff] }
 0x504   : > { %v7877_v8 = vadd.f32 %v4272_v44, %v3816_v24  ;;  %v7898_v24 = vpop.f32.mrf.mxu0  ;;  %v8556_v44 = vld [vmem:[#allocation56_spill] sm:$0xff] }
 0x505   : > { %v4846_v29 = vadd.f32 %v4814_v37, %v8552_v1  ;;  %v4188_v13 = vadd.f32 %v7756_v11, %v8556_v44  ;;  %v7903_v37 = vpop.f32.mrf.mxu3  ;;  %v8559_v11 = vld [vmem:[#allocation92_spill] sm:$0xff] }
 0x507   : > { %4878 = vst [vmem:[%s7886_s11] sm:$0xff] %v4846_v29 }
 0x508   : > { %v4736_v42 = vpop.f32.mrf.mxu1 }
 0x509   : > { %v4737_v41 = vadd.f32 %v4736_v42, %v7700_v15  ;;  %v4273_v58 = vpop.f32.mrf.mxu2 }
 0x50a   : > { %v4274_v54 = vadd.f32 %v4273_v58, %v4185_v2  ;;  %v8558_v58 = vld [vmem:[#allocation19_spill] sm:$0xff] }
 0x50b   : > { %v4815_v18 = vadd.f32 %v4737_v41, %v7702_v40  ;;  %v3818_v40 = vadd.f32 %v7678_v0, %v8557_v51 }
 0x50c   : > { %v7895_v36 = vadd.f32 %v4274_v54, %v3817_v4  ;;  %v4190_v4 = vadd.f32 %v7766_v56, %v8559_v11  ;;  %v8562_v56 = vld [vmem:[#allocation75_spill] sm:$0xff] }
 0x50d   : > { %v4847_v38 = vadd.f32 %v4815_v18, %v8555_v20  ;;  %v7921_v44 = vpop.f32.mrf.mxu3  ;;  %v4193_v51 = vadd.f32 %v7776_v35, %v8562_v56  ;;  %v8564_v35 = vld [vmem:[#allocation25_spill] sm:$0xff] }
 0x50f   : > { %4879 = vst [vmem:[%s7886_s11 + $0x8] sm:$0xff] %v4847_v38  ;;  %v8560_v38 = vld [vmem:[#allocation95_spill] sm:$0xff] }
 0x510   : > { %v4739_v15 = vpop.f32.mrf.mxu1 }
 0x511   : > { %v4740_v1 = vadd.f32 %v4739_v15, %v7713_v62  ;;  %v4276_v29 = vpop.f32.mrf.mxu2  ;;  %v7916_v62 = vpop.f32.mrf.mxu0 }
 0x512   : > { %v4277_v2 = vadd.f32 %v4276_v29, %v4188_v13 }
 0x513   : > { %v4816_v42 = vadd.f32 %v4740_v1, %v7716_v52  ;;  %4778 = vmatmul.bf16.gmra.mxu1 %v7274_v55  ;;  %v3819_v52 = vadd.f32 %v7678_v0, %v8560_v38  ;;  %v8561_v1 = vld [vmem:[#allocation20_spill] sm:$0xff] }
 0x514   : > { %v7910_v41 = vadd.f32 %v4277_v2, %v3818_v40 }
 0x515   : > { %v4848_v31 = vadd.f32 %v4816_v42, %v8558_v58  ;;  %v8563_v42 = vld [vmem:[#allocation64_spill] sm:$0xff] }
 0x516   : > { %v3820_v58 = vadd.f32 %v7678_v0, %v8563_v42 }
 0x517   : > { %4880 = vst [vmem:[%s7886_s11 + $0x10] sm:$0xff] %v4848_v31 }
 0x518   : > { %v4741_v54 = vpop.f32.mrf.mxu1 }
 0x519   : > { %v4742_v18 = vadd.f32 %v4741_v54, %v7724_v7  ;;  %v4278_v20 = vpop.f32.mrf.mxu2  ;;  %v7933_v11 = vpop.f32.mrf.mxu0 }
 0x51a   : > { %v4279_v55 = vadd.f32 %v4278_v20, %v4190_v4  ;;  %v7937_v4 = vpop.f32.mrf.mxu3 }
 0x51b   : > { %v4817_v13 = vadd.f32 %v4742_v18, %v7726_v49 }
 0x51c   : > { %v7924_v15 = vadd.f32 %v4279_v55, %v3819_v52 }
 0x51d   : > { %v4849_v29 = vadd.f32 %v4817_v13, %v8561_v1  ;;  %v8566_v13 = vld [vmem:[#allocation97_spill] sm:$0xff] }
 0x51f   : > { %4881 = vst [vmem:[%s7886_s11 + $0x18] sm:$0xff] %v4849_v29 }
 0x520   : > { %v4744_v40 = vpop.f32.mrf.mxu1 }
 0x521   : > { %v4745_v7 = vadd.f32 %v4744_v40, %v7737_v53  ;;  %v4281_v2 = vpop.f32.mrf.mxu2  ;;  %v8565_v53 = vld [vmem:[#allocation94_spill] sm:$0xff]  ;;  %v7951_v56 = vpop.f32.mrf.mxu0 }
 0x522   : > { %v4282_v31 = vadd.f32 %v4281_v2, %v4193_v51  ;;  %v4195_v20 = vadd.f32 %v7786_v60, %v8565_v53  ;;  %v8567_v51 = vld [vmem:[#allocation26_spill] sm:$0xff]  ;;  %v4661_v60 = vadd.f32 %v7864_v5, %v7866_v46  ;;  %v4663_v5 = vadd.f32 %v7879_v32, %v7882_v48  ;;  %v8573_v32 = vld [vmem:[#allocation32_spill] sm:$0xff] }
 0x523   : > { %v4818_v49 = vadd.f32 %v4745_v7, %v7740_v27  ;;  %4783 = vmatmul.bf16.gmra.mxu1 %v7300_v25  ;;  %v3821_v27 = vadd.f32 %v7678_v0, %v8566_v13  ;;  %v7954_v7 = vpop.f32.mrf.mxu3 }
 0x524   : > { %v7939_v54 = vadd.f32 %v4282_v31, %v3820_v58 }
 0x525   : > { %v4850_v18 = vadd.f32 %v4818_v49, %v8564_v35 }
 0x527   : > { %4882 = vst [vmem:[%s7886_s11 + $0x20] sm:$0xff] %v4850_v18 }
 0x528   : > { %v4746_v38 = vpop.f32.mrf.mxu1 }
 0x529   : > { %v4747_v52 = vadd.f32 %v4746_v38, %v7748_v14  ;;  %v4283_v55 = vpop.f32.mrf.mxu2  ;;  %v8568_v14 = vld [vmem:[#allocation63_spill] sm:$0xff]  ;;  %v7970_v46 = vpop.f32.mrf.mxu0 }
 0x52a   : > { %v4284_v1 = vadd.f32 %v4283_v55, %v4195_v20  ;;  %v4198_v2 = vadd.f32 %v7796_v21, %v8568_v14  ;;  %v8570_v20 = vld [vmem:[#allocation31_spill] sm:$0xff]  ;;  %v8571_v21 = vld [vmem:[#allocation96_spill] sm:$0xff] }
 0x52b   : > { %v4819_v25 = vadd.f32 %v4747_v52, %v7750_v23  ;;  %v8569_v23 = vld [vmem:[#allocation78_spill] sm:$0xff]  ;;  %v4200_v52 = vadd.f32 %v7806_v28, %v8571_v21  ;;  %v7975_v55 = vpop.f32.mrf.mxu3  ;;  %v7985_v14 = vld [vmem:[#allocation2] sm:$0xff] }
 0x52c   : > { %v7949_v29 = vadd.f32 %v4284_v1, %v3821_v27  ;;  %v3822_v49 = vadd.f32 %v7678_v0, %v8569_v23  ;;  %v2840_v28 = vrot.slane %v7985_v14, 1 }
 0x52d   : > { %v4851_v40 = vadd.f32 %v4819_v25, %v8567_v51 }
 0x52f   : > { %4883 = vst [vmem:[%s7886_s11 + $0x28] sm:$0xff] %v4851_v40 }
 0x530   : > { %v4749_v42 = vpop.f32.mrf.mxu1 }
 0x531   : > { %v4750_v58 = vadd.f32 %v4749_v42, %v4661_v60  ;;  %v4286_v31 = vpop.f32.mrf.mxu2  ;;  %v7983_v60 = vld [vmem:[#allocation2 + $0x1a8] sm:$0x3]  ;;  %v4666_v42 = vadd.f32 %v7898_v24, %v7903_v37 }
 0x532   : > { %v4287_v35 = vadd.f32 %v4286_v31, %v4198_v2  ;;  %v2843_v2 = vrot.slane %v7983_v60, 1 }
 0x533   : > { %v4820_v18 = vadd.f32 %v4750_v58, %v7762_v59  ;;  %4788 = vmatmul.bf16.gmra.mxu1 %v7326_v34  ;;  %v8572_v34 = vld [vmem:[#allocation99_spill] sm:$0xff]  ;;  %v8574_v58 = vld [vmem:[#allocation80_spill] sm:$0xff]  ;;  %v8001_v24 = vpop.f32.mrf.mxu3 }
 0x534   : > { %v7965_v53 = vadd.f32 %v4287_v35, %v3822_v49  ;;  %v3823_v1 = vadd.f32 %v7678_v0, %v8572_v34  ;;  %v4203_v31 = vadd.f32 %v7816_v12, %v8574_v58  ;;  %v2844_v23 = vsel %vm490_vm0, %v2840_v28, %v2843_v2  ;;  %v7995_v49 = vpop.f32.mrf.mxu0 }
 0x535   : > { %v4852_v38 = vadd.f32 %v4820_v18, %v8570_v20  ;;  %v3075_v20 = vpack.c.bf16 %v2840_v28, %v7985_v14 }
 0x537   : > { %4884 = vst [vmem:[%s7886_s11 + $0x30] sm:$0xff] %v4852_v38  ;;  %v3077_v38 = vpack.c.bf16 %v2844_v23, %v7985_v14 }
 0x538   : > { %v4751_v13 = vpop.f32.mrf.mxu1 }
 0x539   : > { %v4752_v59 = vadd.f32 %v4751_v13, %v4663_v5  ;;  %v4288_v27 = vpop.f32.mrf.mxu2  ;;  %v8575_v5 = vld [vmem:[#allocation69_spill] sm:$0xff]  ;;  %v4394_v13 = vunpack.c.l.b16 %v3077_v38  ;;  %v4395_v2 = vunpack.c.h.b16 %v3077_v38  ;;  %v8580_v38 = vld [vmem:[#allocation79_spill] sm:$0xff] }
 0x53a   : > { %v4289_v25 = vadd.f32 %v4288_v27, %v4200_v52  ;;  %v3824_v21 = vadd.f32 %v7678_v0, %v8575_v5  ;;  %v4391_v52 = vunpack.c.l.b16 %v3075_v20  ;;  %v8576_v27 = vld [vmem:[#allocation36_spill] sm:$0xff]  ;;  %v4208_v5 = vadd.f32 %v7834_v57, %v8580_v38 }
 0x53b   : > { %v4821_v51 = vadd.f32 %v4752_v59, %v7770_v45  ;;  %v4673_v57 = vadd.f32 %v7951_v56, %v7954_v7  ;;  %v4676_v56 = vadd.f32 %v7970_v46, %v7975_v55 }
 0x53c   : > { %v7980_v40 = vadd.f32 %v4289_v25, %v3823_v1  ;;  %v4397_v1 = vpack.c.b16 %v4394_v13, %v4391_v52  ;;  %v4668_v25 = vadd.f32 %v7916_v62, %v7921_v44  ;;  %v8018_v44 = vpop.f32.mrf.mxu3 }
 0x53d   : > { %v4853_v48 = vadd.f32 %v4821_v51, %v8573_v32  ;;  %v8577_v51 = vld [vmem:[#allocation98_spill] sm:$0xff] }
 0x53e   : > { %4630 = vmatmul.bf16.gmra.mxu3 %v4397_v1  ;;  %v4205_v32 = vadd.f32 %v7825_v9, %v8577_v51  ;;  %v8579_v9 = vld [vmem:[#allocation37_spill] sm:$0xff]  ;;  %v8583_v51 = vld [vmem:[#allocation100_spill] sm:$0xff] }
 0x53f   : > { %4885 = vst [vmem:[%s7886_s11 + $0x38] sm:$0xff] %v4853_v48 }
 0x540   : > { %v4754_v45 = vpop.f32.mrf.mxu1 }
 0x541   : > { %v4755_v35 = vadd.f32 %v4754_v45, %v4666_v42  ;;  %v4291_v18 = vpop.f32.mrf.mxu2  ;;  %v8578_v42 = vld [vmem:[#allocation101_spill] sm:$0xff]  ;;  %v8015_v45 = vpop.f32.mrf.mxu0 }
 0x542   : > { %v4292_v37 = vadd.f32 %v4291_v18, %v4203_v31  ;;  %v3825_v58 = vadd.f32 %v7678_v0, %v8578_v42 }
 0x543   : > { %v4822_v12 = vadd.f32 %v4755_v35, %v7782_v33  ;;  %4793 = vmatmul.bf16.gmra.mxu1 %v7352_v3  ;;  %v4392_v3 = vunpack.c.h.b16 %v3075_v20  ;;  %v4671_v20 = vadd.f32 %v7933_v11, %v7937_v4 }
 0x544   : > { %v8005_v59 = vadd.f32 %v4292_v37, %v3824_v21  ;;  %v4593_v4 = vpop.f32.mrf.mxu3 }
 0x545   : > { %v4854_v34 = vadd.f32 %v4822_v12, %v8576_v27  ;;  %v4398_v62 = vpack.c.b16 %v4395_v2, %v4392_v3 }
 0x547   : > { %4886 = vst [vmem:[%s7886_s11 + $0x40] sm:$0xff] %v4854_v34  ;;  %4719 = vmatmul.bf16.gmra.mxu0 %v4398_v62 }
 0x548   : > { %v4756_v48 = vpop.f32.mrf.mxu1 }
 0x549   : > { %v4757_v33 = vadd.f32 %v4756_v48, %v4668_v25  ;;  %v4293_v28 = vpop.f32.mrf.mxu2  ;;  %v4682_v1 = vpop.f32.mrf.mxu0  ;;  %v8582_v25 = vld [vmem:[#allocation43_spill] sm:$0xff] }
 0x54a   : > { %v4294_v31 = vadd.f32 %v4293_v28, %v4205_v32  ;;  %v4210_v32 = vadd.f32 %v7843_v19, %v8583_v51 }
 0x54b   : > { %v4823_v23 = vadd.f32 %v4757_v33, %v7790_v43  ;;  %v8581_v43 = vld [vmem:[#allocation83_spill] sm:$0xff] }
 0x54c   : > { %v8020_v35 = vadd.f32 %v4294_v31, %v3825_v58  ;;  %v3826_v52 = vadd.f32 %v7678_v0, %v8581_v43  ;;  %v8585_v58 = vld [vmem:[#allocation44_spill] sm:$0xff]  ;;  %v4596_v62 = vpop.f32.mrf.mxu3 }
 0x54d   : > { %v4855_v18 = vadd.f32 %v4823_v23, %v8579_v9  ;;  %v8586_v23 = vld [vmem:[#allocation70_spill] sm:$0xff] }
 0x54e   : > { %v4213_v19 = vadd.f32 %v7851_v63, %v8586_v23 }
 0x54f   : > { %4887 = vst [vmem:[%s7886_s11 + $0x48] sm:$0xff] %v4855_v18  ;;  %v2966_v18 = vrot.slane %v7985_v14, 2  ;;  %v4678_v14 = vadd.f32 %v7995_v49, %v8001_v24 }
 0x550   : > { %v4759_v21 = vpop.f32.mrf.mxu1 }
 0x551   : > { %v4760_v37 = vadd.f32 %v4759_v21, %v4671_v20  ;;  %v4296_v12 = vpop.f32.mrf.mxu2  ;;  %v4685_v7 = vpop.f32.mrf.mxu0  ;;  %v2969_v20 = vrot.slane %v7983_v60, 2  ;;  %v3076_v60 = vpack.c.bf16 %v2966_v18, %v2966_v18 }
 0x552   : > { %v4297_v13 = vadd.f32 %v4296_v12, %v4208_v5  ;;  %v8587_v5 = vld [vmem:[#allocation82_spill] sm:$0xff]  ;;  %v8588_v12 = vld [vmem:[#allocation52_spill] sm:$0xff] }
 0x553   : > { %v4824_v27 = vadd.f32 %v4760_v37, %v7802_v30  ;;  %4798 = vmatmul.bf16.gmra.mxu1 %v7379_v50  ;;  %v8584_v30 = vld [vmem:[#allocation102_spill] sm:$0xff]  ;;  %v3828_v21 = vadd.f32 %v7678_v0, %v8587_v5  ;;  %v2970_v63 = vsel %vm617_vm1, %v2966_v18, %v2969_v20  ;;  %v4393_v49 = vunpack.c.l.b16 %v3076_v60 }
 0x554   : > { %v8032_v34 = vadd.f32 %v4297_v13, %v3826_v52  ;;  %v3827_v50 = vadd.f32 %v7678_v0, %v8584_v30  ;;  %v3078_v52 = vpack.c.bf16 %v2970_v63, %v2970_v63  ;;  %v8589_v13 = vld [vmem:[#allocation103_spill] sm:$0xff]  ;;  %v8591_v30 = vld [vmem:[#allocation53_spill] sm:$0xff]  ;;  %v4686_v5 = vadd.f32 %v4685_v7, %v4596_v62  ;;  %v8595_v60 = vld [vmem:[#allocation18_spill] sm:$0xff] }
 0x555   : > { %v4856_v11 = vadd.f32 %v4824_v27, %v8582_v25  ;;  %v4215_v27 = vadd.f32 %v7860_v26, %v8589_v13  ;;  %v4681_v26 = vadd.f32 %v8015_v45, %v8018_v44  ;;  %v8593_v44 = vld [vmem:[#allocation14_spill] sm:$0xff] }
 0x556   : > { %v4396_v24 = vunpack.c.l.b16 %v3078_v52 }
 0x557   : > { %4888 = vst [vmem:[%s7886_s11 + $0x50] sm:$0xff] %v4856_v11 }
 0x558   : > { %v4761_v48 = vpop.f32.mrf.mxu1 }
 0x559   : > { %v4762_v33 = vadd.f32 %v4761_v48, %v4673_v57  ;;  %v4298_v28 = vpop.f32.mrf.mxu2  ;;  %v8590_v57 = vld [vmem:[#allocation104_spill] sm:$0xff] }
 0x55a   : > { %v4299_v3 = vadd.f32 %v4298_v28, %v4210_v32  ;;  %v3829_v51 = vadd.f32 %v7678_v0, %v8590_v57  ;;  %v4598_v32 = vpop.f32.mrf.mxu3 }
 0x55b   : > { %v4825_v2 = vadd.f32 %v4762_v33, %v7810_v22 }
 0x55c   : > { %v8043_v42 = vadd.f32 %v4299_v3, %v3827_v50  ;;  %v4399_v3 = vpack.c.b16 %v4396_v24, %v4393_v49 }
 0x55d   : > { %v4857_v31 = vadd.f32 %v4825_v2, %v8585_v58 }
 0x55f   : > { %4889 = vst [vmem:[%s7886_s11 + $0x58] sm:$0xff] %v4857_v31 }
 0x560   : > { %v4764_v9 = vpop.f32.mrf.mxu1 }
 0x561   : > { %v4765_v22 = vadd.f32 %v4764_v9, %v4676_v56  ;;  %v4301_v38 = vpop.f32.mrf.mxu2  ;;  %v8592_v56 = vld [vmem:[#allocation13_spill] sm:$0xff] }
 0x562   : > { %v4302_v37 = vadd.f32 %v4301_v38, %v4213_v19  ;;  %v4683_v19 = vadd.f32 %v4682_v1, %v4593_v4 }
 0x563   : > { %v4826_v46 = vadd.f32 %v4765_v22, %v7821_v6  ;;  %4803 = vmatmul.bf16.gmra.mxu1 %v8540_v39  ;;  %v4687_v6 = vpop.f32.mrf.mxu0 }
 0x564   : > { %v8057_v55 = vadd.f32 %v4302_v37, %v3828_v21  ;;  %v4688_v1 = vadd.f32 %v4687_v6, %v4598_v32  ;;  %v8596_v6 = vld [vmem:[#allocation21_spill] sm:$0xff] }
 0x565   : > { %v4858_v43 = vadd.f32 %v4826_v46, %v8588_v12  ;;  %v8594_v46 = vld [vmem:[#allocation17_spill] sm:$0xff] }
 0x567   : > { %4890 = vst [vmem:[%s7886_s11 + $0x60] sm:$0xff] %v4858_v43 }
 0x568   : > { %v4766_v25 = vpop.f32.mrf.mxu1 }
 0x569   : > { %v4767_v11 = vadd.f32 %v4766_v25, %v4678_v14  ;;  %v4303_v39 = vpop.f32.mrf.mxu2 }
 0x56a   : > { %v4304_v48 = vadd.f32 %v4303_v39, %v4215_v27 }
 0x56b   : > { %v4827_v33 = vadd.f32 %v4767_v11, %v7829_v17  ;;  %v4690_v0 = vpop.f32.mrf.mxu0  ;;  %v4601_v17 = vpop.f32.mrf.mxu3 }
 0x56c   : > { %v8069_v28 = vadd.f32 %v4304_v48, %v3829_v51  ;;  %v4691_v13 = vadd.f32 %v4690_v0, %v4601_v17 }
 0x56d   : > { %v4859_v50 = vadd.f32 %v4827_v33, %v8591_v30  ;;  %v8597_v33 = vld [vmem:[#allocation22_spill] sm:$0xff] }
 0x56f   : > { %4891 = vst [vmem:[%s7886_s11 + $0x68] sm:$0xff] %v4859_v50 }
 0x570   : > { %v4769_v2 = vpop.f32.mrf.mxu1 }
 0x571   : > { %v4770_v58 = vadd.f32 %v4769_v2, %v4681_v26 }
 0x573   : > { %v4828_v31 = vadd.f32 %v4770_v58, %v7839_v47  ;;  %4808 = vmatmul.bf16.gmra.mxu1 %v4399_v3  ;;  %v4692_v45 = vpop.f32.mrf.mxu0  ;;  %v4603_v38 = vpop.f32.mrf.mxu3  ;;  %v8598_v3 = vld [vmem:[#allocation27_spill] sm:$0xff] }
 0x574   : > { %v4693_v39 = vadd.f32 %v4692_v45, %v4603_v38 }
 0x575   : > { %v4860_v23 = vadd.f32 %v4828_v31, %v8592_v56  ;;  %v8599_v56 = vld [vmem:[#allocation28_spill] sm:$0xff] }
 0x577   : > { %4892 = vst [vmem:[%s7886_s11 + $0x70] sm:$0xff] %v4860_v23 }
 0x578   : > { %v4771_v9 = vpop.f32.mrf.mxu1 }
 0x579   : > { %v4772_v18 = vadd.f32 %v4771_v9, %v4683_v19 }
 0x57b   : > { %v4829_v20 = vadd.f32 %v4772_v18, %v7847_v10  ;;  %v4695_v4 = vpop.f32.mrf.mxu0  ;;  %v4606_v12 = vpop.f32.mrf.mxu3 }
 0x57c   : > { %v4696_v24 = vadd.f32 %v4695_v4, %v4606_v12 }
 0x57d   : > { %v4861_v22 = vadd.f32 %v4829_v20, %v8593_v44  ;;  %v8600_v44 = vld [vmem:[#allocation33_spill] sm:$0xff] }
 0x57f   : > { %4893 = vst [vmem:[%s7886_s11 + $0x78] sm:$0xff] %v4861_v22 }
 0x580   : > { %v4774_v21 = vpop.f32.mrf.mxu1 }
 0x581   : > { %v4775_v47 = vadd.f32 %v4774_v21, %v4686_v5 }
 0x583   : > { %v4830_v37 = vadd.f32 %v4775_v47, %v7856_v16  ;;  %v4697_v62 = vpop.f32.mrf.mxu0  ;;  %v4608_v16 = vpop.f32.mrf.mxu3 }
 0x584   : > { %v4698_v0 = vadd.f32 %v4697_v62, %v4608_v16 }
 0x585   : > { %v4862_v63 = vadd.f32 %v4830_v37, %v8594_v46  ;;  %v8601_v46 = vld [vmem:[#allocation34_spill] sm:$0xff] }
 0x587   : > { %4894 = vst [vmem:[%s7886_s11 + $0x80] sm:$0xff] %v4862_v63 }
 0x588   : > { %v4776_v43 = vpop.f32.mrf.mxu1 }
 0x589   : > { %v4777_v10 = vadd.f32 %v4776_v43, %v4688_v1 }
 0x58b   : > { %v4831_v14 = vadd.f32 %v4777_v10, %v7868_v61  ;;  %v4700_v32 = vpop.f32.mrf.mxu0  ;;  %v4611_v48 = vpop.f32.mrf.mxu3 }
 0x58c   : > { %v4701_v19 = vadd.f32 %v4700_v32, %v4611_v48 }
 0x58d   : > { %v4863_v52 = vadd.f32 %v4831_v14, %v8595_v60  ;;  %v8602_v14 = vld [vmem:[#allocation38_spill] sm:$0xff] }
 0x58f   : > { %4895 = vst [vmem:[%s7886_s11 + $0x88] sm:$0xff] %v4863_v52 }
 0x590   : > { %v4779_v7 = vpop.f32.mrf.mxu1 }
 0x591   : > { %v4780_v27 = vadd.f32 %v4779_v7, %v4691_v13 }
 0x593   : > { %v4832_v25 = vadd.f32 %v4780_v27, %v7877_v8  ;;  %v4702_v26 = vpop.f32.mrf.mxu0  ;;  %v4613_v58 = vpop.f32.mrf.mxu3  ;;  %v8603_v27 = vld [vmem:[#allocation39_spill] sm:$0xff] }
 0x594   : > { %v4703_v38 = vadd.f32 %v4702_v26, %v4613_v58  ;;  %v8606_v58 = vld [vmem:[#allocation54_spill] sm:$0xff] }
 0x595   : > { %v4864_v11 = vadd.f32 %v4832_v25, %v8596_v6 }
 0x597   : > { %4896 = vst [vmem:[%s7886_s11 + $0x90] sm:$0xff] %v4864_v11 }
 0x598   : > { %v4781_v57 = vpop.f32.mrf.mxu1 }
 0x599   : > { %v4782_v51 = vadd.f32 %v4781_v57, %v4693_v39  ;;  %v8604_v57 = vld [vmem:[#allocation45_spill] sm:$0xff] }
 0x59b   : > { %v4833_v61 = vadd.f32 %v4782_v51, %v7895_v36  ;;  %v4705_v9 = vpop.f32.mrf.mxu0  ;;  %v4616_v18 = vpop.f32.mrf.mxu3 }
 0x59c   : > { %v4706_v1 = vadd.f32 %v4705_v9, %v4616_v18  ;;  %v8607_v9 = vld [vmem:[#allocation57_spill] sm:$0xff] }
 0x59d   : > { %v4865_v49 = vadd.f32 %v4833_v61, %v8597_v33 }
 0x59f   : > { %4897 = vst [vmem:[%s7886_s11 + $0x98] sm:$0xff] %v4865_v49 }
 0x5a0   : > { %v4784_v30 = vpop.f32.mrf.mxu1 }
 0x5a1   : > { %v4785_v50 = vadd.f32 %v4784_v30, %v4696_v24  ;;  %v8605_v24 = vld [vmem:[#allocation46_spill] sm:$0xff] }
 0x5a3   : > { %v4834_v8 = vadd.f32 %v4785_v50, %v7910_v41  ;;  %v4707_v21 = vpop.f32.mrf.mxu0 }
 0x5a5   : > { %v4866_v2 = vadd.f32 %v4834_v8, %v8598_v3 }
 0x5a7   : > { %4898 = vst [vmem:[%s7886_s11 + $0xa0] sm:$0xff] %v4866_v2 }
 0x5a8   : > { %v4786_v31 = vpop.f32.mrf.mxu1 }
 0x5a9   : > { %v4787_v17 = vadd.f32 %v4786_v31, %v4698_v0 }
 0x5ab   : > { %v4835_v36 = vadd.f32 %v4787_v17, %v7924_v15  ;;  %v4618_v15 = vpop.f32.mrf.mxu3  ;;  %v4710_v43 = vpop.f32.mrf.mxu0 }
 0x5ac   : > { %v4708_v52 = vadd.f32 %v4707_v21, %v4618_v15 }
 0x5ad   : > { %v4867_v23 = vadd.f32 %v4835_v36, %v8599_v56 }
 0x5af   : > { %4899 = vst [vmem:[%s7886_s11 + $0xa8] sm:$0xff] %v4867_v23 }
 0x5b0   : > { %v4789_v20 = vpop.f32.mrf.mxu1 }
 0x5b1   : > { %v4790_v41 = vadd.f32 %v4789_v20, %v4701_v19 }
 0x5b3   : > { %v4836_v45 = vadd.f32 %v4790_v41, %v7939_v54  ;;  %v4621_v10 = vpop.f32.mrf.mxu3  ;;  %v4712_v62 = vpop.f32.mrf.mxu0 }
 0x5b4   : > { %v4711_v6 = vadd.f32 %v4710_v43, %v4621_v10 }
 0x5b5   : > { %v4868_v22 = vadd.f32 %v4836_v45, %v8600_v44 }
 0x5b7   : > { %4900 = vst [vmem:[%s7886_s11 + $0xb0] sm:$0xff] %v4868_v22  ;;  %v8608_v22 = vld [vmem:[#allocation50_spill] sm:$0xff] }
 0x5b8   : > { %v4791_v5 = vpop.f32.mrf.mxu1 }
 0x5b9   : > { %v4792_v47 = vadd.f32 %v4791_v5, %v4703_v38 }
 0x5bb   : > { %v4837_v37 = vadd.f32 %v4792_v47, %v7949_v29  ;;  %v4623_v25 = vpop.f32.mrf.mxu3  ;;  %v4715_v61 = vpop.f32.mrf.mxu0  ;;  %v8609_v47 = vld [vmem:[#allocation58_spill] sm:$0xff] }
 0x5bc   : > { %v4713_v32 = vadd.f32 %v4712_v62, %v4623_v25 }
 0x5bd   : > { %v4869_v63 = vadd.f32 %v4837_v37, %v8601_v46 }
 0x5bf   : > { %4901 = vst [vmem:[%s7886_s11 + $0xb8] sm:$0xff] %v4869_v63 }
 0x5c0   : > { %v4794_v4 = vpop.f32.mrf.mxu1 }
 0x5c1   : > { %v4795_v12 = vadd.f32 %v4794_v4, %v4706_v1 }
 0x5c3   : > { %v4838_v54 = vadd.f32 %v4795_v12, %v7965_v53  ;;  %v4626_v48 = vpop.f32.mrf.mxu3  ;;  %v4717_v3 = vpop.f32.mrf.mxu0 }
 0x5c4   : > { %v4716_v50 = vadd.f32 %v4715_v61, %v4626_v48 }
 0x5c5   : > { %v4870_v60 = vadd.f32 %v4838_v54, %v8602_v14 }
 0x5c7   : > { %4902 = vst [vmem:[%s7886_s11 + $0xc0] sm:$0xff] %v4870_v60 }
 0x5c8   : > { %v4796_v13 = vpop.f32.mrf.mxu1 }
 0x5c9   : > { %v4797_v7 = vadd.f32 %v4796_v13, %v4708_v52 }
 0x5cb   : > { %v4839_v29 = vadd.f32 %v4797_v7, %v7980_v40  ;;  %v4720_v56 = vpop.f32.mrf.mxu0 }
 0x5cd   : > { %v4871_v16 = vadd.f32 %v4839_v29, %v8603_v27 }
 0x5cf   : > { %4903 = vst [vmem:[%s7886_s11 + $0xc8] sm:$0xff] %v4871_v16 }
 0x5d0   : > { %v4799_v11 = vpop.f32.mrf.mxu1 }
 0x5d1   : > { %v4800_v39 = vadd.f32 %v4799_v11, %v4711_v6 }
 0x5d3   : > { %v4840_v53 = vadd.f32 %v4800_v39, %v8005_v59  ;;  %v4628_v59 = vpop.f32.mrf.mxu3  ;;  %v4722_v44 = vpop.f32.mrf.mxu0 }
 0x5d4   : > { %v4718_v31 = vadd.f32 %v4717_v3, %v4628_v59 }
 0x5d5   : > { %v4872_v51 = vadd.f32 %v4840_v53, %v8604_v57 }
 0x5d7   : > { %4904 = vst [vmem:[%s7886_s11 + $0xd0] sm:$0xff] %v4872_v51 }
 0x5d8   : > { %v4801_v33 = vpop.f32.mrf.mxu1 }
 0x5d9   : > { %v4802_v40 = vadd.f32 %v4801_v33, %v4713_v32 }
 0x5db   : > { %v4841_v49 = vadd.f32 %v4802_v40, %v8020_v35  ;;  %v4631_v35 = vpop.f32.mrf.mxu3 }
 0x5dc   : > { %v4721_v19 = vadd.f32 %v4720_v56, %v4631_v35 }
 0x5dd   : > { %v4873_v30 = vadd.f32 %v4841_v49, %v8605_v24 }
 0x5df   : > { %4905 = vst [vmem:[%s7886_s11 + $0xd8] sm:$0xff] %v4873_v30 }
 0x5e0   : > { %v4804_v8 = vpop.f32.mrf.mxu1 }
 0x5e1   : > { %v4805_v26 = vadd.f32 %v4804_v8, %v4716_v50 }
 0x5e3   : > { %v4842_v2 = vadd.f32 %v4805_v26, %v8032_v34  ;;  %v4633_v45 = vpop.f32.mrf.mxu3 }
 0x5e5   : > { %v4874_v0 = vadd.f32 %v4842_v2, %v8606_v58 }
 0x5e7   : > { %4906 = vst [vmem:[%s7886_s11 + $0xe0] sm:$0xff] %v4874_v0 }
 0x5e8   : > { %v4806_v17 = vpop.f32.mrf.mxu1 }
 0x5e9   : > { %v4807_v36 = vadd.f32 %v4806_v17, %v4718_v31 }
 0x5eb   : > { %v4843_v23 = vadd.f32 %v4807_v36, %v8043_v42  ;;  %v4723_v42 = vadd.f32 %v4722_v44, %v4633_v45 }
 0x5ed   : > { %v4875_v18 = vadd.f32 %v4843_v23, %v8607_v9 }
 0x5ef   : > { %4907 = vst [vmem:[%s7886_s11 + $0xe8] sm:$0xff] %v4875_v18 }
 0x5f0   : > { %v4809_v20 = vpop.f32.mrf.mxu1 }
 0x5f1   : > { %v4810_v41 = vadd.f32 %v4809_v20, %v4721_v19 }
 0x5f3   : > { %v4844_v34 = vadd.f32 %v4810_v41, %v8057_v55 }
 0x5f5   : > { %v4876_v38 = vadd.f32 %v4844_v34, %v8608_v22 }
 0x5f7   : > { %4908 = vst [vmem:[%s7886_s11 + $0xf0] sm:$0xff] %v4876_v38 }
 0x5f8   : > { %v4811_v5 = vpop.f32.mrf.mxu1 }
 0x5f9   : > { %v4812_v21 = vadd.f32 %v4811_v5, %v4723_v42 }
 0x5fb   : > { %v4845_v55 = vadd.f32 %v4812_v21, %v8069_v28 }
 0x5fd   : > { %v4877_v15 = vadd.f32 %v4845_v55, %v8609_v47 }
 0x5ff   : > { %4909 = vst [vmem:[%s7886_s11 + $0xf8] sm:$0xff] %v4877_v15 }
 0x600   : > { %5982 = shalt.err (!%p5979_p10)
}
 0x601   : > { %s6034_s8 = smov 128   ;;  %s6035_s10 = smov 8  }
 0x602   : > { %5784 = dma.vmem_to_hbm [thread:$0]  (%p6132_p3), %s4924_s6, 4096, %s4926_s26, %s4911_s22, %s6034_s8, %s6034_s8, %s6035_s10  }
 0x603 PF: > { %s4940_s11 = sand.u32 1, %s6013_s18   ;;  %p8610_p12 = scmp.ge.s32.totalorder %s6025_s21, 2 }
 0x604   : > { %s4941_s12 = scalar_lea.sflag [#allocation5], %s4940_s11 }
 0x605   : > { %p5798_p13 = pnand %p8610_p12, %p6101_p6 }
 0x607   : > { %p5799_p0 = pneg %p5798_p13 }
 0x609   : > { %6008 = dma.done.wait (%p5799_p0), %s4941_s12, 4096  }
 0x60a   : > { %6010 = vsyncadd (%p5799_p0), %s4941_s12, 4294963200  ;;  %p19_p5 = scmp.ge.s32.totalorder %s6122_s14, 4   ;;  %s8611_s18 = smov %s6017_s19 }
 0x60b   : > { %s8612_s19 = smov %s6021_s20  ;;  %s8613_s20 = smov %s6138_s23 }
 0x60c   : > { %s8614_s21 = smov %s6122_s14  ;;  %21 = sbr.rel (!%p19_p5) target bundleno = 6 (0x6), region = 99 }
 0x611   :  { %4947 = vsyncpa [#allocation4], 1 }
 0x612   :  { %4949 = vsyncpa [#allocation4 + $0x1], 1 }
 0x613   :  { %4950 = vsyncpa [#allocation7], 1 }
 0x614   :  { %4951 = vsyncpa [#allocation5], 1 }
 0x615   :  { %4953 = vsyncpa [#allocation5 + $0x1], 1 }

</bundles_post_ra>
